<compile_context>
chip_gen: v6e
topology: v6e:2x2x1
jax: 0.10.0
libtpu: 0.0.40
codegen_flags: <defaults>
</compile_context>

<pallas_src>
import jax
import jax.numpy as jnp
from jax.experimental import pallas as pl
from jax.experimental.pallas import tpu as pltpu


# ----------------------------------------------------------------------------
# Fused kernel: expand conv -> BN -> ReLU6 -> AttentionModule -> depthwise 3x3
#               -> BN -> ReLU6 -> project conv -> BN -> residual add.
# One grid step per batch element (batch axis is "parallel").
# ----------------------------------------------------------------------------
def _fused_kernel(x_mat_ref, x_cmaj_ref,
                  w1_ref, b1_ref,
                  wq_ref, bq_ref, wk_ref, bk_ref, wv_ref, bv_ref,
                  dw_ref, b2_ref, w3_ref, b3_ref,
                  o_ref, ypad_ref):
    _, HW, Cin = x_mat_ref.shape
    Hp, Wp, hidden = ypad_ref.shape
    H, W = Hp - 2, Wp - 2

    x2 = x_mat_ref[0]                                              # (HW, Cin)

    # ---- 1x1 expand conv (BN scale pre-folded into w1) + BN bias + ReLU6 ----
    h = jnp.dot(x2, w1_ref[...], preferred_element_type=jnp.float32)
    h = jnp.clip(h + b1_ref[...], 0.0, 6.0)                        # (HW, hidden)

    # ---- AttentionModule (expand/squeeze/query/key/value chain pre-folded) --
    q = jnp.dot(h, wq_ref[...], preferred_element_type=jnp.float32) + bq_ref[...]
    k = jnp.dot(h, wk_ref[...], preferred_element_type=jnp.float32) + bk_ref[...]
    v = jnp.dot(h, wv_ref[...], preferred_element_type=jnp.float32) + bv_ref[...]

    # attention_map[i, j] = sum_c Q[i, c] * K[j, c]   (matches bmm(Q^T, K))
    scores = jnp.dot(q, k.T, preferred_element_type=jnp.float32)   # (HW, HW)
    scores = scores - jnp.max(scores, axis=-1, keepdims=True)
    e = jnp.exp(scores)
    attn = e * pl.reciprocal(jnp.sum(e, axis=-1, keepdims=True), approx=True)
    # output[i, c] = sum_j attn[i, j] * V[j, c]       (matches bmm(V, attn^T))
    att = jnp.dot(attn, v, preferred_element_type=jnp.float32)     # (HW, hidden)

    # ---- zero-padded halo in VMEM (replaces wrapper-level jnp.pad + HBM trip)
    ypad_ref[...] = jnp.zeros(ypad_ref.shape, jnp.float32)
    ypad_ref[1:1 + H, 1:1 + W, :] = att.reshape(H, W, hidden)

    # ---- depthwise 3x3 (padding=1), BN scale pre-folded into dw -------------
    acc = jnp.zeros((H, W, hidden), jnp.float32)
    for kh in range(3):
        for kw in range(3):
            tap = ypad_ref[kh:kh + H, kw:kw + W, :]                 # (H, W, hidden)
            wgt = dw_ref[3 * kh + kw, :]                            # (hidden,)
            acc = acc + tap * wgt[None, None, :]

    d = jnp.clip(acc.reshape(HW, hidden) + b2_ref[...], 0.0, 6.0)   # BN bias + ReLU6

    # ---- 1x1 project conv (BN scale pre-folded) + BN bias -------------------
    out = jnp.dot(d, w3_ref[...], preferred_element_type=jnp.float32) + b3_ref[...]

    # ---- residual add; channels-major so the last dim (HW=256) is lane-dense
    o_ref[0] = x_cmaj_ref[0] + out.T                                # (Cout, HW)


# ----------------------------------------------------------------------------
# Wrapper
# ----------------------------------------------------------------------------
_WEIGHT_KEYS = ("w1", "b1", "wq", "bq", "wk", "bk", "wv", "bv",
                "dw", "b2", "w3", "b3")


def _full_spec(arr):
    nd = arr.ndim
    return pl.BlockSpec(arr.shape, lambda b, _nd=nd: (0,) * _nd)


def inverted_residual_block(x_nhwc, fp):
    B, H, W, Cin = x_nhwc.shape
    hidden = fp["w1"].shape[1]
    Cout = fp["w3"].shape[1]
    r = fp["wq"].shape[1]
    assert Cin == Cout, "residual add requires matching channel count"
    HW = H * W

    # wrapper-side layout plumbing (free XLA glue):
    x_mat = x_nhwc.reshape(B, HW, Cin)            # rows = spatial, cols = channels
    x_cmaj = jnp.transpose(x_mat, (0, 2, 1))      # (B, Cin, HW) lane-dense residual

    weights = [fp[k] for k in _WEIGHT_KEYS]
    in_specs = [pl.BlockSpec((1, HW, Cin), lambda b: (b, 0, 0)),
                pl.BlockSpec((1, Cin, HW), lambda b: (b, 0, 0))]
    in_specs += [_full_spec(w) for w in weights]

    flops = B * (2 * HW * Cin * hidden                  # expand conv
                 + 2 * HW * hidden * (2 * r + hidden)   # q, k, v
                 + 2 * HW * HW * r                      # Q @ K^T
                 + 2 * HW * HW * hidden                 # attn @ V
                 + 2 * 9 * HW * hidden                  # depthwise 3x3
                 + 2 * HW * hidden * Cout)              # project conv
    bytes_accessed = 4 * (2 * int(x_nhwc.size) + B * HW * Cout
                          + sum(int(w.size) for w in weights))
    cost = pl.CostEstimate(flops=flops, transcendentals=B * HW * HW,
                           bytes_accessed=bytes_accessed)

    out_cmaj = pl.pallas_call(
        _fused_kernel,
        out_shape=jax.ShapeDtypeStruct((B, Cout, HW), jnp.float32),
        grid=(B,),
        in_specs=in_specs,
        out_specs=pl.BlockSpec((1, Cout, HW), lambda b: (b, 0, 0)),
        scratch_shapes=[pltpu.VMEM((H + 2, W + 2, hidden), jnp.float32)],
        compiler_params=pltpu.CompilerParams(dimension_semantics=("parallel",)),
        cost_estimate=cost,
    )(x_mat, x_cmaj, *weights)

    return jnp.transpose(out_cmaj, (0, 2, 1)).reshape(B, H, W, Cout)


# ----------------------------------------------------------------------------
# Deterministic raw parameters (shapes follow the PyTorch __init__)
# ----------------------------------------------------------------------------
def init_params(key, cin, cout, expansion, reduction=16, eps=1e-5):
    hidden = cin * expansion
    r = hidden // reduction
    keys = iter(jax.random.split(key, 32))

    def nrm(shape, scale=0.1):
        return scale * jax.random.normal(next(keys), shape, jnp.float32)

    def bn(c):  # fold BatchNorm (inference) into per-channel scale / bias
        gamma = 1.0 + 0.1 * jax.random.normal(next(keys), (c,), jnp.float32)
        beta = 0.1 * jax.random.normal(next(keys), (c,), jnp.float32)
        mean = 0.1 * jax.random.normal(next(keys), (c,), jnp.float32)
        var = jax.random.uniform(next(keys), (c,), jnp.float32, 0.5, 1.5)
        scale = gamma / jnp.sqrt(var + eps)
        bias = beta - mean * scale
        return scale.reshape(1, c), bias.reshape(1, c)

    p = {}
    p["w1"] = nrm((cin, hidden))                       # expand 1x1 (transposed)
    p["s1"], p["b1"] = bn(hidden)
    p["we"] = nrm((hidden, hidden)); p["be"] = nrm((1, hidden))
    p["ws"] = nrm((hidden, r));      p["bs"] = nrm((1, r))
    p["wq"] = nrm((r, r));           p["bq"] = nrm((1, r))
    p["wk"] = nrm((r, r));           p["bk"] = nrm((1, r))
    p["wv"] = nrm((r, hidden));      p["bv"] = nrm((1, hidden))
    wd = nrm((hidden, 3, 3))                           # depthwise 3x3
    p["dw"] = jnp.transpose(wd, (1, 2, 0)).reshape(9, hidden)
    p["s2"], p["b2"] = bn(hidden)
    p["w3"] = nrm((hidden, cout))                      # project 1x1 (transposed)
    p["s3"], p["b3"] = bn(cout)
    return p


def fold_params(p):
    """Offline algebraic folding: BN scales into conv weights, and the bias-free
    linear attention chain (expand->squeeze->q/k/v) into direct h->q/k/v maps."""
    fp = {}
    fp["w1"] = p["w1"] * p["s1"]
    fp["b1"] = p["b1"]
    wsq = p["we"] @ p["ws"]                 # (hidden, r)
    bsq = p["be"] @ p["ws"] + p["bs"]       # (1, r)
    fp["wq"] = wsq @ p["wq"]; fp["bq"] = bsq @ p["wq"] + p["bq"]
    fp["wk"] = wsq @ p["wk"]; fp["bk"] = bsq @ p["wk"] + p["bk"]
    fp["wv"] = wsq @ p["wv"]; fp["bv"] = bsq @ p["wv"] + p["bv"]
    fp["dw"] = p["dw"] * p["s2"]            # (9, hidden)
    fp["b2"] = p["b2"]
    fp["w3"] = p["w3"] * p["s3"]
    fp["b3"] = p["b3"]
    return fp


# ----------------------------------------------------------------------------
# Pure-JAX reference (un-folded params, same math as the torch module)
# ----------------------------------------------------------------------------
def reference(x_nhwc, p):
    B, H, W, Cin = x_nhwc.shape
    hidden = p["w1"].shape[1]
    HW = H * W
    x2 = x_nhwc.reshape(B, HW, Cin)
    h = jnp.clip(x2 @ p["w1"] * p["s1"] + p["b1"], 0.0, 6.0)
    xe = h @ p["we"] + p["be"]
    xs = xe @ p["ws"] + p["bs"]
    q = xs @ p["wq"] + p["bq"]
    k = xs @ p["wk"] + p["bk"]
    v = xs @ p["wv"] + p["bv"]
    attn = jax.nn.softmax(jnp.einsum("bic,bjc->bij", q, k), axis=-1)
    att = jnp.einsum("bij,bjc->bic", attn, v).reshape(B, H, W, hidden)
    ypad = jnp.pad(att, ((0, 0), (1, 1), (1, 1), (0, 0)))
    dw = p["dw"].reshape(3, 3, hidden)
    acc = jnp.zeros((B, H, W, hidden), jnp.float32)
    for kh in range(3):
        for kw in range(3):
            acc = acc + ypad[:, kh:kh + H, kw:kw + W, :] * dw[kh, kw][None, None, None, :]
    d = jnp.clip(acc.reshape(B, HW, hidden) * p["s2"] + p["b2"], 0.0, 6.0)
    out = d @ p["w3"] * p["s3"] + p["b3"]
    return (x2 + out).reshape(B, H, W, Cin)


if __name__ == "__main__":
    key = jax.random.PRNGKey(0)
    kx, kp = jax.random.split(key)

    # InvertedResidualBlock(in_channels=8, out_channels=8, expansion_factor=4)
    B, Cin, H, W = 2, 8, 16, 16
    expansion = 4
    Cout = Cin  # residual x + residual(x) requires matching channel count

    x_nchw = jax.random.normal(kx, (B, Cin, H, W), jnp.float32)   # PyTorch layout
    x_nhwc = jnp.transpose(x_nchw, (0, 2, 3, 1))                  # kernel layout

    raw = init_params(kp, Cin, Cout, expansion)
    folded = fold_params(raw)

    out = inverted_residual_block(x_nhwc, folded)
    out = jax.block_until_ready(out)

    ref = reference(x_nhwc, raw)
    assert out.shape == (B, H, W, Cout)
    assert jnp.allclose(out, ref, atol=2e-3, rtol=2e-3), \
        float(jnp.max(jnp.abs(out - ref)))

    print("KERNEL_OK")
</pallas_src>

<mosaic_0001>
module attributes {stable_mosaic.version = 11 : i64} {
  func.func @_fused_kernel(%arg0: i32, %arg1: memref<1x256x8xf32, #tpu.memory_space<vmem>>, %arg2: memref<1x8x256xf32, #tpu.memory_space<vmem>>, %arg3: memref<8x32xf32, #tpu.memory_space<vmem>>, %arg4: memref<1x32xf32, #tpu.memory_space<vmem>>, %arg5: memref<32x2xf32, #tpu.memory_space<vmem>>, %arg6: memref<1x2xf32, #tpu.memory_space<vmem>>, %arg7: memref<32x2xf32, #tpu.memory_space<vmem>>, %arg8: memref<1x2xf32, #tpu.memory_space<vmem>>, %arg9: memref<32x32xf32, #tpu.memory_space<vmem>>, %arg10: memref<1x32xf32, #tpu.memory_space<vmem>>, %arg11: memref<9x32xf32, #tpu.memory_space<vmem>>, %arg12: memref<1x32xf32, #tpu.memory_space<vmem>>, %arg13: memref<32x8xf32, #tpu.memory_space<vmem>>, %arg14: memref<1x8xf32, #tpu.memory_space<vmem>>, %arg15: memref<1x8x256xf32, #tpu.memory_space<vmem>>, %arg16: memref<18x18x32xf32, #tpu.memory_space<vmem>>) attributes {dimension_semantics = [#tpu.dimension_semantics<parallel>], iteration_bounds = array<i64: 2>, scalar_prefetch = 0 : i64, scratch_operands = 1 : i64, tpu.core_type = #tpu.core_type<tc>, window_params = [{transform_indices = @transform_0, window_bounds = array<i64: 1, 256, 8>}, {transform_indices = @transform_1, window_bounds = array<i64: 1, 8, 256>}, {pipeline_mode = #tpu.pipeline_mode<synchronous>, transform_indices = @transform_2, window_bounds = array<i64: 8, 32>}, {pipeline_mode = #tpu.pipeline_mode<synchronous>, transform_indices = @transform_3, window_bounds = array<i64: 1, 32>}, {pipeline_mode = #tpu.pipeline_mode<synchronous>, transform_indices = @transform_4, window_bounds = array<i64: 32, 2>}, {pipeline_mode = #tpu.pipeline_mode<synchronous>, transform_indices = @transform_5, window_bounds = array<i64: 1, 2>}, {pipeline_mode = #tpu.pipeline_mode<synchronous>, transform_indices = @transform_6, window_bounds = array<i64: 32, 2>}, {pipeline_mode = #tpu.pipeline_mode<synchronous>, transform_indices = @transform_7, window_bounds = array<i64: 1, 2>}, {pipeline_mode = #tpu.pipeline_mode<synchronous>, transform_indices = @transform_8, window_bounds = array<i64: 32, 32>}, {pipeline_mode = #tpu.pipeline_mode<synchronous>, transform_indices = @transform_9, window_bounds = array<i64: 1, 32>}, {pipeline_mode = #tpu.pipeline_mode<synchronous>, transform_indices = @transform_10, window_bounds = array<i64: 9, 32>}, {pipeline_mode = #tpu.pipeline_mode<synchronous>, transform_indices = @transform_11, window_bounds = array<i64: 1, 32>}, {pipeline_mode = #tpu.pipeline_mode<synchronous>, transform_indices = @transform_12, window_bounds = array<i64: 32, 8>}, {pipeline_mode = #tpu.pipeline_mode<synchronous>, transform_indices = @transform_13, window_bounds = array<i64: 1, 8>}, {transform_indices = @transform_14, window_bounds = array<i64: 1, 8, 256>}]} {
    %c0 = arith.constant 0 : index
    %c0_0 = arith.constant 0 : index
    %c0_1 = arith.constant 0 : index
    %0 = vector.load %arg1[%c0, %c0_0, %c0_1] : memref<1x256x8xf32, #tpu.memory_space<vmem>>, vector<1x256x8xf32>
    %1 = vector.shape_cast %0 : vector<1x256x8xf32> to vector<256x8xf32>
    %c0_2 = arith.constant 0 : index
    %c0_3 = arith.constant 0 : index
    %2 = vector.load %arg3[%c0_2, %c0_3] : memref<8x32xf32, #tpu.memory_space<vmem>>, vector<8x32xf32>
    %cst = arith.constant dense<0.000000e+00> : vector<256x32xf32>
    %3 = tpu.matmul %1, %2, %cst {dimension_numbers = #tpu.dot_dimension_numbers<[1], [0], [0], [1], [0, 0, 1, 1], [], []>} : vector<256x8xf32>, vector<8x32xf32>, vector<256x32xf32> -> vector<256x32xf32>
    %c0_4 = arith.constant 0 : index
    %c0_5 = arith.constant 0 : index
    %4 = vector.load %arg4[%c0_4, %c0_5] : memref<1x32xf32, #tpu.memory_space<vmem>>, vector<1x32xf32>
    %5 = vector.broadcast %4 : vector<1x32xf32> to vector<256x32xf32>
    %6 = arith.addf %3, %5 : vector<256x32xf32>
    %cst_6 = arith.constant 0.000000e+00 : f32
    %cst_7 = arith.constant 6.000000e+00 : f32
    %7 = vector.broadcast %cst_6 : f32 to vector<256x32xf32>
    %8 = arith.maximumf %7, %6 : vector<256x32xf32>
    %9 = vector.broadcast %cst_7 : f32 to vector<256x32xf32>
    %10 = arith.minimumf %9, %8 : vector<256x32xf32>
    %c0_8 = arith.constant 0 : index
    %c0_9 = arith.constant 0 : index
    %11 = vector.load %arg5[%c0_8, %c0_9] : memref<32x2xf32, #tpu.memory_space<vmem>>, vector<32x2xf32>
    %cst_10 = arith.constant dense<0.000000e+00> : vector<256x2xf32>
    %12 = tpu.matmul %10, %11, %cst_10 {dimension_numbers = #tpu.dot_dimension_numbers<[1], [0], [0], [1], [0, 0, 1, 1], [], []>} : vector<256x32xf32>, vector<32x2xf32>, vector<256x2xf32> -> vector<256x2xf32>
    %c0_11 = arith.constant 0 : index
    %c0_12 = arith.constant 0 : index
    %13 = vector.load %arg6[%c0_11, %c0_12] : memref<1x2xf32, #tpu.memory_space<vmem>>, vector<1x2xf32>
    %14 = vector.broadcast %13 : vector<1x2xf32> to vector<256x2xf32>
    %15 = arith.addf %12, %14 : vector<256x2xf32>
    %c0_13 = arith.constant 0 : index
    %c0_14 = arith.constant 0 : index
    %16 = vector.load %arg7[%c0_13, %c0_14] : memref<32x2xf32, #tpu.memory_space<vmem>>, vector<32x2xf32>
    %cst_15 = arith.constant dense<0.000000e+00> : vector<256x2xf32>
    %17 = tpu.matmul %10, %16, %cst_15 {dimension_numbers = #tpu.dot_dimension_numbers<[1], [0], [0], [1], [0, 0, 1, 1], [], []>} : vector<256x32xf32>, vector<32x2xf32>, vector<256x2xf32> -> vector<256x2xf32>
    %c0_16 = arith.constant 0 : index
    %c0_17 = arith.constant 0 : index
    %18 = vector.load %arg8[%c0_16, %c0_17] : memref<1x2xf32, #tpu.memory_space<vmem>>, vector<1x2xf32>
    %19 = vector.broadcast %18 : vector<1x2xf32> to vector<256x2xf32>
    %20 = arith.addf %17, %19 : vector<256x2xf32>
    %c0_18 = arith.constant 0 : index
    %c0_19 = arith.constant 0 : index
    %21 = vector.load %arg9[%c0_18, %c0_19] : memref<32x32xf32, #tpu.memory_space<vmem>>, vector<32x32xf32>
    %cst_20 = arith.constant dense<0.000000e+00> : vector<256x32xf32>
    %22 = tpu.matmul %10, %21, %cst_20 {dimension_numbers = #tpu.dot_dimension_numbers<[1], [0], [0], [1], [0, 0, 1, 1], [], []>} : vector<256x32xf32>, vector<32x32xf32>, vector<256x32xf32> -> vector<256x32xf32>
    %c0_21 = arith.constant 0 : index
    %c0_22 = arith.constant 0 : index
    %23 = vector.load %arg10[%c0_21, %c0_22] : memref<1x32xf32, #tpu.memory_space<vmem>>, vector<1x32xf32>
    %24 = vector.broadcast %23 : vector<1x32xf32> to vector<256x32xf32>
    %25 = arith.addf %22, %24 : vector<256x32xf32>
    %26 = tpu.transpose %20, [1, 0] : vector<256x2xf32> -> vector<2x256xf32>
    %cst_23 = arith.constant dense<0.000000e+00> : vector<256x256xf32>
    %27 = tpu.matmul %15, %26, %cst_23 {dimension_numbers = #tpu.dot_dimension_numbers<[1], [0], [0], [1], [0, 0, 1, 1], [], []>} : vector<256x2xf32>, vector<2x256xf32>, vector<256x256xf32> -> vector<256x256xf32>
    %cst_24 = arith.constant dense<0xFF800000> : vector<256xf32>
    %28 = vector.multi_reduction <maximumf>, %27, %cst_24 [1] : vector<256x256xf32> to vector<256xf32>
    %29 = vector.shape_cast %28 : vector<256xf32> to vector<256x1xf32>
    %30 = vector.broadcast %29 : vector<256x1xf32> to vector<256x256xf32>
    %31 = arith.subf %27, %30 : vector<256x256xf32>
    %32 = math.exp %31 : vector<256x256xf32>
    %cst_25 = arith.constant dense<0.000000e+00> : vector<256xf32>
    %33 = vector.multi_reduction <add>, %32, %cst_25 [1] : vector<256x256xf32> to vector<256xf32>
    %34 = vector.shape_cast %33 : vector<256xf32> to vector<256x1xf32>
    %35 = tpu.reciprocal %34 {approx = true} : vector<256x1xf32> -> vector<256x1xf32>
    %36 = vector.broadcast %35 : vector<256x1xf32> to vector<256x256xf32>
    %37 = arith.mulf %32, %36 : vector<256x256xf32>
    %cst_26 = arith.constant dense<0.000000e+00> : vector<256x32xf32>
    %38 = tpu.matmul %37, %25, %cst_26 {dimension_numbers = #tpu.dot_dimension_numbers<[1], [0], [0], [1], [0, 0, 1, 1], [], []>} : vector<256x256xf32>, vector<256x32xf32>, vector<256x32xf32> -> vector<256x32xf32>
    %cst_27 = arith.constant 0.000000e+00 : f32
    %39 = vector.broadcast %cst_27 : f32 to vector<18x18x32xf32>
    %c0_28 = arith.constant 0 : index
    %c0_29 = arith.constant 0 : index
    %c0_30 = arith.constant 0 : index
    %40 = vector.load %arg16[%c0_28, %c0_29, %c0_30] : memref<18x18x32xf32, #tpu.memory_space<vmem>>, vector<18x18x32xf32>
    tpu.vector_store %arg16[%c0_28, %c0_29, %c0_30], %39 {strides = array<i32>} : memref<18x18x32xf32, #tpu.memory_space<vmem>>, vector<18x18x32xf32>,
    %41 = vector.shape_cast %38 : vector<256x32xf32> to vector<16x16x32xf32>
    %c1 = arith.constant 1 : index
    %c1_31 = arith.constant 1 : index
    %c0_32 = arith.constant 0 : index
    %42 = vector.load %arg16[%c1, %c1_31, %c0_32] : memref<18x18x32xf32, #tpu.memory_space<vmem>>, vector<16x16x32xf32>
    tpu.vector_store %arg16[%c1, %c1_31, %c0_32], %41 {strides = array<i32>} : memref<18x18x32xf32, #tpu.memory_space<vmem>>, vector<16x16x32xf32>,
    %cst_33 = arith.constant 0.000000e+00 : f32
    %43 = vector.broadcast %cst_33 : f32 to vector<16x16x32xf32>
    %c0_34 = arith.constant 0 : index
    %c0_35 = arith.constant 0 : index
    %c0_36 = arith.constant 0 : index
    %44 = vector.load %arg16[%c0_34, %c0_35, %c0_36] : memref<18x18x32xf32, #tpu.memory_space<vmem>>, vector<16x16x32xf32>
    %c0_37 = arith.constant 0 : index
    %c0_38 = arith.constant 0 : index
    %45 = vector.load %arg11[%c0_37, %c0_38] : memref<9x32xf32, #tpu.memory_space<vmem>>, vector<1x32xf32>
    %46 = vector.shape_cast %45 : vector<1x32xf32> to vector<32xf32>
    %47 = vector.shape_cast %46 : vector<32xf32> to vector<1x1x32xf32>
    %48 = vector.broadcast %47 : vector<1x1x32xf32> to vector<16x16x32xf32>
    %49 = arith.mulf %44, %48 : vector<16x16x32xf32>
    %50 = arith.addf %43, %49 : vector<16x16x32xf32>
    %c0_39 = arith.constant 0 : index
    %c1_40 = arith.constant 1 : index
    %c0_41 = arith.constant 0 : index
    %51 = vector.load %arg16[%c0_39, %c1_40, %c0_41] : memref<18x18x32xf32, #tpu.memory_space<vmem>>, vector<16x16x32xf32>
    %c1_42 = arith.constant 1 : index
    %c0_43 = arith.constant 0 : index
    %52 = vector.load %arg11[%c1_42, %c0_43] : memref<9x32xf32, #tpu.memory_space<vmem>>, vector<1x32xf32>
    %53 = vector.shape_cast %52 : vector<1x32xf32> to vector<32xf32>
    %54 = vector.shape_cast %53 : vector<32xf32> to vector<1x1x32xf32>
    %55 = vector.broadcast %54 : vector<1x1x32xf32> to vector<16x16x32xf32>
    %56 = arith.mulf %51, %55 : vector<16x16x32xf32>
    %57 = arith.addf %50, %56 : vector<16x16x32xf32>
    %c0_44 = arith.constant 0 : index
    %c2 = arith.constant 2 : index
    %c0_45 = arith.constant 0 : index
    %58 = vector.load %arg16[%c0_44, %c2, %c0_45] : memref<18x18x32xf32, #tpu.memory_space<vmem>>, vector<16x16x32xf32>
    %c2_46 = arith.constant 2 : index
    %c0_47 = arith.constant 0 : index
    %59 = vector.load %arg11[%c2_46, %c0_47] : memref<9x32xf32, #tpu.memory_space<vmem>>, vector<1x32xf32>
    %60 = vector.shape_cast %59 : vector<1x32xf32> to vector<32xf32>
    %61 = vector.shape_cast %60 : vector<32xf32> to vector<1x1x32xf32>
    %62 = vector.broadcast %61 : vector<1x1x32xf32> to vector<16x16x32xf32>
    %63 = arith.mulf %58, %62 : vector<16x16x32xf32>
    %64 = arith.addf %57, %63 : vector<16x16x32xf32>
    %c1_48 = arith.constant 1 : index
    %c0_49 = arith.constant 0 : index
    %c0_50 = arith.constant 0 : index
    %65 = vector.load %arg16[%c1_48, %c0_49, %c0_50] : memref<18x18x32xf32, #tpu.memory_space<vmem>>, vector<16x16x32xf32>
    %c3 = arith.constant 3 : index
    %c0_51 = arith.constant 0 : index
    %66 = vector.load %arg11[%c3, %c0_51] : memref<9x32xf32, #tpu.memory_space<vmem>>, vector<1x32xf32>
    %67 = vector.shape_cast %66 : vector<1x32xf32> to vector<32xf32>
    %68 = vector.shape_cast %67 : vector<32xf32> to vector<1x1x32xf32>
    %69 = vector.broadcast %68 : vector<1x1x32xf32> to vector<16x16x32xf32>
    %70 = arith.mulf %65, %69 : vector<16x16x32xf32>
    %71 = arith.addf %64, %70 : vector<16x16x32xf32>
    %c1_52 = arith.constant 1 : index
    %c1_53 = arith.constant 1 : index
    %c0_54 = arith.constant 0 : index
    %72 = vector.load %arg16[%c1_52, %c1_53, %c0_54] : memref<18x18x32xf32, #tpu.memory_space<vmem>>, vector<16x16x32xf32>
    %c4 = arith.constant 4 : index
    %c0_55 = arith.constant 0 : index
    %73 = vector.load %arg11[%c4, %c0_55] : memref<9x32xf32, #tpu.memory_space<vmem>>, vector<1x32xf32>
    %74 = vector.shape_cast %73 : vector<1x32xf32> to vector<32xf32>
    %75 = vector.shape_cast %74 : vector<32xf32> to vector<1x1x32xf32>
    %76 = vector.broadcast %75 : vector<1x1x32xf32> to vector<16x16x32xf32>
    %77 = arith.mulf %72, %76 : vector<16x16x32xf32>
    %78 = arith.addf %71, %77 : vector<16x16x32xf32>
    %c1_56 = arith.constant 1 : index
    %c2_57 = arith.constant 2 : index
    %c0_58 = arith.constant 0 : index
    %79 = vector.load %arg16[%c1_56, %c2_57, %c0_58] : memref<18x18x32xf32, #tpu.memory_space<vmem>>, vector<16x16x32xf32>
    %c5 = arith.constant 5 : index
    %c0_59 = arith.constant 0 : index
    %80 = vector.load %arg11[%c5, %c0_59] : memref<9x32xf32, #tpu.memory_space<vmem>>, vector<1x32xf32>
    %81 = vector.shape_cast %80 : vector<1x32xf32> to vector<32xf32>
    %82 = vector.shape_cast %81 : vector<32xf32> to vector<1x1x32xf32>
    %83 = vector.broadcast %82 : vector<1x1x32xf32> to vector<16x16x32xf32>
    %84 = arith.mulf %79, %83 : vector<16x16x32xf32>
    %85 = arith.addf %78, %84 : vector<16x16x32xf32>
    %c2_60 = arith.constant 2 : index
    %c0_61 = arith.constant 0 : index
    %c0_62 = arith.constant 0 : index
    %86 = vector.load %arg16[%c2_60, %c0_61, %c0_62] : memref<18x18x32xf32, #tpu.memory_space<vmem>>, vector<16x16x32xf32>
    %c6 = arith.constant 6 : index
    %c0_63 = arith.constant 0 : index
    %87 = vector.load %arg11[%c6, %c0_63] : memref<9x32xf32, #tpu.memory_space<vmem>>, vector<1x32xf32>
    %88 = vector.shape_cast %87 : vector<1x32xf32> to vector<32xf32>
    %89 = vector.shape_cast %88 : vector<32xf32> to vector<1x1x32xf32>
    %90 = vector.broadcast %89 : vector<1x1x32xf32> to vector<16x16x32xf32>
    %91 = arith.mulf %86, %90 : vector<16x16x32xf32>
    %92 = arith.addf %85, %91 : vector<16x16x32xf32>
    %c2_64 = arith.constant 2 : index
    %c1_65 = arith.constant 1 : index
    %c0_66 = arith.constant 0 : index
    %93 = vector.load %arg16[%c2_64, %c1_65, %c0_66] : memref<18x18x32xf32, #tpu.memory_space<vmem>>, vector<16x16x32xf32>
    %c7 = arith.constant 7 : index
    %c0_67 = arith.constant 0 : index
    %94 = vector.load %arg11[%c7, %c0_67] : memref<9x32xf32, #tpu.memory_space<vmem>>, vector<1x32xf32>
    %95 = vector.shape_cast %94 : vector<1x32xf32> to vector<32xf32>
    %96 = vector.shape_cast %95 : vector<32xf32> to vector<1x1x32xf32>
    %97 = vector.broadcast %96 : vector<1x1x32xf32> to vector<16x16x32xf32>
    %98 = arith.mulf %93, %97 : vector<16x16x32xf32>
    %99 = arith.addf %92, %98 : vector<16x16x32xf32>
    %c2_68 = arith.constant 2 : index
    %c2_69 = arith.constant 2 : index
    %c0_70 = arith.constant 0 : index
    %100 = vector.load %arg16[%c2_68, %c2_69, %c0_70] : memref<18x18x32xf32, #tpu.memory_space<vmem>>, vector<16x16x32xf32>
    %c8 = arith.constant 8 : index
    %c0_71 = arith.constant 0 : index
    %101 = vector.load %arg11[%c8, %c0_71] : memref<9x32xf32, #tpu.memory_space<vmem>>, vector<1x32xf32>
    %102 = vector.shape_cast %101 : vector<1x32xf32> to vector<32xf32>
    %103 = vector.shape_cast %102 : vector<32xf32> to vector<1x1x32xf32>
    %104 = vector.broadcast %103 : vector<1x1x32xf32> to vector<16x16x32xf32>
    %105 = arith.mulf %100, %104 : vector<16x16x32xf32>
    %106 = arith.addf %99, %105 : vector<16x16x32xf32>
    %107 = vector.shape_cast %106 : vector<16x16x32xf32> to vector<256x32xf32>
    %c0_72 = arith.constant 0 : index
    %c0_73 = arith.constant 0 : index
    %108 = vector.load %arg12[%c0_72, %c0_73] : memref<1x32xf32, #tpu.memory_space<vmem>>, vector<1x32xf32>
    %109 = vector.broadcast %108 : vector<1x32xf32> to vector<256x32xf32>
    %110 = arith.addf %107, %109 : vector<256x32xf32>
    %cst_74 = arith.constant 0.000000e+00 : f32
    %cst_75 = arith.constant 6.000000e+00 : f32
    %111 = vector.broadcast %cst_74 : f32 to vector<256x32xf32>
    %112 = arith.maximumf %111, %110 : vector<256x32xf32>
    %113 = vector.broadcast %cst_75 : f32 to vector<256x32xf32>
    %114 = arith.minimumf %113, %112 : vector<256x32xf32>
    %c0_76 = arith.constant 0 : index
    %c0_77 = arith.constant 0 : index
    %115 = vector.load %arg13[%c0_76, %c0_77] : memref<32x8xf32, #tpu.memory_space<vmem>>, vector<32x8xf32>
    %cst_78 = arith.constant dense<0.000000e+00> : vector<256x8xf32>
    %116 = tpu.matmul %114, %115, %cst_78 {dimension_numbers = #tpu.dot_dimension_numbers<[1], [0], [0], [1], [0, 0, 1, 1], [], []>} : vector<256x32xf32>, vector<32x8xf32>, vector<256x8xf32> -> vector<256x8xf32>
    %c0_79 = arith.constant 0 : index
    %c0_80 = arith.constant 0 : index
    %117 = vector.load %arg14[%c0_79, %c0_80] : memref<1x8xf32, #tpu.memory_space<vmem>>, vector<1x8xf32>
    %118 = vector.broadcast %117 : vector<1x8xf32> to vector<256x8xf32>
    %119 = arith.addf %116, %118 : vector<256x8xf32>
    %c0_81 = arith.constant 0 : index
    %c0_82 = arith.constant 0 : index
    %c0_83 = arith.constant 0 : index
    %120 = vector.load %arg2[%c0_81, %c0_82, %c0_83] : memref<1x8x256xf32, #tpu.memory_space<vmem>>, vector<1x8x256xf32>
    %121 = vector.shape_cast %120 : vector<1x8x256xf32> to vector<8x256xf32>
    %122 = tpu.transpose %119, [1, 0] : vector<256x8xf32> -> vector<8x256xf32>
    %123 = arith.addf %121, %122 : vector<8x256xf32>
    %c0_84 = arith.constant 0 : index
    %c0_85 = arith.constant 0 : index
    %c0_86 = arith.constant 0 : index
    %124 = vector.load %arg15[%c0_84, %c0_85, %c0_86] : memref<1x8x256xf32, #tpu.memory_space<vmem>>, vector<1x8x256xf32>
    %125 = vector.shape_cast %124 : vector<1x8x256xf32> to vector<8x256xf32>
    %126 = vector.shape_cast %123 : vector<8x256xf32> to vector<1x8x256xf32>
    tpu.vector_store %arg15[%c0_84, %c0_85, %c0_86], %126 {strides = array<i32>} : memref<1x8x256xf32, #tpu.memory_space<vmem>>, vector<1x8x256xf32>,
    return
  }
  func.func @transform_0(%arg0: i32) -> (i32, i32, i32) {
    %c0_i32 = arith.constant 0 : i32
    %c0_i32_0 = arith.constant 0 : i32
    %c0_i32_1 = arith.constant 0 : i32
    return %arg0, %c0_i32, %c0_i32_0 : i32, i32, i32
  }
  func.func @transform_1(%arg0: i32) -> (i32, i32, i32) {
    %c0_i32 = arith.constant 0 : i32
    %c0_i32_0 = arith.constant 0 : i32
    %c0_i32_1 = arith.constant 0 : i32
    return %arg0, %c0_i32, %c0_i32_0 : i32, i32, i32
  }
  func.func @transform_2(%arg0: i32) -> (i32, i32) {
    %c0_i32 = arith.constant 0 : i32
    %c0_i32_0 = arith.constant 0 : i32
    %c0_i32_1 = arith.constant 0 : i32
    return %c0_i32, %c0_i32_0 : i32, i32
  }
  func.func @transform_3(%arg0: i32) -> (i32, i32) {
    %c0_i32 = arith.constant 0 : i32
    %c0_i32_0 = arith.constant 0 : i32
    %c0_i32_1 = arith.constant 0 : i32
    return %c0_i32, %c0_i32_0 : i32, i32
  }
  func.func @transform_4(%arg0: i32) -> (i32, i32) {
    %c0_i32 = arith.constant 0 : i32
    %c0_i32_0 = arith.constant 0 : i32
    %c0_i32_1 = arith.constant 0 : i32
    return %c0_i32, %c0_i32_0 : i32, i32
  }
  func.func @transform_5(%arg0: i32) -> (i32, i32) {
    %c0_i32 = arith.constant 0 : i32
    %c0_i32_0 = arith.constant 0 : i32
    %c0_i32_1 = arith.constant 0 : i32
    return %c0_i32, %c0_i32_0 : i32, i32
  }
  func.func @transform_6(%arg0: i32) -> (i32, i32) {
    %c0_i32 = arith.constant 0 : i32
    %c0_i32_0 = arith.constant 0 : i32
    %c0_i32_1 = arith.constant 0 : i32
    return %c0_i32, %c0_i32_0 : i32, i32
  }
  func.func @transform_7(%arg0: i32) -> (i32, i32) {
    %c0_i32 = arith.constant 0 : i32
    %c0_i32_0 = arith.constant 0 : i32
    %c0_i32_1 = arith.constant 0 : i32
    return %c0_i32, %c0_i32_0 : i32, i32
  }
  func.func @transform_8(%arg0: i32) -> (i32, i32) {
    %c0_i32 = arith.constant 0 : i32
    %c0_i32_0 = arith.constant 0 : i32
    %c0_i32_1 = arith.constant 0 : i32
    return %c0_i32, %c0_i32_0 : i32, i32
  }
  func.func @transform_9(%arg0: i32) -> (i32, i32) {
    %c0_i32 = arith.constant 0 : i32
    %c0_i32_0 = arith.constant 0 : i32
    %c0_i32_1 = arith.constant 0 : i32
    return %c0_i32, %c0_i32_0 : i32, i32
  }
  func.func @transform_10(%arg0: i32) -> (i32, i32) {
    %c0_i32 = arith.constant 0 : i32
    %c0_i32_0 = arith.constant 0 : i32
    %c0_i32_1 = arith.constant 0 : i32
    return %c0_i32, %c0_i32_0 : i32, i32
  }
  func.func @transform_11(%arg0: i32) -> (i32, i32) {
    %c0_i32 = arith.constant 0 : i32
    %c0_i32_0 = arith.constant 0 : i32
    %c0_i32_1 = arith.constant 0 : i32
    return %c0_i32, %c0_i32_0 : i32, i32
  }
  func.func @transform_12(%arg0: i32) -> (i32, i32) {
    %c0_i32 = arith.constant 0 : i32
    %c0_i32_0 = arith.constant 0 : i32
    %c0_i32_1 = arith.constant 0 : i32
    return %c0_i32, %c0_i32_0 : i32, i32
  }
  func.func @transform_13(%arg0: i32) -> (i32, i32) {
    %c0_i32 = arith.constant 0 : i32
    %c0_i32_0 = arith.constant 0 : i32
    %c0_i32_1 = arith.constant 0 : i32
    return %c0_i32, %c0_i32_0 : i32, i32
  }
  func.func @transform_14(%arg0: i32) -> (i32, i32, i32) {
    %c0_i32 = arith.constant 0 : i32
    %c0_i32_0 = arith.constant 0 : i32
    %c0_i32_1 = arith.constant 0 : i32
    return %arg0, %c0_i32, %c0_i32_0 : i32, i32, i32
  }
}

</mosaic_0001>

<bundles_post_ra>
// kernel: tpu_custom_call.1
= control target key start
LH: loop header
LB: loop body
LE: loop exit
PB: predicated region body
PF: predicated region fallthrough
CT: control target
= control target key end

     0   :  { %s8121_s0 = inlined_call_operand.vmem [shape: f32[2,256,8], index: 0, kind: input, shape index: {}]   ;;  %s8122_s1 = inlined_call_operand.vmem [shape: f32[2,8,256], index: 1, kind: input, shape index: {}]   ;;  %s8123_s2 = inlined_call_operand.vmem [shape: f32[8,32], index: 2, kind: input, shape index: {}]   ;;  %s8124_s3 = inlined_call_operand.vmem [shape: f32[1,32], index: 3, kind: input, shape index: {}]   ;;  %s8125_s4 = inlined_call_operand.vmem [shape: f32[32,2], index: 4, kind: input, shape index: {}]   ;;  %s8126_s5 = inlined_call_operand.vmem [shape: f32[1,2], index: 5, kind: input, shape index: {}]   ;;  %s8127_s6 = inlined_call_operand.vmem [shape: f32[32,2], index: 6, kind: input, shape index: {}]   ;;  %s8128_s7 = inlined_call_operand.vmem [shape: f32[1,2], index: 7, kind: input, shape index: {}]   ;;  %s8129_s8 = inlined_call_operand.vmem [shape: f32[32,32], index: 8, kind: input, shape index: {}]   ;;  %s8130_s9 = inlined_call_operand.vmem [shape: f32[1,32], index: 9, kind: input, shape index: {}]   ;;  %s8131_s10 = inlined_call_operand.vmem [shape: f32[9,32], index: 10, kind: input, shape index: {}]   ;;  %s8132_s11 = inlined_call_operand.vmem [shape: f32[1,32], index: 11, kind: input, shape index: {}]   ;;  %s8133_s12 = inlined_call_operand.vmem [shape: f32[32,8], index: 12, kind: input, shape index: {}]   ;;  %s8134_s13 = inlined_call_operand.vmem [shape: f32[1,8], index: 13, kind: input, shape index: {}]   ;;  %s8135_s14 = inlined_call_operand.hbm [shape: f32[2,8,256], index: 14, kind: output, shape index: {}]  }
   0x1   :  { %8173 = sst [smem:[#allocation19_spill]] %s8121_s0 }
   0x2   :  { %8174 = sst [smem:[#allocation20_spill]] %s8122_s1 }
   0x3   :  { %8175 = sst [smem:[#allocation21_spill]] %s8123_s2 }
   0x4   :  { %8176 = sst [smem:[#allocation22_spill]] %s8124_s3 }
   0x5   :  { %8177 = sst [smem:[#allocation23_spill]] %s8125_s4 }
   0x6   :  { %19 = vsyncpa [#allocation4], 0 }
   0x7   :  { %21 = vsyncpa [#allocation4 + $0x1], 0  ;;  %s5647_s29 = smov 0   ;;  %s5649_s30 = smov 0  }
   0x8   :  { %s5651_s15 = smov 0   ;;  %s5653_s16 = smov 0  }
   0x9 LB: > { %s5668_s17 = sadd.s32 4294967295, %s5568_s16   ;;  %s4461_s18 = sadd.s32 4294967294, %s5568_s16   ;;  %s5568_s16 = sphi %s5653_s16, %s8258_s16   ;;  %s5564_s15 = sphi %s5651_s15, %s8257_s15   ;;  %s5560_s30 = sphi %s5649_s30, %s8256_s30   ;;  %s5556_s29 = sphi %s5647_s29, %s8255_s29  }
   0xa   : > { %s5672_s19 = sadd.s32 1, %s5568_s16   ;;  %s338_s20 = sadd.s32 1, %s5564_s15 }
   0xb   : > { %s335_s21 = ssub.s32 %s5568_s16, %s5672_s19  ;;  %p348_p0 = scmp.ne.s32.totalorder %s5564_s15, %s5560_s30 }
   0xc   : > { %p336_p1 = scmp.eq.s32.totalorder %s335_s21, 0  ;;  %p349_p2 = scmp.eq.s32.totalorder %s5668_s17, 1 }
   0xd   : > { %p354_p3 = scmp.ne.s32.totalorder %s5560_s30, %s5556_s29  ;;  %p355_p4 = scmp.eq.s32.totalorder %s4461_s18, 1 }
   0xe   : > { %s5683_s22 = scalar_select %p336_p1, %s5564_s15, %s338_s20  }
   0xf   : > { %p5685_p5 = por %p349_p2, %p348_p0  ;;  %p5689_p6 = por %p355_p4, %p354_p3 }
  0x10   : > { %p4464_p7 = scmp.ge.s32.totalorder %s5568_s16, 1  ;;  %p425_p8 = scmp.lt.s32.totalorder %s5568_s16, 3 }
  0x12   : > { %p426_p9 = pnand %p4464_p7, %p425_p8 }
  0x14   : > { %429 = sbr.rel (%p426_p9) target bundleno = 1725 (0x6bd), region = 76 }
  0x19   : > { %s8180_s2 = sld [smem:[#allocation21_spill]]  ;;  %p476_p10 = scmp.lt.s32.totalorder %s5668_s17, 1  ;;  %v1248_v1 = vld [vmem:[%s8127_s6 + $0x18] sm:$0xff]  ;;  %vm526_vm0 = vcmask 64512   ;;  %v1247_v5 = vld [vmem:[%s8127_s6 + $0x10] sm:$0xff]  ;;  %v1246_v10 = vld [vmem:[%s8127_s6 + $0x8] sm:$0xff] }
  0x1a   : > { %s8181_s0 = sld [smem:[#allocation19_spill]]  ;;  %v1245_v39 = vld [vmem:[%s8127_s6] sm:$0xff]  ;;  %v1484_v41 = vld [vmem:[%s8129_s8 + $0x18] sm:$0xff]  ;;  %vm923_vm1 = vcmask 261120   ;;  %v1483_v62 = vld [vmem:[%s8129_s8 + $0x10] sm:$0xff]  ;;  %vm1717_vm2 = vcmask 15360  }
  0x1b   : > { %s5703_s18 = scalar_select %p476_p10, %s5668_s17, 1  ;;  %vm2874_vm3 = vcmask 254976  }
  0x1c   : > { %s8182_s4 = sld [smem:[#allocation23_spill]]  ;;  %s473_s21 = sand.u32 1, %s5560_s30  }
  0x1d   : > { %s4714_s20 = sshll.u32 %s5703_s18, 8  ;;  %s8183_s3 = sld [smem:[#allocation22_spill]] }
  0x1e   : > { %s8254_s1 = sld [smem:[#allocation20_spill]]  ;;  %s4465_s27 = sshll.u32 %s473_s21, 4 }
  0x1f   : > { %v518_v0 = vld [vmem:[%s8180_s2] sm:$0xff]  ;;  %s475_s28 = scalar_lea.vmem [#allocation3], %s4465_s27  ;;  %s4376_s27 = scalar_lea.sflag [#allocation4], %s473_s21 }
  0x20   : > { %4990 = vmatprep.subr.mxu0 %v518_v0  ;;  %5264 = vmatprep.subr.mxu1 %v518_v0  ;;  %s5709_s26 = scalar_lea.vmem %s8181_s0, %s4714_s20  ;;  %s4715_s0 = sshll.u32 %s5703_s18, 4 }
  0x21   : > { %4991 = vmatpush3.msra.mxu0 %v518_v0  ;;  %5265 = vmatpush3.msra.mxu1 %v518_v0  ;;  %v486_v2 = vld [vmem:[%s5709_s26] sm:$0xff]  ;;  %v487_v3 = vld [vmem:[%s5709_s26 + $0x8] sm:$0xff]  ;;  %v488_v4 = vld [vmem:[%s5709_s26 + $0x10] sm:$0xff]  ;;  %s4716_s18 = sshll.u32 %s5668_s17, 8  ;;  %s4390_s20 = sshll.u32 %s475_s28, 4  ;;  %s4391_s20 = int_to_ptr.vmem [resolvable:$true] %s4390_s20 }
  0x22   : > { %5096 = vmatprep.subr.mxu0 %v1248_v1  ;;  %4992 = vmatprep.mubr.msk.f32.mxu0 %vm526_vm0, %v486_v2  ;;  %v489_v6 = vld [vmem:[%s5709_s26 + $0x18] sm:$0xff]  ;;  %v490_v7 = vld [vmem:[%s5709_s26 + $0x20] sm:$0xff]  ;;  %v503_v9 = vld [vmem:[%s5709_s26 + $0x88] sm:$0xff] }
  0x23   : > { %4993 = vmatmul.mubr.msk.f32.vlgmr.msra.gmra.mxu0 %vm526_vm0, %v487_v3  ;;  %v502_v8 = vld [vmem:[%s5709_s26 + $0x80] sm:$0xff]  ;;  %v504_v11 = vld [vmem:[%s5709_s26 + $0x90] sm:$0xff]  ;;  %v491_v12 = vld [vmem:[%s5709_s26 + $0x28] sm:$0xff] }
  0x24   : > { %4995 = vmatprep.mubr.msk.f32.mxu0 %vm526_vm0, %v488_v4  ;;  %5097 = vmatpush3.msra.mxu0 %v1248_v1  ;;  %v492_v13 = vld [vmem:[%s5709_s26 + $0x30] sm:$0xff]  ;;  %v505_v14 = vld [vmem:[%s5709_s26 + $0x98] sm:$0xff]  ;;  %v506_v15 = vld [vmem:[%s5709_s26 + $0xa0] sm:$0xff]  ;;  %s485_s25 = scalar_lea.vmem %s8254_s1, %s4715_s0  ;;  %s5508_s1 = scalar_lea.vmem %s4391_s20, 256 }
  0x25   : > { %5098 = vmatprep.subr.mxu0 %v1247_v5  ;;  %5016 = vmatprep.mubr.msk.f32.mxu1 %vm526_vm0, %v502_v8  ;;  %v493_v16 = vld [vmem:[%s5709_s26 + $0x38] sm:$0xff]  ;;  %v494_v17 = vld [vmem:[%s5709_s26 + $0x40] sm:$0xff]  ;;  %v507_v18 = vld [vmem:[%s5709_s26 + $0xa8] sm:$0xff]  ;;  %p5509_p11 = scmp.ne.s32.totalorder %s4391_s20, %s5508_s1 }
  0x26   : > { %5099 = vmatpush3.msra.mxu0 %v1247_v5  ;;  %5017 = vmatmul.mubr.msk.f32.vlgmr.msra.gmra.mxu1 %vm526_vm0, %v503_v9  ;;  %v508_v19 = vld [vmem:[%s5709_s26 + $0xb0] sm:$0xff]  ;;  %v495_v20 = vld [vmem:[%s5709_s26 + $0x48] sm:$0xff]  ;;  %v509_v22 = vld [vmem:[%s5709_s26 + $0xb8] sm:$0xff] }
  0x27   : > { %4996 = vmatmul.mubr.msk.f32.gmra.mxu0 %vm526_vm0, %v489_v6  ;;  %5019 = vmatprep.mubr.msk.f32.mxu1 %vm526_vm0, %v504_v11  ;;  %v496_v21 = vld [vmem:[%s5709_s26 + $0x50] sm:$0xff]  ;;  %v510_v23 = vld [vmem:[%s5709_s26 + $0xc0] sm:$0xff]  ;;  %v497_v24 = vld [vmem:[%s5709_s26 + $0x58] sm:$0xff]  ;;  %p5510_p12 = pnand %p5509_p11, %p5685_p5 }
  0x28   : > { %4998 = vmatprep.mubr.msk.f32.mxu0 %vm526_vm0, %v490_v7  ;;  %5100 = vmatprep.subr.mxu0 %v1246_v10  ;;  %v498_v25 = vld [vmem:[%s5709_s26 + $0x60] sm:$0xff]  ;;  %v511_v26 = vld [vmem:[%s5709_s26 + $0xc8] sm:$0xff]  ;;  %v512_v27 = vld [vmem:[%s5709_s26 + $0xd0] sm:$0xff] }
  0x29   : > { %5101 = vmatpush3.msra.mxu0 %v1246_v10  ;;  %v499_v28 = vld [vmem:[%s5709_s26 + $0x68] sm:$0xff]  ;;  %v500_v29 = vld [vmem:[%s5709_s26 + $0x70] sm:$0xff]  ;;  %v513_v30 = vld [vmem:[%s5709_s26 + $0xd8] sm:$0xff]  ;;  %p5511_p13 = pneg %p5510_p12 }
  0x2a   : > { %5020 = vmatmul.mubr.msk.f32.gmra.mxu1 %vm526_vm0, %v505_v14  ;;  %v514_v31 = vld [vmem:[%s5709_s26 + $0xe0] sm:$0xff]  ;;  %v501_v32 = vld [vmem:[%s5709_s26 + $0x78] sm:$0xff]  ;;  %v515_v33 = vld [vmem:[%s5709_s26 + $0xe8] sm:$0xff]  ;;  %5102 = vmatprep.subr.mxu0 %v1245_v39 }
  0x2b   : > { %4999 = vmatmul.mubr.msk.f32.gmra.mxu0 %vm526_vm0, %v491_v12  ;;  %5022 = vmatprep.mubr.msk.f32.mxu1 %vm526_vm0, %v506_v15  ;;  %v516_v34 = vld [vmem:[%s5709_s26 + $0xf0] sm:$0xff]  ;;  %v517_v35 = vld [vmem:[%s5709_s26 + $0xf8] sm:$0xff]  ;;  %v913_v38 = vld [vmem:[%s8182_s4 + $0x8] sm:$0xff]  ;;  %s4388_s26 = scalar_lea.hbm %s8135_s14, %s4716_s18 }
  0x2c   : > { %5001 = vmatprep.mubr.msk.f32.mxu0 %vm526_vm0, %v492_v13  ;;  %v915_v36 = vld [vmem:[%s8182_s4 + $0x18] sm:$0xff]  ;;  %v914_v37 = vld [vmem:[%s8182_s4 + $0x10] sm:$0xff]  ;;  %v912_v40 = vld [vmem:[%s8182_s4] sm:$0xff]  ;;  %5103 = vmatpush3.msra.mxu0 %v1245_v39 }
  0x2d   : > { %5040 = vmatprep.subr.mxu1 %v915_v36  ;;  %v5802_v42 = vld [vmem:[%s8183_s3] ss:$0 sm:$0xff]  ;;  %v1482_v9 = vld [vmem:[%s8129_s8 + $0x8] sm:$0xff]  ;;  %s5571_s3 = smov [#allocation3]  }
  0x2e   : > { %5023 = vmatmul.mubr.msk.f32.gmra.mxu1 %vm526_vm0, %v507_v18  ;;  %s5512_s4 = sshll.u32 %s5571_s3, 4  ;;  %s5513_s4 = int_to_ptr.vmem [resolvable:$false] %s5512_s4 }
  0x2f   : > { %5002 = vmatmul.mubr.msk.f32.gmra.mxu0 %vm526_vm0, %v493_v16  ;;  %5025 = vmatprep.mubr.msk.f32.mxu1 %vm526_vm0, %v508_v19  ;;  %p5515_p0 = scmp.lt.s32.totalorder %s4391_s20, %s5513_s4 }
  0x30   : > { %5004 = vmatprep.mubr.msk.f32.mxu0 %vm526_vm0, %v494_v17  ;;  %5041 = vmatpush3.msra.mxu1 %v915_v36 }
  0x31   : > { %5042 = vmatprep.subr.mxu1 %v914_v37 }
  0x32   : > { %5026 = vmatmul.mubr.msk.f32.gmra.mxu1 %vm526_vm0, %v509_v22 }
  0x33   : > { %5005 = vmatmul.mubr.msk.f32.gmra.mxu0 %vm526_vm0, %v495_v20  ;;  %5028 = vmatprep.mubr.msk.f32.mxu1 %vm526_vm0, %v510_v23  ;;  %v1481_v20 = vld [vmem:[%s8129_s8] sm:$0xff] }
  0x34   : > { %5007 = vmatprep.mubr.msk.f32.mxu0 %vm526_vm0, %v496_v21  ;;  %5043 = vmatpush3.msra.mxu1 %v914_v37 }
  0x35   : > { %5044 = vmatprep.subr.mxu1 %v913_v38 }
  0x36   : > { %5029 = vmatmul.mubr.msk.f32.gmra.mxu1 %vm526_vm0, %v511_v26 }
  0x37   : > { %5008 = vmatmul.mubr.msk.f32.gmra.mxu0 %vm526_vm0, %v497_v24  ;;  %5031 = vmatprep.mubr.msk.f32.mxu1 %vm526_vm0, %v512_v27 }
  0x38   : > { %5010 = vmatprep.mubr.msk.f32.mxu0 %vm526_vm0, %v498_v25  ;;  %5045 = vmatpush3.msra.mxu1 %v913_v38 }
  0x39   : > { %5046 = vmatprep.subr.mxu1 %v912_v40 }
  0x3a   : > { %5032 = vmatmul.mubr.msk.f32.gmra.mxu1 %vm526_vm0, %v513_v30 }
  0x3b   : > { %5011 = vmatmul.mubr.msk.f32.gmra.mxu0 %vm526_vm0, %v499_v28  ;;  %5034 = vmatprep.mubr.msk.f32.mxu1 %vm526_vm0, %v514_v31 }
  0x3c   : > { %5013 = vmatprep.mubr.msk.f32.mxu0 %vm526_vm0, %v500_v29  ;;  %5047 = vmatpush3.msra.mxu1 %v912_v40 }
  0x3d   : > { %5152 = vmatprep.subr.mxu1 %v1484_v41 }
  0x3e   : > { %5035 = vmatmul.mubr.msk.f32.gmra.mxu1 %vm526_vm0, %v515_v33 }
  0x3f   : > { %5014 = vmatmul.mubr.msk.f32.gmra.mxu0 %vm526_vm0, %v501_v32  ;;  %5037 = vmatprep.mubr.msk.f32.mxu1 %vm526_vm0, %v516_v34 }
  0x42   : > { %5038 = vmatmul.mubr.msk.f32.gmra.mxu1 %vm526_vm0, %v517_v35 }
  0xe3   : > { %v4994_v43 = vpop.f32.mrf.mxu0 }
  0xe4   : > { %v695_v44 = vadd.f32 %v4994_v43, %v5802_v42 }
  0xe5   : > { %v689_v45 = vpop.f32.mrf.mxu0 }
  0xe6   : > { %v690_v46 = vadd.f32 %v5802_v42, %v689_v45  ;;  %v849_v47 = vmax.f32 %v695_v44, 0.0  ;;  %v5807_v51 = vpop.f32.mrf.mxu1 }
  0xe7   : > { %v4997_v48 = vpop.f32.mrf.mxu0 }
  0xe8   : > { %v848_v49 = vmax.f32 %v690_v46, 0.0  ;;  %v705_v50 = vadd.f32 %v4997_v48, %v5802_v42  ;;  %v5812_v55 = vpop.f32.mrf.mxu1  ;;  %v5814_v56 = vmin.f32 %v849_v47, 6.0 }
  0xe9   : > { %v699_v52 = vpop.f32.mrf.mxu0  ;;  %v770_v43 = vadd.f32 %v5802_v42, %v5812_v55 }
  0xea   : > { %v5809_v53 = vmin.f32 %v848_v49, 6.0  ;;  %v700_v54 = vadd.f32 %v5802_v42, %v699_v52  ;;  %v851_v57 = vmax.f32 %v705_v50, 0.0  ;;  %v5821_v61 = vpop.f32.mrf.mxu1 }
  0xeb   : > { %v5000_v58 = vpop.f32.mrf.mxu0  ;;  %v864_v55 = vmax.f32 %v770_v43, 0.0 }
  0xec   : > { %v850_v59 = vmax.f32 %v700_v54, 0.0  ;;  %v715_v60 = vadd.f32 %v5000_v58, %v5802_v42  ;;  %5048 = vmatprep.mubr.msk.f32.mxu1 %vm923_vm1, %v5809_v53  ;;  %5104 = vmatprep.mubr.msk.f32.mxu0 %vm923_vm1, %v5809_v53  ;;  %v5833_v2 = vpop.f32.mrf.mxu1  ;;  %v5835_v3 = vmin.f32 %v851_v57, 6.0 }
  0xed   : > { %v709_v63 = vpop.f32.mrf.mxu0  ;;  %5049 = vmatmul.mubr.msk.f32.vlgmr.msra.gmra.mxu1 %vm923_vm1, %v5814_v56  ;;  %5105 = vmatmul.mubr.msk.f32.vlgmr.msra.gmra.mxu0 %vm923_vm1, %v5814_v56  ;;  %v780_v57 = vadd.f32 %v5802_v42, %v5833_v2  ;;  %v5939_v2 = vmin.f32 %v864_v55, 6.0 }
  0xee   : > { %v5830_v0 = vmin.f32 %v850_v59, 6.0  ;;  %v710_v1 = vadd.f32 %v5802_v42, %v709_v63  ;;  %5153 = vmatpush3.msra.mxu1 %v1484_v41  ;;  %v853_v4 = vmax.f32 %v715_v60, 0.0  ;;  %v5842_v8 = vpop.f32.mrf.mxu1  ;;  %v775_v60 = vadd.f32 %v5807_v51, %v5802_v42 }
  0xef   : > { %v5003_v5 = vpop.f32.mrf.mxu0  ;;  %5154 = vmatprep.subr.mxu1 %v1483_v62 }
  0xf0   : > { %v852_v6 = vmax.f32 %v710_v1, 0.0  ;;  %v725_v7 = vadd.f32 %v5003_v5, %v5802_v42  ;;  %5051 = vmatprep.mubr.msk.f32.mxu1 %vm923_vm1, %v5830_v0  ;;  %5107 = vmatprep.mubr.msk.f32.mxu0 %vm923_vm1, %v5830_v0  ;;  %v5854_v13 = vpop.f32.mrf.mxu1  ;;  %v5856_v14 = vmin.f32 %v853_v4, 6.0  ;;  %v866_v4 = vmax.f32 %v780_v57, 0.0 }
  0xf1   : > { %v719_v10 = vpop.f32.mrf.mxu0  ;;  %5052 = vmatmul.mubr.msk.f32.gmra.mxu1 %vm923_vm1, %v5835_v3  ;;  %5108 = vmatmul.mubr.msk.f32.gmra.mxu0 %vm923_vm1, %v5835_v3  ;;  %v790_v51 = vadd.f32 %v5802_v42, %v5854_v13 }
  0xf2   : > { %v5851_v11 = vmin.f32 %v852_v6, 6.0  ;;  %v720_v12 = vadd.f32 %v5802_v42, %v719_v10  ;;  %5155 = vmatpush3.msra.mxu1 %v1483_v62  ;;  %v855_v15 = vmax.f32 %v725_v7, 0.0  ;;  %v5863_v19 = vpop.f32.mrf.mxu1  ;;  %v865_v6 = vmax.f32 %v775_v60, 0.0 }
  0xf3   : > { %v5006_v16 = vpop.f32.mrf.mxu0  ;;  %5156 = vmatprep.subr.mxu1 %v1482_v9  ;;  %v785_v7 = vadd.f32 %v5821_v61, %v5802_v42  ;;  %v5955_v10 = vmin.f32 %v866_v4, 6.0  ;;  %v868_v61 = vmax.f32 %v790_v51, 0.0 }
  0xf4   : > { %v854_v17 = vmax.f32 %v720_v12, 0.0  ;;  %v735_v18 = vadd.f32 %v5006_v16, %v5802_v42  ;;  %5054 = vmatprep.mubr.msk.f32.mxu1 %vm923_vm1, %v5851_v11  ;;  %5110 = vmatprep.mubr.msk.f32.mxu0 %vm923_vm1, %v5851_v11  ;;  %v5875_v24 = vmin.f32 %v855_v15, 6.0  ;;  %v5877_v27 = vpop.f32.mrf.mxu1  ;;  %v5963_v13 = vmin.f32 %v865_v6, 6.0 }
  0xf5   : > { %v729_v21 = vpop.f32.mrf.mxu0  ;;  %5055 = vmatmul.mubr.msk.f32.gmra.mxu1 %vm923_vm1, %v5856_v14  ;;  %5111 = vmatmul.mubr.msk.f32.gmra.mxu0 %vm923_vm1, %v5856_v14  ;;  %v800_v12 = vadd.f32 %v5802_v42, %v5877_v27  ;;  %v867_v15 = vmax.f32 %v785_v7, 0.0  ;;  %v795_v16 = vadd.f32 %v5842_v8, %v5802_v42 }
  0xf6   : > { %v5872_v22 = vmin.f32 %v854_v17, 6.0  ;;  %v730_v23 = vadd.f32 %v5802_v42, %v729_v21  ;;  %5157 = vmatpush3.msra.mxu1 %v1482_v9  ;;  %v857_v25 = vmax.f32 %v735_v18, 0.0  ;;  %v5893_v36 = vpop.f32.mrf.mxu1  ;;  %v5971_v18 = vmin.f32 %v868_v61, 6.0 }
  0xf7   : > { %v5009_v26 = vpop.f32.mrf.mxu0  ;;  %5158 = vmatprep.subr.mxu1 %v1481_v20  ;;  %v869_v8 = vmax.f32 %v795_v16, 0.0 }
  0xf8   : > { %v856_v28 = vmax.f32 %v730_v23, 0.0  ;;  %v745_v29 = vadd.f32 %v5009_v26, %v5802_v42  ;;  %5057 = vmatprep.mubr.msk.f32.mxu1 %vm923_vm1, %v5872_v22  ;;  %5113 = vmatprep.mubr.msk.f32.mxu0 %vm923_vm1, %v5872_v22  ;;  %v5891_v33 = vmin.f32 %v857_v25, 6.0  ;;  %v809_v47 = vpop.f32.mrf.mxu1  ;;  %v5978_v23 = vmin.f32 %v867_v15, 6.0 }
  0xf9   : > { %v739_v30 = vpop.f32.mrf.mxu0  ;;  %5058 = vmatmul.mubr.msk.f32.gmra.mxu1 %vm923_vm1, %v5875_v24  ;;  %5114 = vmatmul.mubr.msk.f32.gmra.mxu0 %vm923_vm1, %v5875_v24  ;;  %v810_v21 = vadd.f32 %v5802_v42, %v809_v47  ;;  %v805_v25 = vadd.f32 %v5863_v19, %v5802_v42 }
  0xfa   : > { %v5888_v31 = vmin.f32 %v856_v28, 6.0  ;;  %v740_v32 = vadd.f32 %v5802_v42, %v739_v30  ;;  %5159 = vmatpush3.msra.mxu1 %v1481_v20  ;;  %v859_v34 = vmax.f32 %v745_v29, 0.0  ;;  %v5033_v62 = vpop.f32.mrf.mxu1  ;;  %v870_v20 = vmax.f32 %v800_v12, 0.0 }
  0xfb   : > { %v5012_v35 = vpop.f32.mrf.mxu0  ;;  %v872_v28 = vmax.f32 %v810_v21, 0.0  ;;  %v5993_v30 = vmin.f32 %v869_v8, 6.0  ;;  %v871_v19 = vmax.f32 %v805_v25, 0.0 }
  0xfc   : > { %v858_v37 = vmax.f32 %v740_v32, 0.0  ;;  %v755_v38 = vadd.f32 %v5012_v35, %v5802_v42  ;;  %5060 = vmatprep.mubr.msk.f32.mxu1 %vm923_vm1, %v5888_v31  ;;  %5116 = vmatprep.mubr.msk.f32.mxu0 %vm923_vm1, %v5888_v31  ;;  %v5909_v44 = vmin.f32 %v859_v34, 6.0  ;;  %v819_v9 = vpop.f32.mrf.mxu1  ;;  %v5986_v27 = vmin.f32 %v870_v20, 6.0 }
  0xfd   : > { %v749_v39 = vpop.f32.mrf.mxu0  ;;  %5061 = vmatmul.mubr.msk.f32.gmra.mxu1 %vm923_vm1, %v5891_v33  ;;  %5117 = vmatmul.mubr.msk.f32.gmra.mxu0 %vm923_vm1, %v5891_v33  ;;  %v820_v29 = vadd.f32 %v5802_v42, %v819_v9  ;;  %v815_v32 = vadd.f32 %v5893_v36, %v5802_v42  ;;  %v6001_v35 = vmin.f32 %v872_v28, 6.0 }
  0xfe   : > { %v5904_v40 = vmin.f32 %v858_v37, 6.0  ;;  %v750_v41 = vadd.f32 %v5802_v42, %v749_v39  ;;  %v861_v45 = vmax.f32 %v755_v38, 0.0  ;;  %v5036_v17 = vpop.f32.mrf.mxu1  ;;  %v903_v39 = vmin.f32 %v871_v19, 6.0 }
  0xff   : > { %v5015_v46 = vpop.f32.mrf.mxu0  ;;  %v874_v37 = vmax.f32 %v820_v29, 0.0  ;;  %v873_v36 = vmax.f32 %v815_v32, 0.0 }
 0x100   : > { %v860_v48 = vmax.f32 %v750_v41, 0.0  ;;  %v765_v49 = vadd.f32 %v5015_v46, %v5802_v42  ;;  %5063 = vmatprep.mubr.msk.f32.mxu1 %vm923_vm1, %v5904_v40  ;;  %5119 = vmatprep.mubr.msk.f32.mxu0 %vm923_vm1, %v5904_v40  ;;  %v5925_v58 = vmin.f32 %v861_v45, 6.0  ;;  %v829_v26 = vpop.f32.mrf.mxu1  ;;  %v825_v41 = vadd.f32 %v5033_v62, %v5802_v42 }
 0x101   : > { %v759_v50 = vpop.f32.mrf.mxu0  ;;  %5064 = vmatmul.mubr.msk.f32.gmra.mxu1 %vm923_vm1, %v5909_v44  ;;  %5120 = vmatmul.mubr.msk.f32.gmra.mxu0 %vm923_vm1, %v5909_v44  ;;  %v830_v38 = vadd.f32 %v5802_v42, %v829_v26  ;;  %v906_v45 = vmin.f32 %v874_v37, 6.0 }
 0x102   : > { %v5920_v52 = vmin.f32 %v860_v48, 6.0  ;;  %v760_v54 = vadd.f32 %v5802_v42, %v759_v50  ;;  %v863_v59 = vmax.f32 %v765_v49, 0.0  ;;  %v5039_v34 = vpop.f32.mrf.mxu1  ;;  %v905_v48 = vmin.f32 %v873_v36, 6.0 }
 0x103   : > { %v876_v46 = vmax.f32 %v830_v38, 0.0  ;;  %v875_v49 = vmax.f32 %v825_v41, 0.0  ;;  %v835_v50 = vadd.f32 %v5036_v17, %v5802_v42  ;;  %v845_v60 = vadd.f32 %v5039_v34, %v5802_v42 }
 0x104   : > { %v862_v63 = vmax.f32 %v760_v54, 0.0  ;;  %5066 = vmatprep.mubr.msk.f32.mxu1 %vm923_vm1, %v5920_v52  ;;  %5122 = vmatprep.mubr.msk.f32.mxu0 %vm923_vm1, %v5920_v52  ;;  %v5943_v5 = vmin.f32 %v863_v59, 6.0  ;;  %v839_v43 = vpop.f32.mrf.mxu1 }
 0x105   : > { %5067 = vmatmul.mubr.msk.f32.gmra.mxu1 %vm923_vm1, %v5925_v58  ;;  %5123 = vmatmul.mubr.msk.f32.gmra.mxu0 %vm923_vm1, %v5925_v58  ;;  %v840_v47 = vadd.f32 %v5802_v42, %v839_v43  ;;  %v908_v54 = vmin.f32 %v876_v46, 6.0  ;;  %v907_v57 = vmin.f32 %v875_v49, 6.0  ;;  %v877_v59 = vmax.f32 %v835_v50, 0.0 }
 0x106   : > { %v5937_v1 = vmin.f32 %v862_v63, 6.0  ;;  %v879_v4 = vmax.f32 %v845_v60, 0.0 }
 0x107   : > { %v878_v55 = vmax.f32 %v840_v47, 0.0  ;;  %v909_v63 = vmin.f32 %v877_v59, 6.0 }
 0x108   : > { %5069 = vmatprep.mubr.msk.f32.mxu1 %vm923_vm1, %v5937_v1  ;;  %5125 = vmatprep.mubr.msk.f32.mxu0 %vm923_vm1, %v5937_v1  ;;  %v911_v42 = vmin.f32 %v879_v4, 6.0 }
 0x109   : > { %5070 = vmatmul.mubr.msk.f32.gmra.mxu1 %vm923_vm1, %v5943_v5  ;;  %5126 = vmatmul.mubr.msk.f32.gmra.mxu0 %vm923_vm1, %v5943_v5  ;;  %v910_v62 = vmin.f32 %v878_v55, 6.0 }
 0x10a   : > { %5072 = vmatprep.mubr.msk.f32.mxu1 %vm923_vm1, %v5939_v2  ;;  %5128 = vmatprep.mubr.msk.f32.mxu0 %vm923_vm1, %v5939_v2 }
 0x10d   : > { %5073 = vmatmul.mubr.msk.f32.gmra.mxu1 %vm923_vm1, %v5963_v13  ;;  %5129 = vmatmul.mubr.msk.f32.gmra.mxu0 %vm923_vm1, %v5963_v13 }
 0x10e   : > { %5075 = vmatprep.mubr.msk.f32.mxu1 %vm923_vm1, %v5955_v10  ;;  %5131 = vmatprep.mubr.msk.f32.mxu0 %vm923_vm1, %v5955_v10 }
 0x111   : > { %5076 = vmatmul.mubr.msk.f32.gmra.mxu1 %vm923_vm1, %v5978_v23  ;;  %5132 = vmatmul.mubr.msk.f32.gmra.mxu0 %vm923_vm1, %v5978_v23 }
 0x112   : > { %5078 = vmatprep.mubr.msk.f32.mxu1 %vm923_vm1, %v5971_v18  ;;  %5134 = vmatprep.mubr.msk.f32.mxu0 %vm923_vm1, %v5971_v18 }
 0x115   : > { %5079 = vmatmul.mubr.msk.f32.gmra.mxu1 %vm923_vm1, %v5993_v30  ;;  %5135 = vmatmul.mubr.msk.f32.gmra.mxu0 %vm923_vm1, %v5993_v30 }
 0x116   : > { %5081 = vmatprep.mubr.msk.f32.mxu1 %vm923_vm1, %v5986_v27  ;;  %5137 = vmatprep.mubr.msk.f32.mxu0 %vm923_vm1, %v5986_v27 }
 0x119   : > { %5082 = vmatmul.mubr.msk.f32.gmra.mxu1 %vm923_vm1, %v903_v39  ;;  %5138 = vmatmul.mubr.msk.f32.gmra.mxu0 %vm923_vm1, %v903_v39 }
 0x11a   : > { %5084 = vmatprep.mubr.msk.f32.mxu1 %vm923_vm1, %v6001_v35  ;;  %5140 = vmatprep.mubr.msk.f32.mxu0 %vm923_vm1, %v6001_v35 }
 0x11d   : > { %5085 = vmatmul.mubr.msk.f32.gmra.mxu1 %vm923_vm1, %v905_v48  ;;  %5141 = vmatmul.mubr.msk.f32.gmra.mxu0 %vm923_vm1, %v905_v48 }
 0x11e   : > { %5087 = vmatprep.mubr.msk.f32.mxu1 %vm923_vm1, %v906_v45  ;;  %5143 = vmatprep.mubr.msk.f32.mxu0 %vm923_vm1, %v906_v45 }
 0x121   : > { %5088 = vmatmul.mubr.msk.f32.gmra.mxu1 %vm923_vm1, %v907_v57  ;;  %5144 = vmatmul.mubr.msk.f32.gmra.mxu0 %vm923_vm1, %v907_v57 }
 0x122   : > { %5090 = vmatprep.mubr.msk.f32.mxu1 %vm923_vm1, %v908_v54  ;;  %5146 = vmatprep.mubr.msk.f32.mxu0 %vm923_vm1, %v908_v54 }
 0x125   : > { %5091 = vmatmul.mubr.msk.f32.gmra.mxu1 %vm923_vm1, %v909_v63  ;;  %5147 = vmatmul.mubr.msk.f32.gmra.mxu0 %vm923_vm1, %v909_v63 }
 0x126   : > { %5093 = vmatprep.mubr.msk.f32.mxu1 %vm923_vm1, %v910_v62  ;;  %5149 = vmatprep.mubr.msk.f32.mxu0 %vm923_vm1, %v910_v62 }
 0x129   : > { %5094 = vmatmul.mubr.msk.f32.gmra.mxu1 %vm923_vm1, %v911_v42  ;;  %5150 = vmatmul.mubr.msk.f32.gmra.mxu0 %vm923_vm1, %v911_v42 }
 0x12a   : > { %5160 = vmatprep.mubr.msk.f32.mxu1 %vm923_vm1, %v5809_v53  ;;  %v8136_v53 = vmov 0.0  }
 0x12b   : > { %2647 = vmatprep.subr.mxu1 %v8136_v53  ;;  %2872 = vst.msk [vmem:[#allocation2] sm:$0xff] %vm923_vm1, %v8136_v53  ;;  %2873 = vst.msk [vmem:[#allocation2 + $0x8] sm:$0xff] %vm923_vm1, %v8136_v53 }
 0x12c   : > { %2876 = vst.msk [vmem:[#allocation2 + $0x18] sm:$0xff] %vm923_vm1, %v8136_v53  ;;  %2877 = vst.msk [vmem:[#allocation2 + $0x20] sm:$0xff] %vm923_vm1, %v8136_v53 }
 0x12d   : > { %5161 = vmatmul.mubr.msk.f32.vlgmr.msra.gmra.mxu1 %vm923_vm1, %v5814_v56  ;;  %2879 = vst.msk [vmem:[#allocation2 + $0x30] sm:$0xff] %vm923_vm1, %v8136_v53  ;;  %2880 = vst.msk [vmem:[#allocation2 + $0x38] sm:$0xff] %vm923_vm1, %v8136_v53  ;;  %v6164_v56 = vld [vmem:[%s8126_s5] ss:$0 sm:$0xff] }
 0x12e   : > { %5163 = vmatprep.mubr.msk.f32.mxu1 %vm923_vm1, %v5830_v0  ;;  %2882 = vst.msk [vmem:[#allocation2 + $0x48] sm:$0xff] %vm923_vm1, %v8136_v53  ;;  %2883 = vst.msk [vmem:[#allocation2 + $0x50] sm:$0xff] %vm923_vm1, %v8136_v53 }
 0x12f   : > { %2885 = vst.msk [vmem:[#allocation2 + $0x60] sm:$0xff] %vm923_vm1, %v8136_v53  ;;  %2886 = vst.msk [vmem:[#allocation2 + $0x68] sm:$0xff] %vm923_vm1, %v8136_v53 }
 0x130   : > { %2888 = vst.msk [vmem:[#allocation2 + $0x78] sm:$0xff] %vm923_vm1, %v8136_v53  ;;  %2889 = vst.msk [vmem:[#allocation2 + $0x80] sm:$0xff] %vm923_vm1, %v8136_v53 }
 0x131   : > { %5164 = vmatmul.mubr.msk.f32.gmra.mxu1 %vm923_vm1, %v5835_v3  ;;  %2891 = vst.msk [vmem:[#allocation2 + $0x90] sm:$0xff] %vm923_vm1, %v8136_v53  ;;  %2892 = vst.msk [vmem:[#allocation2 + $0x98] sm:$0xff] %vm923_vm1, %v8136_v53 }
 0x132   : > { %5166 = vmatprep.mubr.msk.f32.mxu1 %vm923_vm1, %v5851_v11  ;;  %2894 = vst.msk [vmem:[#allocation2 + $0xa8] sm:$0xff] %vm923_vm1, %v8136_v53  ;;  %2895 = vst.msk [vmem:[#allocation2 + $0xb0] sm:$0xff] %vm923_vm1, %v8136_v53 }
 0x133   : > { %2897 = vst.msk [vmem:[#allocation2 + $0xc0] sm:$0xff] %vm923_vm1, %v8136_v53  ;;  %2898 = vst.msk [vmem:[#allocation2 + $0xc8] sm:$0xff] %vm923_vm1, %v8136_v53 }
 0x134   : > { %2900 = vst.msk [vmem:[#allocation2 + $0xd8] sm:$0xff] %vm923_vm1, %v8136_v53  ;;  %2901 = vst.msk [vmem:[#allocation2 + $0xe0] sm:$0xff] %vm923_vm1, %v8136_v53 }
 0x135   : > { %5167 = vmatmul.mubr.msk.f32.gmra.mxu1 %vm923_vm1, %v5856_v14  ;;  %2903 = vst.msk [vmem:[#allocation2 + $0xf0] sm:$0xff] %vm923_vm1, %v8136_v53  ;;  %2904 = vst.msk [vmem:[#allocation2 + $0xf8] sm:$0xff] %vm923_vm1, %v8136_v53 }
 0x136   : > { %5169 = vmatprep.mubr.msk.f32.mxu1 %vm923_vm1, %v5872_v22  ;;  %2906 = vst.msk [vmem:[#allocation2 + $0x108] sm:$0xff] %vm923_vm1, %v8136_v53  ;;  %2907 = vst.msk [vmem:[#allocation2 + $0x110] sm:$0xff] %vm923_vm1, %v8136_v53 }
 0x137   : > { %2909 = vst.msk [vmem:[#allocation2 + $0x120] sm:$0xff] %vm923_vm1, %v8136_v53  ;;  %2910 = vst.msk [vmem:[#allocation2 + $0x128] sm:$0xff] %vm923_vm1, %v8136_v53 }
 0x138   : > { %2912 = vst.msk [vmem:[#allocation2 + $0x138] sm:$0xff] %vm923_vm1, %v8136_v53  ;;  %2913 = vst.msk [vmem:[#allocation2 + $0x140] sm:$0xff] %vm923_vm1, %v8136_v53 }
 0x139   : > { %5170 = vmatmul.mubr.msk.f32.gmra.mxu1 %vm923_vm1, %v5875_v24  ;;  %2915 = vst.msk [vmem:[#allocation2 + $0x150] sm:$0xff] %vm923_vm1, %v8136_v53  ;;  %2916 = vst.msk [vmem:[#allocation2 + $0x158] sm:$0xff] %vm923_vm1, %v8136_v53 }
 0x13a   : > { %5172 = vmatprep.mubr.msk.f32.mxu1 %vm923_vm1, %v5888_v31  ;;  %2918 = vst.msk [vmem:[#allocation2 + $0x168] sm:$0xff] %vm923_vm1, %v8136_v53  ;;  %2919 = vst.msk [vmem:[#allocation2 + $0x170] sm:$0xff] %vm923_vm1, %v8136_v53 }
 0x13b   : > { %2921 = vst.msk [vmem:[#allocation2 + $0x180] sm:$0xff] %vm923_vm1, %v8136_v53  ;;  %2922 = vst.msk [vmem:[#allocation2 + $0x188] sm:$0xff] %vm923_vm1, %v8136_v53 }
 0x13c   : > { %2924 = vst.msk [vmem:[#allocation2 + $0x198] sm:$0xff] %vm923_vm1, %v8136_v53  ;;  %2925 = vst.msk [vmem:[#allocation2 + $0x1a0] sm:$0xff] %vm923_vm1, %v8136_v53 }
 0x13d   : > { %5173 = vmatmul.mubr.msk.f32.gmra.mxu1 %vm923_vm1, %v5891_v33 }
 0x13e   : > { %5175 = vmatprep.mubr.msk.f32.mxu1 %vm923_vm1, %v5904_v40 }
 0x141   : > { %5176 = vmatmul.mubr.msk.f32.gmra.mxu1 %vm923_vm1, %v5909_v44 }
 0x142   : > { %5178 = vmatprep.mubr.msk.f32.mxu1 %vm923_vm1, %v5920_v52 }
 0x145   : > { %5179 = vmatmul.mubr.msk.f32.gmra.mxu1 %vm923_vm1, %v5925_v58 }
 0x146   : > { %5181 = vmatprep.mubr.msk.f32.mxu1 %vm923_vm1, %v5937_v1 }
 0x149   : > { %5182 = vmatmul.mubr.msk.f32.gmra.mxu1 %vm923_vm1, %v5943_v5 }
 0x14a   : > { %5184 = vmatprep.mubr.msk.f32.mxu1 %vm923_vm1, %v5939_v2 }
 0x14d   : > { %5185 = vmatmul.mubr.msk.f32.gmra.mxu1 %vm923_vm1, %v5963_v13 }
 0x14e   : > { %5187 = vmatprep.mubr.msk.f32.mxu1 %vm923_vm1, %v5955_v10 }
 0x151   : > { %5188 = vmatmul.mubr.msk.f32.gmra.mxu1 %vm923_vm1, %v5978_v23 }
 0x152   : > { %5190 = vmatprep.mubr.msk.f32.mxu1 %vm923_vm1, %v5971_v18 }
 0x155   : > { %5191 = vmatmul.mubr.msk.f32.gmra.mxu1 %vm923_vm1, %v5993_v30 }
 0x156   : > { %5193 = vmatprep.mubr.msk.f32.mxu1 %vm923_vm1, %v5986_v27 }
 0x159   : > { %5194 = vmatmul.mubr.msk.f32.gmra.mxu1 %vm923_vm1, %v903_v39 }
 0x15a   : > { %5196 = vmatprep.mubr.msk.f32.mxu1 %vm923_vm1, %v6001_v35 }
 0x15d   : > { %5197 = vmatmul.mubr.msk.f32.gmra.mxu1 %vm923_vm1, %v905_v48 }
 0x15e   : > { %5199 = vmatprep.mubr.msk.f32.mxu1 %vm923_vm1, %v906_v45 }
 0x161   : > { %5200 = vmatmul.mubr.msk.f32.gmra.mxu1 %vm923_vm1, %v907_v57 }
 0x162   : > { %5202 = vmatprep.mubr.msk.f32.mxu1 %vm923_vm1, %v908_v54 }
 0x165   : > { %5203 = vmatmul.mubr.msk.f32.gmra.mxu1 %vm923_vm1, %v909_v63 }
 0x166   : > { %5205 = vmatprep.mubr.msk.f32.mxu1 %vm923_vm1, %v910_v62 }
 0x169   : > { %5206 = vmatmul.mubr.msk.f32.gmra.mxu1 %vm923_vm1, %v911_v42 }
 0x1ad   : > { %v5050_v0 = vpop.f32.mrf.mxu1  ;;  %v6166_v3 = vpop.f32.mrf.mxu0 }
 0x1ae   : > { %v6169_v11 = vadd.f32 %v5050_v0, %v6164_v56 }
 0x1af   : > { %v1086_v14 = vpop.f32.mrf.mxu1  ;;  %v6171_v22 = vpop.f32.mrf.mxu0 }
 0x1b0   : > { %v6174_v24 = vadd.f32 %v6164_v56, %v1086_v14 }
 0x1b1   : > { %v5053_v31 = vpop.f32.mrf.mxu1  ;;  %v6176_v33 = vpop.f32.mrf.mxu0 }
 0x1b2   : > { %v6179_v40 = vadd.f32 %v5053_v31, %v6164_v56  ;;  %4890 = vmatprep.mubr.msk.f32.mxu0 %vm1717_vm2, %v6174_v24 }
 0x1b3   : > { %v6183_v44 = vpop.f32.mrf.mxu1  ;;  %v6185_v52 = vpop.f32.mrf.mxu0 }
 0x1b5   : > { %v5056_v58 = vpop.f32.mrf.mxu1  ;;  %v6187_v1 = vpop.f32.mrf.mxu0 }
 0x1b6   : > { %v6190_v2 = vadd.f32 %v5056_v58, %v6164_v56 }
 0x1b7   : > { %v6192_v51 = vpop.f32.mrf.mxu1  ;;  %v6194_v5 = vpop.f32.mrf.mxu0 }
 0x1b9   : > { %v5059_v6 = vpop.f32.mrf.mxu1  ;;  %v6196_v7 = vpop.f32.mrf.mxu0 }
 0x1ba   : > { %v6199_v9 = vadd.f32 %v5059_v6, %v6164_v56 }
 0x1bb   : > { %v6201_v10 = vpop.f32.mrf.mxu1  ;;  %v6203_v61 = vpop.f32.mrf.mxu0 }
 0x1bd   : > { %v5062_v12 = vpop.f32.mrf.mxu1  ;;  %v6205_v13 = vpop.f32.mrf.mxu0 }
 0x1be   : > { %v6208_v15 = vadd.f32 %v5062_v12, %v6164_v56 }
 0x1bf   : > { %v6210_v16 = vpop.f32.mrf.mxu1  ;;  %v6212_v17 = vpop.f32.mrf.mxu0 }
 0x1c1   : > { %v5065_v18 = vpop.f32.mrf.mxu1  ;;  %v6214_v20 = vpop.f32.mrf.mxu0 }
 0x1c2   : > { %v6217_v21 = vadd.f32 %v5065_v18, %v6164_v56 }
 0x1c3   : > { %v6219_v23 = vpop.f32.mrf.mxu1  ;;  %v6221_v8 = vpop.f32.mrf.mxu0 }
 0x1c5   : > { %v5068_v25 = vpop.f32.mrf.mxu1  ;;  %v6223_v26 = vpop.f32.mrf.mxu0 }
 0x1c6   : > { %v6226_v27 = vadd.f32 %v5068_v25, %v6164_v56 }
 0x1c7   : > { %v6228_v28 = vpop.f32.mrf.mxu1  ;;  %v6230_v29 = vpop.f32.mrf.mxu0 }
 0x1c9   : > { %v5071_v30 = vpop.f32.mrf.mxu1  ;;  %v5127_v19 = vpop.f32.mrf.mxu0 }
 0x1ca   : > { %v6233_v32 = vadd.f32 %v5071_v30, %v6164_v56 }
 0x1cb   : > { %v6235_v34 = vpop.f32.mrf.mxu1  ;;  %v1392_v35 = vpop.f32.mrf.mxu0 }
 0x1cd   : > { %v5074_v37 = vpop.f32.mrf.mxu1  ;;  %v6237_v38 = vpop.f32.mrf.mxu0 }
 0x1ce   : > { %v6240_v39 = vadd.f32 %v5074_v37, %v6164_v56 }
 0x1cf   : > { %v1166_v36 = vpop.f32.mrf.mxu1  ;;  %v6242_v41 = vpop.f32.mrf.mxu0 }
 0x1d0   : > { %v6245_v43 = vadd.f32 %v6164_v56, %v1166_v36 }
 0x1d1   : > { %v5077_v45 = vpop.f32.mrf.mxu1  ;;  %v6247_v46 = vpop.f32.mrf.mxu0 }
 0x1d2   : > { %v6250_v47 = vadd.f32 %v5077_v45, %v6164_v56 }
 0x1d3   : > { %v1176_v48 = vpop.f32.mrf.mxu1  ;;  %v6252_v49 = vpop.f32.mrf.mxu0 }
 0x1d4   : > { %v6255_v50 = vadd.f32 %v6164_v56, %v1176_v48 }
 0x1d5   : > { %v5080_v54 = vpop.f32.mrf.mxu1  ;;  %v6257_v55 = vpop.f32.mrf.mxu0 }
 0x1d6   : > { %v6260_v57 = vadd.f32 %v5080_v54, %v6164_v56 }
 0x1d7   : > { %v1186_v59 = vpop.f32.mrf.mxu1  ;;  %v6262_v60 = vpop.f32.mrf.mxu0 }
 0x1d8   : > { %v6265_v62 = vadd.f32 %v6164_v56, %v1186_v59 }
 0x1d9   : > { %v5083_v63 = vpop.f32.mrf.mxu1  ;;  %v6267_v4 = vpop.f32.mrf.mxu0 }
 0x1da   : > { %v6270_v42 = vadd.f32 %v5083_v63, %v6164_v56 }
 0x1db   : > { %v1196_v0 = vpop.f32.mrf.mxu1  ;;  %v6272_v14 = vpop.f32.mrf.mxu0 }
 0x1dc   : > { %8184 = vst [vmem:[#allocation6_spill] sm:$0xff] %v6270_v42  ;;  %v6275_v31 = vadd.f32 %v6164_v56, %v1196_v0 }
 0x1dd   : > { %v5086_v58 = vpop.f32.mrf.mxu1  ;;  %v5142_v6 = vpop.f32.mrf.mxu0 }
 0x1de   : > { %8185 = vst [vmem:[#allocation7_spill] sm:$0xff] %v6275_v31  ;;  %v6278_v12 = vadd.f32 %v5086_v58, %v6164_v56 }
 0x1df   : > { %v1206_v18 = vpop.f32.mrf.mxu1  ;;  %v1442_v25 = vpop.f32.mrf.mxu0 }
 0x1e0   : > { %8186 = vst [vmem:[#allocation8_spill] sm:$0xff] %v6278_v12  ;;  %v6281_v30 = vadd.f32 %v6164_v56, %v1206_v18 }
 0x1e1   : > { %v5089_v37 = vpop.f32.mrf.mxu1  ;;  %v5145_v36 = vpop.f32.mrf.mxu0 }
 0x1e2   : > { %8187 = vst [vmem:[#allocation9_spill] sm:$0xff] %v6281_v30  ;;  %v6284_v45 = vadd.f32 %v5089_v37, %v6164_v56  ;;  %v6298_v37 = vld [vmem:[%s8128_s7] ss:$0 sm:$0xff] }
 0x1e3   : > { %v1216_v48 = vpop.f32.mrf.mxu1  ;;  %v1452_v54 = vpop.f32.mrf.mxu0 }
 0x1e4   : > { %8188 = vst [vmem:[#allocation10_spill] sm:$0xff] %v6284_v45  ;;  %v6287_v59 = vadd.f32 %v6164_v56, %v1216_v48 }
 0x1e5   : > { %v5092_v63 = vpop.f32.mrf.mxu1  ;;  %v5148_v0 = vpop.f32.mrf.mxu0 }
 0x1e6   : > { %8189 = vst [vmem:[#allocation11_spill] sm:$0xff] %v6287_v59  ;;  %v6290_v58 = vadd.f32 %v5092_v63, %v6164_v56  ;;  %v1398_v63 = vadd.f32 %v5127_v19, %v6298_v37  ;;  %v1468_v19 = vadd.f32 %v5148_v0, %v6298_v37 }
 0x1e7   : > { %v1226_v53 = vpop.f32.mrf.mxu1  ;;  %v1462_v12 = vpop.f32.mrf.mxu0 }
 0x1e8   : > { %8190 = vst [vmem:[#allocation12_spill] sm:$0xff] %v6290_v58  ;;  %v6293_v18 = vadd.f32 %v6164_v56, %v1226_v53 }
 0x1e9   : > { %v5095_v45 = vpop.f32.mrf.mxu1  ;;  %v5151_v30 = vpop.f32.mrf.mxu0 }
 0x1ea   : > { %8191 = vst [vmem:[#allocation13_spill] sm:$0xff] %v6293_v18  ;;  %v6301_v48 = vadd.f32 %v5095_v45, %v6164_v56  ;;  %v1478_v59 = vadd.f32 %v5151_v30, %v6298_v37  ;;  %v1393_v45 = vadd.f32 %v6298_v37, %v1392_v35  ;;  %v1383_v35 = vadd.f32 %v6298_v37, %v6230_v29 }
 0x1eb   : > { %v1236_v58 = vpop.f32.mrf.mxu1  ;;  %v1472_v42 = vpop.f32.mrf.mxu0  ;;  %v1373_v29 = vadd.f32 %v6298_v37, %v6221_v8  ;;  %v1363_v8 = vadd.f32 %v6298_v37, %v6212_v17 }
 0x1ec   : > { %8192 = vst [vmem:[#allocation14_spill] sm:$0xff] %v6301_v48  ;;  %v6306_v31 = vadd.f32 %v6164_v56, %v1236_v58  ;;  %v1473_v53 = vadd.f32 %v6298_v37, %v1472_v42  ;;  %4858 = vmatprep.subr.msk.mxu0 %vm1717_vm2, %v1478_v59  ;;  %v1388_v42 = vadd.f32 %v6223_v26, %v6298_v37 }
 0x1ed   : > { %v6310_v18 = vpop.f32.mrf.mxu1  ;;  %4859 = vmatpush3.xpose.msk.msra.mxu0 %vm1717_vm2, %v1398_v63  ;;  %v1463_v58 = vadd.f32 %v6298_v37, %v1462_v12  ;;  %v1378_v26 = vadd.f32 %v6214_v20, %v6298_v37  ;;  %v1368_v20 = vadd.f32 %v6205_v13, %v6298_v37 }
 0x1ee   : > { %8193 = vst [vmem:[#allocation15_spill] sm:$0xff] %v6306_v31  ;;  %4860 = vmatprep.subr.msk.mxu0 %vm1717_vm2, %v1473_v53  ;;  %v1458_v53 = vadd.f32 %v5145_v36, %v6298_v37  ;;  %v8194_v31 = vmov 0.0  }
 0x1ef   : > { %v6315_v30 = vpop.f32.mrf.mxu1 }
 0x1f1   : > { %v6318_v48 = vpop.f32.mrf.mxu1  ;;  %4861 = vmatpush3.xpose.msk.msra.mxu0 %vm1717_vm2, %v1393_v45 }
 0x1f2   : > { %4862 = vmatprep.subr.msk.mxu0 %vm1717_vm2, %v1468_v19  ;;  %v1453_v19 = vadd.f32 %v6298_v37, %v1452_v54 }
 0x1f3   : > { %v6324_v59 = vpop.f32.mrf.mxu1 }
 0x1f5   : > { %v6327_v63 = vpop.f32.mrf.mxu1  ;;  %4863 = vmatpush3.xpose.msk.msra.mxu0 %vm1717_vm2, %v1388_v42 }
 0x1f6   : > { %4864 = vmatprep.subr.msk.mxu0 %vm1717_vm2, %v1463_v58  ;;  %v1448_v58 = vadd.f32 %v5142_v6, %v6298_v37 }
 0x1f7   : > { %v6333_v0 = vpop.f32.mrf.mxu1 }
 0x1f9   : > { %v6336_v45 = vpop.f32.mrf.mxu1  ;;  %4865 = vmatpush3.xpose.msk.msra.mxu0 %vm1717_vm2, %v1383_v35 }
 0x1fa   : > { %4866 = vmatprep.subr.msk.mxu0 %vm1717_vm2, %v1458_v53  ;;  %v1443_v53 = vadd.f32 %v6298_v37, %v1442_v25 }
 0x1fb   : > { %v6342_v12 = vpop.f32.mrf.mxu1 }
 0x1fd   : > { %v5174_v42 = vpop.f32.mrf.mxu1  ;;  %4867 = vmatpush3.xpose.msk.msra.mxu0 %vm1717_vm2, %v1378_v26 }
 0x1fe   : > { %4868 = vmatprep.subr.msk.mxu0 %vm1717_vm2, %v1453_v19  ;;  %v1438_v19 = vadd.f32 %v6267_v4, %v6298_v37 }
 0x1ff   : > { %v1598_v36 = vpop.f32.mrf.mxu1 }
 0x201   : > { %v5177_v35 = vpop.f32.mrf.mxu1  ;;  %4869 = vmatpush3.xpose.msk.msra.mxu0 %vm1717_vm2, %v1373_v29  ;;  %v6364_v29 = vld [vmem:[%s8130_s9] ss:$0 sm:$0xff] }
 0x202   : > { %4870 = vmatprep.subr.msk.mxu0 %vm1717_vm2, %v1448_v58  ;;  %v1358_v58 = vadd.f32 %v6196_v7, %v6298_v37  ;;  %v1353_v7 = vadd.f32 %v6298_v37, %v6203_v61  ;;  %v1348_v61 = vadd.f32 %v6187_v1, %v6298_v37  ;;  %v1343_v1 = vadd.f32 %v6298_v37, %v6194_v5 }
 0x203   : > { %v1608_v54 = vpop.f32.mrf.mxu1  ;;  %v1338_v5 = vadd.f32 %v6176_v33, %v6298_v37  ;;  %v1584_v33 = vadd.f32 %v6327_v63, %v6364_v29  ;;  %v1574_v63 = vadd.f32 %v6318_v48, %v6364_v29  ;;  %v1564_v48 = vadd.f32 %v6310_v18, %v6364_v29 }
 0x205   : > { %v5180_v26 = vpop.f32.mrf.mxu1  ;;  %4871 = vmatpush3.xpose.msk.msra.mxu0 %vm1717_vm2, %v1368_v20  ;;  %v1433_v20 = vadd.f32 %v6298_v37, %v6272_v14  ;;  %v1428_v14 = vadd.f32 %v6257_v55, %v6298_v37  ;;  %v1423_v55 = vadd.f32 %v6298_v37, %v6262_v60  ;;  %v1418_v60 = vadd.f32 %v6247_v46, %v6298_v37 }
 0x206   : > { %4872 = vmatprep.subr.msk.mxu0 %vm1717_vm2, %v1443_v53  ;;  %v1413_v46 = vadd.f32 %v6298_v37, %v6252_v49 }
 0x207   : > { %v1618_v6 = vpop.f32.mrf.mxu1 }
 0x209   : > { %v5183_v13 = vpop.f32.mrf.mxu1  ;;  %4873 = vmatpush3.xpose.msk.msra.mxu0 %vm1717_vm2, %v1363_v8  ;;  %v1624_v8 = vadd.f32 %v5180_v26, %v6364_v29  ;;  %v1614_v26 = vadd.f32 %v5177_v35, %v6364_v29  ;;  %v1604_v35 = vadd.f32 %v5174_v42, %v6364_v29  ;;  %v1594_v42 = vadd.f32 %v6336_v45, %v6364_v29 }
 0x20a   : > { %v1634_v25 = vadd.f32 %v5183_v13, %v6364_v29  ;;  %4874 = vmatprep.subr.msk.mxu0 %vm1717_vm2, %v1438_v19  ;;  %v1619_v13 = vadd.f32 %v6364_v29, %v1618_v6  ;;  %v1609_v6 = vadd.f32 %v6364_v29, %v1608_v54  ;;  %v1599_v54 = vadd.f32 %v6364_v29, %v1598_v36 }
 0x20b   : > { %v1628_v17 = vpop.f32.mrf.mxu1  ;;  %v1589_v36 = vadd.f32 %v6364_v29, %v6342_v12  ;;  %v1333_v45 = vadd.f32 %v6298_v37, %v6185_v52  ;;  %v1408_v12 = vadd.f32 %v6237_v38, %v6298_v37  ;;  %v1328_v52 = vadd.f32 %v6166_v3, %v6298_v37 }
 0x20c   : > { %v1629_v4 = vadd.f32 %v6364_v29, %v1628_v17  ;;  %2648 = vmatpush1.msra.mxu1 %v1634_v25  ;;  %v1403_v38 = vadd.f32 %v6298_v37, %v6242_v41  ;;  %v1323_v3 = vadd.f32 %v6298_v37, %v6171_v22  ;;  %v1559_v41 = vadd.f32 %v6364_v29, %v6315_v30 }
 0x20d   : > { %v6374_v53 = vpop.f32.mrf.mxu1  ;;  %4875 = vmatpush3.xpose.msk.msra.mxu0 %vm1717_vm2, %v1358_v58  ;;  %2649 = vmatprep.subr.mxu1 %v8194_v31  ;;  %v1097_v30 = vadd.f32 %v6164_v56, %v6183_v44  ;;  %v1107_v44 = vadd.f32 %v6164_v56, %v6192_v51 }
 0x20e   : > { %4876 = vmatprep.subr.msk.mxu0 %vm1717_vm2, %v1433_v20  ;;  %2650 = vmatpush1.msra.mxu1 %v1629_v4 }
 0x20f   : > { %v6382_v19 = vpop.f32.mrf.mxu1  ;;  %2651 = vmatprep.subr.mxu1 %v8194_v31 }
 0x210   : > { %2652 = vmatpush1.msra.mxu1 %v1624_v8 }
 0x211   : > { %v6388_v25 = vpop.f32.mrf.mxu1  ;;  %4877 = vmatpush3.xpose.msk.msra.mxu0 %vm1717_vm2, %v1353_v7  ;;  %2653 = vmatprep.subr.mxu1 %v8194_v31 }
 0x212   : > { %4878 = vmatprep.subr.msk.mxu0 %vm1717_vm2, %v1428_v14  ;;  %2654 = vmatpush1.msra.mxu1 %v1619_v13  ;;  %v1579_v14 = vadd.f32 %v6364_v29, %v6333_v0  ;;  %v1569_v0 = vadd.f32 %v6364_v29, %v6324_v59 }
 0x213   : > { %v6396_v58 = vpop.f32.mrf.mxu1  ;;  %2655 = vmatprep.subr.mxu1 %v8194_v31 }
 0x214   : > { %2656 = vmatpush1.msra.mxu1 %v1614_v26 }
 0x215   : > { %v6402_v17 = vpop.f32.mrf.mxu1  ;;  %4879 = vmatpush3.xpose.msk.msra.mxu0 %vm1717_vm2, %v1348_v61  ;;  %2657 = vmatprep.subr.mxu1 %v8194_v31 }
 0x216   : > { %4880 = vmatprep.subr.msk.mxu0 %vm1717_vm2, %v1423_v55  ;;  %2658 = vmatpush1.msra.mxu1 %v1609_v6 }
 0x217   : > { %v6410_v20 = vpop.f32.mrf.mxu1  ;;  %2659 = vmatprep.subr.mxu1 %v8194_v31 }
 0x218   : > { %2660 = vmatpush1.msra.mxu1 %v1604_v35 }
 0x219   : > { %v6416_v4 = vpop.f32.mrf.mxu1  ;;  %4881 = vmatpush3.xpose.msk.msra.mxu0 %vm1717_vm2, %v1343_v1  ;;  %2661 = vmatprep.subr.mxu1 %v8194_v31 }
 0x21a   : > { %4882 = vmatprep.subr.msk.mxu0 %vm1717_vm2, %v1418_v60  ;;  %2662 = vmatpush1.msra.mxu1 %v1599_v54  ;;  %v1674_v54 = vadd.f32 %v6416_v4, %v6364_v29  ;;  %v1117_v4 = vadd.f32 %v6164_v56, %v6201_v10  ;;  %v1649_v10 = vadd.f32 %v6364_v29, %v6396_v58 }
 0x21b   : > { %v6425_v8 = vpop.f32.mrf.mxu1  ;;  %2663 = vmatprep.subr.mxu1 %v8194_v31  ;;  %v1639_v58 = vadd.f32 %v6364_v29, %v6382_v19 }
 0x21c   : > { %2664 = vmatpush1.msra.mxu1 %v1594_v42  ;;  %v1669_v51 = vadd.f32 %v6364_v29, %v6425_v8  ;;  %v1659_v42 = vadd.f32 %v6364_v29, %v6410_v20 }
 0x21d   : > { %v6432_v7 = vpop.f32.mrf.mxu1  ;;  %4883 = vmatpush3.xpose.msk.msra.mxu0 %vm1717_vm2, %v1338_v5  ;;  %2665 = vmatprep.subr.mxu1 %v8194_v31 }
 0x21e   : > { %4884 = vmatprep.subr.msk.mxu0 %vm1717_vm2, %v1413_v46  ;;  %2666 = vmatpush1.msra.mxu1 %v1589_v36 }
 0x21f   : > { %v1678_v49 = vpop.f32.mrf.mxu1  ;;  %2667 = vmatprep.subr.mxu1 %v8194_v31 }
 0x220   : > { %2668 = vmatpush1.msra.mxu1 %v1584_v33  ;;  %v1679_v60 = vadd.f32 %v6364_v29, %v1678_v49 }
 0x221   : > { %v5201_v13 = vpop.f32.mrf.mxu1  ;;  %4885 = vmatpush3.xpose.msk.msra.mxu0 %vm1717_vm2, %v1333_v45  ;;  %2669 = vmatprep.subr.mxu1 %v8194_v31 }
 0x222   : > { %4886 = vmatprep.subr.msk.mxu0 %vm1717_vm2, %v1408_v12  ;;  %2670 = vmatpush1.msra.mxu1 %v1579_v14 }
 0x223   : > { %v1688_v26 = vpop.f32.mrf.mxu1  ;;  %2671 = vmatprep.subr.mxu1 %v8194_v31 }
 0x224   : > { %2672 = vmatpush1.msra.mxu1 %v1574_v63  ;;  %v1689_v1 = vadd.f32 %v6364_v29, %v1688_v26 }
 0x225   : > { %v5204_v61 = vpop.f32.mrf.mxu1  ;;  %4887 = vmatpush3.xpose.msk.msra.mxu0 %vm1717_vm2, %v1328_v52  ;;  %2673 = vmatprep.subr.mxu1 %v8194_v31 }
 0x226   : > { %4888 = vmatprep.subr.msk.mxu0 %vm1717_vm2, %v1403_v38  ;;  %2674 = vmatpush1.msra.mxu1 %v1569_v0  ;;  %v1704_v37 = vadd.f32 %v5204_v61, %v6364_v29 }
 0x227   : > { %v1698_v55 = vpop.f32.mrf.mxu1  ;;  %2675 = vmatprep.subr.mxu1 %v8194_v31 }
 0x228   : > { %2676 = vmatpush1.msra.mxu1 %v1564_v48  ;;  %v1699_v35 = vadd.f32 %v6364_v29, %v1698_v55 }
 0x229   : > { %v5207_v59 = vpop.f32.mrf.mxu1  ;;  %4889 = vmatpush3.xpose.msk.msra.mxu0 %vm1717_vm2, %v1323_v3  ;;  %2677 = vmatprep.subr.mxu1 %v8194_v31 }
 0x22a   : > { %v1714_v18 = vadd.f32 %v5207_v59, %v6364_v29  ;;  %2678 = vmatpush1.msra.mxu1 %v1559_v41 }
 0x22b   : > { %v1708_v6 = vpop.f32.mrf.mxu1  ;;  %2679 = vmatprep.subr.mxu1 %v8194_v31 }
 0x22c   : > { %v1709_v22 = vadd.f32 %v6364_v29, %v1708_v6  ;;  %4891 = vmatmul.mubr.msk.f32.vlgmr.msra.gmra.mxu0 %vm1717_vm2, %v6174_v24  ;;  %2680 = vmatpush2.msra.mxu1 %v1714_v18  ;;  %v1694_v24 = vadd.f32 %v5201_v13, %v6364_v29 }
 0x22d   : > { %4892 = vmatprep.mubr.msk.f32.mxu0 %vm1717_vm2, %v6169_v11  ;;  %2681 = vmatprep.subr.mxu1 %v8194_v31 }
 0x22e   : > { %2682 = vmatpush2.msra.mxu1 %v1709_v22 }
 0x22f   : > { %2683 = vmatprep.subr.mxu1 %v8194_v31 }
 0x230   : > { %4893 = vmatmul.mubr.msk.f32.gmra.mxu0 %vm1717_vm2, %v6169_v11  ;;  %2684 = vmatpush2.msra.mxu1 %v1704_v37  ;;  %v1684_v11 = vadd.f32 %v6432_v7, %v6364_v29 }
 0x231   : > { %4894 = vmatprep.mubr.msk.f32.mxu0 %vm1717_vm2, %v1097_v30  ;;  %2685 = vmatprep.subr.mxu1 %v8194_v31 }
 0x232   : > { %2686 = vmatpush2.msra.mxu1 %v1699_v35 }
 0x233   : > { %2687 = vmatprep.subr.mxu1 %v8194_v31 }
 0x234   : > { %4895 = vmatmul.mubr.msk.f32.gmra.mxu0 %vm1717_vm2, %v1097_v30  ;;  %2688 = vmatpush2.msra.mxu1 %v1694_v24 }
 0x235   : > { %4896 = vmatprep.mubr.msk.f32.mxu0 %vm1717_vm2, %v6179_v40  ;;  %2689 = vmatprep.subr.mxu1 %v8194_v31 }
 0x236   : > { %2690 = vmatpush2.msra.mxu1 %v1689_v1 }
 0x237   : > { %2691 = vmatprep.subr.mxu1 %v8194_v31 }
 0x238   : > { %4897 = vmatmul.mubr.msk.f32.gmra.mxu0 %vm1717_vm2, %v6179_v40  ;;  %2692 = vmatpush2.msra.mxu1 %v1684_v11  ;;  %v1664_v40 = vadd.f32 %v6402_v17, %v6364_v29  ;;  %v1654_v17 = vadd.f32 %v6388_v25, %v6364_v29  ;;  %v1127_v25 = vadd.f32 %v6164_v56, %v6210_v16 }
 0x239   : > { %4898 = vmatprep.mubr.msk.f32.mxu0 %vm1717_vm2, %v1107_v44  ;;  %2693 = vmatprep.subr.mxu1 %v8194_v31  ;;  %v1137_v16 = vadd.f32 %v6164_v56, %v6219_v23  ;;  %v8197_v23 = vld [vmem:[#allocation9_spill] sm:$0xff] }
 0x23a   : > { %2694 = vmatpush2.msra.mxu1 %v1679_v60 }
 0x23b   : > { %2695 = vmatprep.subr.mxu1 %v8194_v31 }
 0x23c   : > { %4899 = vmatmul.mubr.msk.f32.gmra.mxu0 %vm1717_vm2, %v1107_v44  ;;  %2696 = vmatpush2.msra.mxu1 %v1674_v54 }
 0x23d   : > { %4900 = vmatprep.mubr.msk.f32.mxu0 %vm1717_vm2, %v6190_v2  ;;  %2697 = vmatprep.subr.mxu1 %v8194_v31 }
 0x23e   : > { %2698 = vmatpush2.msra.mxu1 %v1669_v51 }
 0x23f   : > { %2699 = vmatprep.subr.mxu1 %v8194_v31 }
 0x240   : > { %4901 = vmatmul.mubr.msk.f32.gmra.mxu0 %vm1717_vm2, %v6190_v2  ;;  %2700 = vmatpush2.msra.mxu1 %v1664_v40  ;;  %v1644_v2 = vadd.f32 %v6374_v53, %v6364_v29 }
 0x241   : > { %4902 = vmatprep.mubr.msk.f32.mxu0 %vm1717_vm2, %v1117_v4  ;;  %2701 = vmatprep.subr.mxu1 %v8194_v31 }
 0x242   : > { %2702 = vmatpush2.msra.mxu1 %v1659_v42 }
 0x243   : > { %2703 = vmatprep.subr.mxu1 %v8194_v31 }
 0x244   : > { %4903 = vmatmul.mubr.msk.f32.gmra.mxu0 %vm1717_vm2, %v1117_v4  ;;  %2704 = vmatpush2.msra.mxu1 %v1654_v17 }
 0x245   : > { %4904 = vmatprep.mubr.msk.f32.mxu0 %vm1717_vm2, %v6199_v9  ;;  %2705 = vmatprep.subr.mxu1 %v8194_v31 }
 0x246   : > { %2706 = vmatpush2.msra.mxu1 %v1649_v10 }
 0x247   : > { %2707 = vmatprep.subr.mxu1 %v8194_v31 }
 0x248   : > { %4905 = vmatmul.mubr.msk.f32.gmra.mxu0 %vm1717_vm2, %v6199_v9  ;;  %2708 = vmatpush2.msra.mxu1 %v1644_v2  ;;  %v1147_v9 = vadd.f32 %v6164_v56, %v6228_v28  ;;  %v8199_v28 = vld [vmem:[#allocation11_spill] sm:$0xff] }
 0x249   : > { %4906 = vmatprep.mubr.msk.f32.mxu0 %vm1717_vm2, %v1127_v25  ;;  %2709 = vmatprep.subr.mxu1 %v8194_v31 }
 0x24a   : > { %2710 = vmatpush2.msra.mxu1 %v1639_v58 }
 0x24c   : > { %4907 = vmatmul.mubr.msk.f32.gmra.mxu0 %vm1717_vm2, %v1127_v25 }
 0x24d   : > { %4908 = vmatprep.mubr.msk.f32.mxu0 %vm1717_vm2, %v6208_v15 }
 0x250   : > { %4909 = vmatmul.mubr.msk.f32.gmra.mxu0 %vm1717_vm2, %v6208_v15  ;;  %v1157_v15 = vadd.f32 %v6164_v56, %v6235_v34  ;;  %v8195_v56 = vld [vmem:[#allocation7_spill] sm:$0xff]  ;;  %v8201_v34 = vld [vmem:[#allocation13_spill] sm:$0xff] }
 0x251   : > { %4910 = vmatprep.mubr.msk.f32.mxu0 %vm1717_vm2, %v1137_v16 }
 0x254   : > { %4911 = vmatmul.mubr.msk.f32.gmra.mxu0 %vm1717_vm2, %v1137_v16 }
 0x255   : > { %4912 = vmatprep.mubr.msk.f32.mxu0 %vm1717_vm2, %v6217_v21 }
 0x258   : > { %4913 = vmatmul.mubr.msk.f32.gmra.mxu0 %vm1717_vm2, %v6217_v21  ;;  %v8196_v21 = vld [vmem:[#allocation6_spill] sm:$0xff] }
 0x259   : > { %4914 = vmatprep.mubr.msk.f32.mxu0 %vm1717_vm2, %v1147_v9 }
 0x25c   : > { %4915 = vmatmul.mubr.msk.f32.gmra.mxu0 %vm1717_vm2, %v1147_v9 }
 0x25d   : > { %4916 = vmatprep.mubr.msk.f32.mxu0 %vm1717_vm2, %v6226_v27 }
 0x260   : > { %4917 = vmatmul.mubr.msk.f32.gmra.mxu0 %vm1717_vm2, %v6226_v27  ;;  %v8198_v27 = vld [vmem:[#allocation8_spill] sm:$0xff] }
 0x261   : > { %4918 = vmatprep.mubr.msk.f32.mxu0 %vm1717_vm2, %v1157_v15 }
 0x264   : > { %4919 = vmatmul.mubr.msk.f32.gmra.mxu0 %vm1717_vm2, %v1157_v15 }
 0x265   : > { %4920 = vmatprep.mubr.msk.f32.mxu0 %vm1717_vm2, %v6233_v32 }
 0x268   : > { %4921 = vmatmul.mubr.msk.f32.gmra.mxu0 %vm1717_vm2, %v6233_v32  ;;  %v8200_v32 = vld [vmem:[#allocation10_spill] sm:$0xff] }
 0x269   : > { %4922 = vmatprep.mubr.msk.f32.mxu0 %vm1717_vm2, %v6245_v43 }
 0x26c   : > { %4923 = vmatmul.mubr.msk.f32.gmra.mxu0 %vm1717_vm2, %v6245_v43  ;;  %v8203_v43 = vld [vmem:[#allocation15_spill] sm:$0xff] }
 0x26d   : > { %4924 = vmatprep.mubr.msk.f32.mxu0 %vm1717_vm2, %v6240_v39 }
 0x270   : > { %4925 = vmatmul.mubr.msk.f32.gmra.mxu0 %vm1717_vm2, %v6240_v39  ;;  %v8202_v39 = vld [vmem:[#allocation12_spill] sm:$0xff] }
 0x271   : > { %4926 = vmatprep.mubr.msk.f32.mxu0 %vm1717_vm2, %v6255_v50 }
 0x274   : > { %4927 = vmatmul.mubr.msk.f32.gmra.mxu0 %vm1717_vm2, %v6255_v50 }
 0x275   : > { %4928 = vmatprep.mubr.msk.f32.mxu0 %vm1717_vm2, %v6250_v47 }
 0x278   : > { %4929 = vmatmul.mubr.msk.f32.gmra.mxu0 %vm1717_vm2, %v6250_v47  ;;  %v8204_v47 = vld [vmem:[#allocation14_spill] sm:$0xff] }
 0x279   : > { %4930 = vmatprep.mubr.msk.f32.mxu0 %vm1717_vm2, %v6265_v62 }
 0x27c   : > { %4931 = vmatmul.mubr.msk.f32.gmra.mxu0 %vm1717_vm2, %v6265_v62 }
 0x27d   : > { %4932 = vmatprep.mubr.msk.f32.mxu0 %vm1717_vm2, %v6260_v57 }
 0x280   : > { %4933 = vmatmul.mubr.msk.f32.gmra.mxu0 %vm1717_vm2, %v6260_v57 }
 0x281   : > { %4934 = vmatprep.mubr.msk.f32.mxu0 %vm1717_vm2, %v8195_v56 }
 0x284   : > { %4935 = vmatmul.mubr.msk.f32.gmra.mxu0 %vm1717_vm2, %v8195_v56 }
 0x285   : > { %4936 = vmatprep.mubr.msk.f32.mxu0 %vm1717_vm2, %v8196_v21 }
 0x288   : > { %4937 = vmatmul.mubr.msk.f32.gmra.mxu0 %vm1717_vm2, %v8196_v21 }
 0x289   : > { %4938 = vmatprep.mubr.msk.f32.mxu0 %vm1717_vm2, %v8197_v23 }
 0x28c   : > { %4939 = vmatmul.mubr.msk.f32.gmra.mxu0 %vm1717_vm2, %v8197_v23 }
 0x28d   : > { %4940 = vmatprep.mubr.msk.f32.mxu0 %vm1717_vm2, %v8198_v27 }
 0x290   : > { %4941 = vmatmul.mubr.msk.f32.gmra.mxu0 %vm1717_vm2, %v8198_v27 }
 0x291   : > { %4942 = vmatprep.mubr.msk.f32.mxu0 %vm1717_vm2, %v8199_v28 }
 0x294   : > { %4943 = vmatmul.mubr.msk.f32.gmra.mxu0 %vm1717_vm2, %v8199_v28 }
 0x295   : > { %4944 = vmatprep.mubr.msk.f32.mxu0 %vm1717_vm2, %v8200_v32 }
 0x298   : > { %4945 = vmatmul.mubr.msk.f32.gmra.mxu0 %vm1717_vm2, %v8200_v32 }
 0x299   : > { %4946 = vmatprep.mubr.msk.f32.mxu0 %vm1717_vm2, %v8201_v34 }
 0x29c   : > { %4947 = vmatmul.mubr.msk.f32.gmra.mxu0 %vm1717_vm2, %v8201_v34 }
 0x29d   : > { %4948 = vmatprep.mubr.msk.f32.mxu0 %vm1717_vm2, %v8202_v39 }
 0x2a0   : > { %4949 = vmatmul.mubr.msk.f32.gmra.mxu0 %vm1717_vm2, %v8202_v39 }
 0x2a1   : > { %4950 = vmatprep.mubr.msk.f32.mxu0 %vm1717_vm2, %v8203_v43 }
 0x2a4   : > { %4951 = vmatmul.mubr.msk.f32.gmra.mxu0 %vm1717_vm2, %v8203_v43 }
 0x2a5   : > { %4952 = vmatprep.mubr.msk.f32.mxu0 %vm1717_vm2, %v8204_v47 }
 0x2a8   : > { %4953 = vmatmul.mubr.msk.f32.gmra.mxu0 %vm1717_vm2, %v8204_v47 }
 0x2ec   : > { %v6637_v50 = vpop.f32.mrf.mxu0 }
 0x2ee   : > { %v6639_v57 = vpop.f32.mrf.mxu0 }
 0x2ef   : > { %v2167_v62 = vmax.f32 %v6637_v50, %v6639_v57 }
 0x2f0   : > { %v6643_v29 = vpop.f32.mrf.mxu0 }
 0x2f1   : > { %2168 = vmax.xlane.f32.xlu0 %v2167_v62 }
 0x2f2   : > { %v6645_v53 = vpop.f32.mrf.mxu0 }
 0x2f3   : > { %v2170_v19 = vmax.f32 %v6643_v29, %v6645_v53 }
 0x2f4   : > { %v6649_v20 = vpop.f32.mrf.mxu0 }
 0x2f5   : > { %2171 = vmax.xlane.f32.xlu0 %v2170_v19 }
 0x2f6   : > { %v6651_v5 = vpop.f32.mrf.mxu0 }
 0x2f7   : > { %v2173_v8 = vmax.f32 %v6649_v20, %v6651_v5 }
 0x2f8   : > { %v6655_v46 = vpop.f32.mrf.mxu0 }
 0x2f9   : > { %2174 = vmax.xlane.f32.xlu1 %v2173_v8 }
 0x2fa   : > { %v6657_v36 = vpop.f32.mrf.mxu0 }
 0x2fb   : > { %v2176_v7 = vmax.f32 %v6655_v46, %v6657_v36 }
 0x2fc   : > { %v6661_v33 = vpop.f32.mrf.mxu0 }
 0x2fd   : > { %2177 = vmax.xlane.f32.xlu1 %v2176_v7 }
 0x2fe   : > { %v6663_v45 = vpop.f32.mrf.mxu0 }
 0x2ff   : > { %v2179_v49 = vmax.f32 %v6661_v33, %v6663_v45 }
 0x300   : > { %v6667_v12 = vpop.f32.mrf.mxu0 }
 0x301   : > { %2180 = vmax.xlane.f32.xlu0 %v2179_v49 }
 0x302   : > { %v6669_v14 = vpop.f32.mrf.mxu0 }
 0x303   : > { %v2182_v13 = vmax.f32 %v6667_v12, %v6669_v14 }
 0x304   : > { %v6673_v63 = vpop.f32.mrf.mxu0 }
 0x305   : > { %2183 = vmax.xlane.f32.xlu1 %v2182_v13 }
 0x306   : > { %v6675_v52 = vpop.f32.mrf.mxu0 }
 0x307   : > { %v2185_v26 = vmax.f32 %v6673_v63, %v6675_v52 }
 0x308   : > { %v6679_v38 = vpop.f32.mrf.mxu0 }
 0x309   : > { %2186 = vmax.xlane.f32.xlu0 %v2185_v26 }
 0x30a   : > { %v6681_v0 = vpop.f32.mrf.mxu0 }
 0x30b   : > { %v2188_v61 = vmax.f32 %v6679_v38, %v6681_v0 }
 0x30c   : > { %v6685_v48 = vpop.f32.mrf.mxu0 }
 0x30d   : > { %2189 = vmax.xlane.f32.xlu1 %v2188_v61 }
 0x30e   : > { %v6687_v3 = vpop.f32.mrf.mxu0 }
 0x30f   : > { %v2191_v55 = vmax.f32 %v6685_v48, %v6687_v3 }
 0x310   : > { %v6691_v41 = vpop.f32.mrf.mxu0 }
 0x311   : > { %2192 = vmax.xlane.f32.xlu0 %v2191_v55 }
 0x312   : > { %v6693_v59 = vpop.f32.mrf.mxu0 }
 0x313   : > { %v2194_v18 = vmax.f32 %v6691_v41, %v6693_v59 }
 0x314   : > { %v6697_v6 = vpop.f32.mrf.mxu0 }
 0x315   : > { %2195 = vmax.xlane.f32.xlu1 %v2194_v18 }
 0x316   : > { %v6699_v22 = vpop.f32.mrf.mxu0 }
 0x317   : > { %v2197_v37 = vmax.f32 %v6697_v6, %v6699_v22 }
 0x318   : > { %v6703_v30 = vpop.f32.mrf.mxu0 }
 0x319   : > { %2198 = vmax.xlane.f32.xlu0 %v2197_v37 }
 0x31a   : > { %v6705_v35 = vpop.f32.mrf.mxu0 }
 0x31b   : > { %v2200_v24 = vmax.f32 %v6703_v30, %v6705_v35 }
 0x31c   : > { %v6709_v1 = vpop.f32.mrf.mxu0 }
 0x31d   : > { %2201 = vmax.xlane.f32.xlu1 %v2200_v24 }
 0x31e   : > { %v6711_v11 = vpop.f32.mrf.mxu0 }
 0x31f   : > { %v2203_v44 = vmax.f32 %v6709_v1, %v6711_v11 }
 0x320   : > { %v6715_v60 = vpop.f32.mrf.mxu0 }
 0x321   : > { %2204 = vmax.xlane.f32.xlu0 %v2203_v44 }
 0x322   : > { %v6717_v54 = vpop.f32.mrf.mxu0 }
 0x323   : > { %v2206_v51 = vmax.f32 %v6715_v60, %v6717_v54 }
 0x324   : > { %v6721_v40 = vpop.f32.mrf.mxu0 }
 0x325   : > { %2207 = vmax.xlane.f32.xlu1 %v2206_v51 }
 0x326   : > { %v6723_v4 = vpop.f32.mrf.mxu0 }
 0x327   : > { %v2209_v42 = vmax.f32 %v6721_v40, %v6723_v4 }
 0x328   : > { %v6727_v17 = vpop.f32.mrf.mxu0 }
 0x329   : > { %2210 = vmax.xlane.f32.xlu0 %v2209_v42 }
 0x32a   : > { %v6729_v10 = vpop.f32.mrf.mxu0 }
 0x32b   : > { %v2212_v2 = vmax.f32 %v6727_v17, %v6729_v10 }
 0x32c   : > { %v6733_v25 = vpop.f32.mrf.mxu0 }
 0x32d   : > { %2213 = vmax.xlane.f32.xlu1 %v2212_v2 }
 0x32e   : > { %v6735_v58 = vpop.f32.mrf.mxu0 }
 0x32f   : > { %v2215_v16 = vmax.f32 %v6733_v25, %v6735_v58 }
 0x330   : > { %v6739_v9 = vpop.f32.mrf.mxu0 }
 0x331   : > { %2216 = vmax.xlane.f32.xlu0 %v2215_v16 }
 0x332   : > { %v6741_v15 = vpop.f32.mrf.mxu0 }
 0x333   : > { %v2218_v56 = vmax.f32 %v6739_v9, %v6741_v15 }
 0x334   : > { %v6745_v21 = vpop.f32.mrf.mxu0 }
 0x335   : > { %2219 = vmax.xlane.f32.xlu1 %v2218_v56 }
 0x336   : > { %v6747_v23 = vpop.f32.mrf.mxu0 }
 0x337   : > { %v2221_v27 = vmax.f32 %v6745_v21, %v6747_v23 }
 0x338   : > { %v6751_v28 = vpop.f32.mrf.mxu0 }
 0x339   : > { %2222 = vmax.xlane.f32.xlu0 %v2221_v27 }
 0x33a   : > { %v6753_v32 = vpop.f32.mrf.mxu0 }
 0x33b   : > { %v2224_v34 = vmax.f32 %v6751_v28, %v6753_v32 }
 0x33c   : > { %v6757_v39 = vpop.f32.mrf.mxu0 }
 0x33d   : > { %2225 = vmax.xlane.f32.xlu1 %v2224_v34 }
 0x33e   : > { %v6759_v43 = vpop.f32.mrf.mxu0 }
 0x33f   : > { %v2227_v47 = vmax.f32 %v6757_v39, %v6759_v43 }
 0x340   : > { %v6763_v62 = vpop.f32.mrf.mxu0 }
 0x341   : > { %2228 = vmax.xlane.f32.xlu0 %v2227_v47 }
 0x342   : > { %v6765_v19 = vpop.f32.mrf.mxu0 }
 0x343   : > { %v2230_v8 = vmax.f32 %v6763_v62, %v6765_v19 }
 0x344   : > { %v6769_v7 = vpop.f32.mrf.mxu0 }
 0x345   : > { %2231 = vmax.xlane.f32.xlu1 %v2230_v8 }
 0x346   : > { %v6771_v49 = vpop.f32.mrf.mxu0 }
 0x347   : > { %v2233_v13 = vmax.f32 %v6769_v7, %v6771_v49 }
 0x348   : > { %v6775_v26 = vpop.f32.mrf.mxu0 }
 0x349   : > { %2234 = vmax.xlane.f32.xlu0 %v2233_v13 }
 0x34a   : > { %v6777_v61 = vpop.f32.mrf.mxu0 }
 0x34b   : > { %v2236_v55 = vmax.f32 %v6775_v26, %v6777_v61 }
 0x34c   : > { %v6781_v18 = vpop.f32.mrf.mxu0 }
 0x34d   : > { %2237 = vmax.xlane.f32.xlu0 %v2236_v55 }
 0x34e   : > { %v6783_v37 = vpop.f32.mrf.mxu0 }
 0x34f   : > { %v2239_v24 = vmax.f32 %v6781_v18, %v6783_v37 }
 0x350   : > { %v6787_v44 = vpop.f32.mrf.mxu0 }
 0x351   : > { %8205 = vst [vmem:[#allocation7_spill] sm:$0xff] %v6787_v44  ;;  %2240 = vmax.xlane.f32.xlu0 %v2239_v24 }
 0x352   : > { %v6789_v51 = vpop.f32.mrf.mxu0 }
 0x353   : > { %8206 = vst [vmem:[#allocation6_spill] sm:$0xff] %v6789_v51  ;;  %v2242_v42 = vmax.f32 %v6787_v44, %v6789_v51 }
 0x354   : > { %v6793_v2 = vpop.f32.mrf.mxu0 }
 0x355   : > { %8207 = vst [vmem:[#allocation9_spill] sm:$0xff] %v6793_v2  ;;  %2243 = vmax.xlane.f32.xlu0 %v2242_v42 }
 0x356   : > { %v6795_v16 = vpop.f32.mrf.mxu0 }
 0x357   : > { %8208 = vst [vmem:[#allocation8_spill] sm:$0xff] %v6795_v16  ;;  %v2245_v56 = vmax.f32 %v6793_v2, %v6795_v16 }
 0x358   : > { %v6799_v27 = vpop.f32.mrf.mxu0 }
 0x359   : > { %8209 = vst [vmem:[#allocation11_spill] sm:$0xff] %v6799_v27  ;;  %2246 = vmax.xlane.f32.xlu0 %v2245_v56 }
 0x35a   : > { %v6801_v34 = vpop.f32.mrf.mxu0 }
 0x35b   : > { %8210 = vst [vmem:[#allocation10_spill] sm:$0xff] %v6801_v34  ;;  %v2248_v47 = vmax.f32 %v6799_v27, %v6801_v34 }
 0x35c   : > { %v6805_v8 = vpop.f32.mrf.mxu0 }
 0x35d   : > { %8211 = vst [vmem:[#allocation13_spill] sm:$0xff] %v6805_v8  ;;  %2249 = vmax.xlane.f32.xlu0 %v2248_v47 }
 0x35e   : > { %v6807_v13 = vpop.f32.mrf.mxu0 }
 0x35f   : > { %8212 = vst [vmem:[#allocation12_spill] sm:$0xff] %v6807_v13  ;;  %v2251_v55 = vmax.f32 %v6805_v8, %v6807_v13 }
 0x360   : > { %v6811_v24 = vpop.f32.mrf.mxu0 }
 0x361   : > { %8213 = vst [vmem:[#allocation15_spill] sm:$0xff] %v6811_v24  ;;  %2252 = vmax.xlane.f32.xlu0 %v2251_v55 }
 0x362   : > { %v6813_v42 = vpop.f32.mrf.mxu0 }
 0x363   : > { %8214 = vst [vmem:[#allocation14_spill] sm:$0xff] %v6813_v42  ;;  %v2254_v56 = vmax.f32 %v6811_v24, %v6813_v42 }
 0x364   : > { %v6817_v31 = vpop.f32.mrf.mxu0 }
 0x365   : > { %8215 = vst [vmem:[#allocation16_spill] sm:$0xff] %v6817_v31  ;;  %2255 = vmax.xlane.f32.xlu0 %v2254_v56 }
 0x366   : > { %v6819_v34 = vpop.f32.mrf.mxu0 }
 0x367   : > { %8216 = vst [vmem:[#allocation17_spill] sm:$0xff] %v6819_v34  ;;  %v2257_v47 = vmax.f32 %v6817_v31, %v6819_v34 }
 0x368   : > { %v6823_v27 = vpop.f32.mrf.mxu0 }
 0x369   : > { %2258 = vmax.xlane.f32.xlu0 %v2257_v47 }
 0x36a   : > { %v6825_v13 = vpop.f32.mrf.mxu0 }
 0x36b   : > { %8217 = vst [vmem:[#allocation18_spill] sm:$0xff] %v6825_v13  ;;  %v2260_v55 = vmax.f32 %v6823_v27, %v6825_v13 }
 0x36d   : > { %2261 = vmax.xlane.f32.xlu0 %v2260_v55 }
 0x37a   : > { %v2169_v8 = vpop.xlane.xlu0 %2168 }
 0x37b   : > { %v2263_v42 = vsub.f32 %v6637_v50, %v2169_v8  ;;  %v2264_v24 = vsub.f32 %v6639_v57, %v2169_v8 }
 0x37d   : > { %v2327_v56 = vmul.f32 1.442695, %v2263_v42  ;;  %v2329_v16 = vmul.f32 1.442695, %v2264_v24 }
 0x37e   : > { %v2172_v2 = vpop.xlane.xlu0 %2171 }
 0x37f   : > { %5306 = vpow2.f32 %v2327_v56  ;;  %v2265_v34 = vsub.f32 %v6643_v29, %v2172_v2  ;;  %v2266_v31 = vsub.f32 %v6645_v53, %v2172_v2 }
 0x380   : > { %5308 = vpow2.f32 %v2329_v16 }
 0x381   : > { %v2331_v47 = vmul.f32 1.442695, %v2265_v34  ;;  %v2333_v51 = vmul.f32 1.442695, %v2266_v31 }
 0x382   : > { %v2175_v44 = vpop.xlane.xlu1 %2174 }
 0x383   : > { %5310 = vpow2.f32 %v2331_v47  ;;  %v2267_v55 = vsub.f32 %v6649_v20, %v2175_v44  ;;  %v2268_v13 = vsub.f32 %v6651_v5, %v2175_v44 }
 0x384   : > { %5312 = vpow2.f32 %v2333_v51 }
 0x385   : > { %v2335_v50 = vmul.f32 1.442695, %v2267_v55  ;;  %v2337_v57 = vmul.f32 1.442695, %v2268_v13 }
 0x386   : > { %v2178_v8 = vpop.xlane.xlu1 %2177 }
 0x387   : > { %5314 = vpow2.f32 %v2335_v50  ;;  %v2269_v24 = vsub.f32 %v6655_v46, %v2178_v8  ;;  %v2270_v29 = vsub.f32 %v6657_v36, %v2178_v8 }
 0x388   : > { %5316 = vpow2.f32 %v2337_v57 }
 0x389   : > { %v2339_v53 = vmul.f32 1.442695, %v2269_v24  ;;  %v2341_v2 = vmul.f32 1.442695, %v2270_v29 }
 0x38a   : > { %v2181_v16 = vpop.xlane.xlu0 %2180 }
 0x38b   : > { %5318 = vpow2.f32 %v2339_v53  ;;  %v2271_v31 = vsub.f32 %v6661_v33, %v2181_v16  ;;  %v2272_v20 = vsub.f32 %v6663_v45, %v2181_v16 }
 0x38c   : > { %v6839_v34 = vpop.eup %5306  ;;  %5320 = vpow2.f32 %v2341_v2 }
 0x38d   : > { %v6841_v5 = vpop.eup %5308  ;;  %v2343_v44 = vmul.f32 1.442695, %v2271_v31  ;;  %v2345_v51 = vmul.f32 1.442695, %v2272_v20 }
 0x38e   : > { %v2184_v13 = vpop.xlane.xlu1 %2183  ;;  %v2455_v46 = vadd.f32 %v6841_v5, %v6839_v34 }
 0x38f   : > { %5322 = vpow2.f32 %v2343_v44  ;;  %v2273_v36 = vsub.f32 %v6667_v12, %v2184_v13  ;;  %v2274_v42 = vsub.f32 %v6669_v14, %v2184_v13 }
 0x390   : > { %v6847_v56 = vpop.eup %5310  ;;  %5324 = vpow2.f32 %v2345_v51  ;;  %2456 = vadd.xlane.f32.xlu1 %v2455_v46 }
 0x391   : > { %v6849_v33 = vpop.eup %5312  ;;  %v2347_v45 = vmul.f32 1.442695, %v2273_v36  ;;  %v2349_v47 = vmul.f32 1.442695, %v2274_v42 }
 0x392   : > { %v2187_v55 = vpop.xlane.xlu0 %2186  ;;  %v2458_v50 = vadd.f32 %v6849_v33, %v6847_v56 }
 0x393   : > { %5326 = vpow2.f32 %v2347_v45  ;;  %v2275_v57 = vsub.f32 %v6673_v63, %v2187_v55  ;;  %v2276_v8 = vsub.f32 %v6675_v52, %v2187_v55 }
 0x394   : > { %v6855_v12 = vpop.eup %5314  ;;  %5328 = vpow2.f32 %v2349_v47  ;;  %2459 = vadd.xlane.f32.xlu1 %v2458_v50 }
 0x395   : > { %v6857_v14 = vpop.eup %5316  ;;  %v2351_v24 = vmul.f32 1.442695, %v2275_v57  ;;  %v2353_v29 = vmul.f32 1.442695, %v2276_v8 }
 0x396   : > { %v2190_v53 = vpop.xlane.xlu1 %2189  ;;  %v2461_v2 = vadd.f32 %v6857_v14, %v6855_v12 }
 0x397   : > { %5330 = vpow2.f32 %v2351_v24  ;;  %v2277_v16 = vsub.f32 %v6679_v38, %v2190_v53  ;;  %v2278_v31 = vsub.f32 %v6681_v0, %v2190_v53 }
 0x398   : > { %v6863_v63 = vpop.eup %5318  ;;  %5332 = vpow2.f32 %v2353_v29  ;;  %2462 = vadd.xlane.f32.xlu1 %v2461_v2 }
 0x399   : > { %v6865_v52 = vpop.eup %5320  ;;  %v2355_v20 = vmul.f32 1.442695, %v2277_v16  ;;  %v2357_v44 = vmul.f32 1.442695, %v2278_v31 }
 0x39a   : > { %v2193_v51 = vpop.xlane.xlu0 %2192  ;;  %v2464_v13 = vadd.f32 %v6865_v52, %v6863_v63 }
 0x39b   : > { %5334 = vpow2.f32 %v2355_v20  ;;  %v2279_v46 = vsub.f32 %v6685_v48, %v2193_v51  ;;  %v2280_v36 = vsub.f32 %v6687_v3, %v2193_v51 }
 0x39c   : > { %v6871_v38 = vpop.eup %5322  ;;  %5336 = vpow2.f32 %v2357_v44  ;;  %2465 = vadd.xlane.f32.xlu1 %v2464_v13 }
 0x39d   : > { %v6873_v0 = vpop.eup %5324  ;;  %v2359_v42 = vmul.f32 1.442695, %v2279_v46  ;;  %v2361_v45 = vmul.f32 1.442695, %v2280_v36 }
 0x39e   : > { %v2196_v47 = vpop.xlane.xlu1 %2195  ;;  %v2467_v55 = vadd.f32 %v6873_v0, %v6871_v38 }
 0x39f   : > { %5338 = vpow2.f32 %v2359_v42  ;;  %v2281_v50 = vsub.f32 %v6691_v41, %v2196_v47  ;;  %v2282_v57 = vsub.f32 %v6693_v59, %v2196_v47 }
 0x3a0   : > { %v6879_v48 = vpop.eup %5326  ;;  %5340 = vpow2.f32 %v2361_v45  ;;  %2468 = vadd.xlane.f32.xlu1 %v2467_v55 }
 0x3a1   : > { %v6881_v3 = vpop.eup %5328  ;;  %v2363_v8 = vmul.f32 1.442695, %v2281_v50  ;;  %v2365_v24 = vmul.f32 1.442695, %v2282_v57 }
 0x3a2   : > { %v2199_v29 = vpop.xlane.xlu0 %2198  ;;  %v2470_v53 = vadd.f32 %v6881_v3, %v6879_v48 }
 0x3a3   : > { %5342 = vpow2.f32 %v2363_v8  ;;  %v2283_v2 = vsub.f32 %v6697_v6, %v2199_v29  ;;  %v2284_v16 = vsub.f32 %v6699_v22, %v2199_v29 }
 0x3a4   : > { %v6887_v41 = vpop.eup %5330  ;;  %5344 = vpow2.f32 %v2365_v24  ;;  %2471 = vadd.xlane.f32.xlu1 %v2470_v53 }
 0x3a5   : > { %v6889_v59 = vpop.eup %5332  ;;  %v2367_v31 = vmul.f32 1.442695, %v2283_v2  ;;  %v2369_v20 = vmul.f32 1.442695, %v2284_v16 }
 0x3a6   : > { %v2202_v44 = vpop.xlane.xlu1 %2201  ;;  %v2473_v51 = vadd.f32 %v6889_v59, %v6887_v41 }
 0x3a7   : > { %5346 = vpow2.f32 %v2367_v31  ;;  %v2285_v13 = vsub.f32 %v6703_v30, %v2202_v44  ;;  %v2286_v46 = vsub.f32 %v6705_v35, %v2202_v44 }
 0x3a8   : > { %v6895_v6 = vpop.eup %5334  ;;  %5348 = vpow2.f32 %v2369_v20  ;;  %2474 = vadd.xlane.f32.xlu1 %v2473_v51 }
 0x3a9   : > { %v6897_v22 = vpop.eup %5336  ;;  %v2371_v36 = vmul.f32 1.442695, %v2285_v13  ;;  %v2373_v42 = vmul.f32 1.442695, %v2286_v46 }
 0x3aa   : > { %v2205_v45 = vpop.xlane.xlu0 %2204  ;;  %v2476_v47 = vadd.f32 %v6897_v22, %v6895_v6 }
 0x3ab   : > { %5350 = vpow2.f32 %v2371_v36  ;;  %v2287_v55 = vsub.f32 %v6709_v1, %v2205_v45  ;;  %v2288_v50 = vsub.f32 %v6711_v11, %v2205_v45 }
 0x3ac   : > { %v6903_v30 = vpop.eup %5338  ;;  %5352 = vpow2.f32 %v2373_v42  ;;  %2477 = vadd.xlane.f32.xlu1 %v2476_v47 }
 0x3ad   : > { %v6905_v35 = vpop.eup %5340  ;;  %v2375_v57 = vmul.f32 1.442695, %v2287_v55  ;;  %v2377_v8 = vmul.f32 1.442695, %v2288_v50 }
 0x3ae   : > { %v2208_v24 = vpop.xlane.xlu1 %2207  ;;  %v2479_v29 = vadd.f32 %v6905_v35, %v6903_v30 }
 0x3af   : > { %5354 = vpow2.f32 %v2375_v57  ;;  %v2289_v53 = vsub.f32 %v6715_v60, %v2208_v24  ;;  %v2290_v2 = vsub.f32 %v6717_v54, %v2208_v24 }
 0x3b0   : > { %v6911_v1 = vpop.eup %5342  ;;  %5356 = vpow2.f32 %v2377_v8  ;;  %2480 = vadd.xlane.f32.xlu1 %v2479_v29 }
 0x3b1   : > { %v6913_v11 = vpop.eup %5344  ;;  %v2379_v16 = vmul.f32 1.442695, %v2289_v53  ;;  %v2381_v31 = vmul.f32 1.442695, %v2290_v2 }
 0x3b2   : > { %v2211_v20 = vpop.xlane.xlu0 %2210  ;;  %v2482_v44 = vadd.f32 %v6913_v11, %v6911_v1 }
 0x3b3   : > { %5358 = vpow2.f32 %v2379_v16  ;;  %v2291_v51 = vsub.f32 %v6721_v40, %v2211_v20  ;;  %v2292_v13 = vsub.f32 %v6723_v4, %v2211_v20 }
 0x3b4   : > { %v6919_v60 = vpop.eup %5346  ;;  %5360 = vpow2.f32 %v2381_v31  ;;  %2483 = vadd.xlane.f32.xlu1 %v2482_v44 }
 0x3b5   : > { %v6921_v54 = vpop.eup %5348  ;;  %v2383_v46 = vmul.f32 1.442695, %v2291_v51  ;;  %v2385_v36 = vmul.f32 1.442695, %v2292_v13 }
 0x3b6   : > { %v2214_v42 = vpop.xlane.xlu1 %2213  ;;  %v2485_v45 = vadd.f32 %v6921_v54, %v6919_v60 }
 0x3b7   : > { %5362 = vpow2.f32 %v2383_v46  ;;  %v2293_v47 = vsub.f32 %v6727_v17, %v2214_v42  ;;  %v2294_v55 = vsub.f32 %v6729_v10, %v2214_v42 }
 0x3b8   : > { %v6927_v40 = vpop.eup %5350  ;;  %5364 = vpow2.f32 %v2385_v36  ;;  %2486 = vadd.xlane.f32.xlu0 %v2485_v45 }
 0x3b9   : > { %v6929_v4 = vpop.eup %5352  ;;  %v2387_v50 = vmul.f32 1.442695, %v2293_v47  ;;  %v2389_v57 = vmul.f32 1.442695, %v2294_v55 }
 0x3ba   : > { %v2217_v8 = vpop.xlane.xlu0 %2216  ;;  %v2488_v24 = vadd.f32 %v6929_v4, %v6927_v40 }
 0x3bb   : > { %5366 = vpow2.f32 %v2387_v50  ;;  %v2295_v29 = vsub.f32 %v6733_v25, %v2217_v8  ;;  %v2296_v53 = vsub.f32 %v6735_v58, %v2217_v8 }
 0x3bc   : > { %v6935_v17 = vpop.eup %5354  ;;  %5368 = vpow2.f32 %v2389_v57  ;;  %2489 = vadd.xlane.f32.xlu1 %v2488_v24 }
 0x3bd   : > { %v6937_v10 = vpop.eup %5356  ;;  %v2391_v2 = vmul.f32 1.442695, %v2295_v29  ;;  %v2393_v16 = vmul.f32 1.442695, %v2296_v53 }
 0x3be   : > { %v2220_v31 = vpop.xlane.xlu1 %2219  ;;  %v2491_v20 = vadd.f32 %v6937_v10, %v6935_v17 }
 0x3bf   : > { %5370 = vpow2.f32 %v2391_v2  ;;  %v2297_v44 = vsub.f32 %v6739_v9, %v2220_v31  ;;  %v2298_v51 = vsub.f32 %v6741_v15, %v2220_v31 }
 0x3c0   : > { %v6943_v25 = vpop.eup %5358  ;;  %5372 = vpow2.f32 %v2393_v16  ;;  %2492 = vadd.xlane.f32.xlu0 %v2491_v20 }
 0x3c1   : > { %v6945_v58 = vpop.eup %5360  ;;  %v2395_v13 = vmul.f32 1.442695, %v2297_v44  ;;  %v2397_v46 = vmul.f32 1.442695, %v2298_v51 }
 0x3c2   : > { %v2223_v36 = vpop.xlane.xlu0 %2222  ;;  %v2494_v42 = vadd.f32 %v6945_v58, %v6943_v25 }
 0x3c3   : > { %5374 = vpow2.f32 %v2395_v13  ;;  %v2299_v45 = vsub.f32 %v6745_v21, %v2223_v36  ;;  %v2300_v47 = vsub.f32 %v6747_v23, %v2223_v36 }
 0x3c4   : > { %v6951_v9 = vpop.eup %5362  ;;  %5376 = vpow2.f32 %v2397_v46  ;;  %2495 = vadd.xlane.f32.xlu1 %v2494_v42 }
 0x3c5   : > { %v6953_v15 = vpop.eup %5364  ;;  %v2399_v55 = vmul.f32 1.442695, %v2299_v45  ;;  %v2401_v50 = vmul.f32 1.442695, %v2300_v47 }
 0x3c6   : > { %v2226_v57 = vpop.xlane.xlu1 %2225  ;;  %v2497_v8 = vadd.f32 %v6953_v15, %v6951_v9 }
 0x3c7   : > { %5378 = vpow2.f32 %v2399_v55  ;;  %v2301_v24 = vsub.f32 %v6751_v28, %v2226_v57  ;;  %v2302_v29 = vsub.f32 %v6753_v32, %v2226_v57 }
 0x3c8   : > { %v6959_v21 = vpop.eup %5366  ;;  %5380 = vpow2.f32 %v2401_v50  ;;  %2498 = vadd.xlane.f32.xlu0 %v2497_v8 }
 0x3c9   : > { %v6961_v23 = vpop.eup %5368  ;;  %v2403_v53 = vmul.f32 1.442695, %v2301_v24  ;;  %v2405_v2 = vmul.f32 1.442695, %v2302_v29 }
 0x3ca   : > { %v2229_v16 = vpop.xlane.xlu0 %2228  ;;  %v2500_v31 = vadd.f32 %v6961_v23, %v6959_v21 }
 0x3cb   : > { %5382 = vpow2.f32 %v2403_v53  ;;  %v2303_v20 = vsub.f32 %v6757_v39, %v2229_v16  ;;  %v2304_v44 = vsub.f32 %v6759_v43, %v2229_v16 }
 0x3cc   : > { %v6967_v28 = vpop.eup %5370  ;;  %5384 = vpow2.f32 %v2405_v2  ;;  %2501 = vadd.xlane.f32.xlu1 %v2500_v31 }
 0x3cd   : > { %v6969_v32 = vpop.eup %5372  ;;  %v2407_v51 = vmul.f32 1.442695, %v2303_v20  ;;  %v2409_v13 = vmul.f32 1.442695, %v2304_v44 }
 0x3ce   : > { %v2232_v46 = vpop.xlane.xlu1 %2231  ;;  %v2503_v36 = vadd.f32 %v6969_v32, %v6967_v28 }
 0x3cf   : > { %5386 = vpow2.f32 %v2407_v51  ;;  %v2305_v42 = vsub.f32 %v6763_v62, %v2232_v46  ;;  %v2306_v45 = vsub.f32 %v6765_v19, %v2232_v46 }
 0x3d0   : > { %v6975_v39 = vpop.eup %5374  ;;  %5388 = vpow2.f32 %v2409_v13  ;;  %2504 = vadd.xlane.f32.xlu0 %v2503_v36 }
 0x3d1   : > { %v6977_v43 = vpop.eup %5376  ;;  %v2411_v47 = vmul.f32 1.442695, %v2305_v42  ;;  %v2413_v55 = vmul.f32 1.442695, %v2306_v45 }
 0x3d2   : > { %v2235_v50 = vpop.xlane.xlu0 %2234  ;;  %v2506_v57 = vadd.f32 %v6977_v43, %v6975_v39 }
 0x3d3   : > { %5390 = vpow2.f32 %v2411_v47  ;;  %v2307_v8 = vsub.f32 %v6769_v7, %v2235_v50  ;;  %v2308_v24 = vsub.f32 %v6771_v49, %v2235_v50 }
 0x3d4   : > { %v6983_v62 = vpop.eup %5378  ;;  %5392 = vpow2.f32 %v2413_v55  ;;  %2507 = vadd.xlane.f32.xlu1 %v2506_v57  ;;  %v8218_v57 = vld [vmem:[#allocation7_spill] sm:$0xff] }
 0x3d5   : > { %v6985_v19 = vpop.eup %5380  ;;  %v2415_v29 = vmul.f32 1.442695, %v2307_v8  ;;  %v2417_v53 = vmul.f32 1.442695, %v2308_v24  ;;  %v8219_v24 = vld [vmem:[#allocation6_spill] sm:$0xff] }
 0x3d6   : > { %v2238_v2 = vpop.xlane.xlu0 %2237  ;;  %v2509_v16 = vadd.f32 %v6985_v19, %v6983_v62 }
 0x3d7   : > { %5394 = vpow2.f32 %v2415_v29  ;;  %v2309_v31 = vsub.f32 %v6775_v26, %v2238_v2  ;;  %v2310_v20 = vsub.f32 %v6777_v61, %v2238_v2 }
 0x3d8   : > { %v6991_v7 = vpop.eup %5382  ;;  %5396 = vpow2.f32 %v2417_v53  ;;  %2510 = vadd.xlane.f32.xlu0 %v2509_v16 }
 0x3d9   : > { %v6993_v49 = vpop.eup %5384  ;;  %v2419_v44 = vmul.f32 1.442695, %v2309_v31  ;;  %v2421_v51 = vmul.f32 1.442695, %v2310_v20  ;;  %v8220_v20 = vld [vmem:[#allocation9_spill] sm:$0xff] }
 0x3da   : > { %v2241_v13 = vpop.xlane.xlu0 %2240  ;;  %v2512_v46 = vadd.f32 %v6993_v49, %v6991_v7 }
 0x3db   : > { %5398 = vpow2.f32 %v2419_v44  ;;  %v2311_v36 = vsub.f32 %v6781_v18, %v2241_v13  ;;  %v2312_v42 = vsub.f32 %v6783_v37, %v2241_v13 }
 0x3dc   : > { %v6999_v26 = vpop.eup %5386  ;;  %5400 = vpow2.f32 %v2421_v51  ;;  %2513 = vadd.xlane.f32.xlu1 %v2512_v46  ;;  %v8221_v51 = vld [vmem:[#allocation8_spill] sm:$0xff] }
 0x3dd   : > { %v7001_v61 = vpop.eup %5388  ;;  %v2423_v45 = vmul.f32 1.442695, %v2311_v36  ;;  %v2425_v47 = vmul.f32 1.442695, %v2312_v42 }
 0x3de   : > { %v2244_v55 = vpop.xlane.xlu0 %2243  ;;  %v2515_v50 = vadd.f32 %v7001_v61, %v6999_v26 }
 0x3df   : > { %5402 = vpow2.f32 %v2423_v45  ;;  %v2313_v8 = vsub.f32 %v8218_v57, %v2244_v55  ;;  %v2314_v29 = vsub.f32 %v8219_v24, %v2244_v55 }
 0x3e0   : > { %v7007_v18 = vpop.eup %5390  ;;  %5404 = vpow2.f32 %v2425_v47  ;;  %2516 = vadd.xlane.f32.xlu0 %v2515_v50  ;;  %v8222_v50 = vld [vmem:[#allocation11_spill] sm:$0xff] }
 0x3e1   : > { %v7009_v37 = vpop.eup %5392  ;;  %v2427_v53 = vmul.f32 1.442695, %v2313_v8  ;;  %v2429_v2 = vmul.f32 1.442695, %v2314_v29  ;;  %v8223_v8 = vld [vmem:[#allocation10_spill] sm:$0xff] }
 0x3e2   : > { %v2247_v16 = vpop.xlane.xlu0 %2246  ;;  %v2518_v31 = vadd.f32 %v7009_v37, %v7007_v18 }
 0x3e3   : > { %5406 = vpow2.f32 %v2427_v53  ;;  %v2315_v44 = vsub.f32 %v8220_v20, %v2247_v16  ;;  %v2316_v13 = vsub.f32 %v8221_v51, %v2247_v16 }
 0x3e4   : > { %v7015_v46 = vpop.eup %5394  ;;  %5408 = vpow2.f32 %v2429_v2  ;;  %2519 = vadd.xlane.f32.xlu1 %v2518_v31 }
 0x3e5   : > { %v7017_v36 = vpop.eup %5396  ;;  %v2431_v42 = vmul.f32 1.442695, %v2315_v44  ;;  %v2433_v45 = vmul.f32 1.442695, %v2316_v13  ;;  %v8226_v44 = vld [vmem:[#allocation13_spill] sm:$0xff]  ;;  %v8227_v13 = vld [vmem:[#allocation12_spill] sm:$0xff] }
 0x3e6   : > { %v2250_v47 = vpop.xlane.xlu0 %2249  ;;  %v2521_v55 = vadd.f32 %v7017_v36, %v7015_v46 }
 0x3e7   : > { %5410 = vpow2.f32 %v2431_v42  ;;  %v2317_v57 = vsub.f32 %v8222_v50, %v2250_v47  ;;  %v2318_v24 = vsub.f32 %v8223_v8, %v2250_v47 }
 0x3e8   : > { %v7023_v29 = vpop.eup %5398  ;;  %5412 = vpow2.f32 %v2433_v45  ;;  %2522 = vadd.xlane.f32.xlu0 %v2521_v55 }
 0x3e9   : > { %8224 = vst [vmem:[#allocation7_spill] sm:$0xff] %v7023_v29  ;;  %v7025_v53 = vpop.eup %5400  ;;  %v2435_v2 = vmul.f32 1.442695, %v2317_v57  ;;  %v2437_v16 = vmul.f32 1.442695, %v2318_v24  ;;  %v8230_v24 = vld [vmem:[#allocation15_spill] sm:$0xff] }
 0x3ea   : > { %8225 = vst [vmem:[#allocation6_spill] sm:$0xff] %v7025_v53  ;;  %v2253_v31 = vpop.xlane.xlu0 %2252  ;;  %v2524_v20 = vadd.f32 %v7025_v53, %v7023_v29 }
 0x3eb   : > { %5414 = vpow2.f32 %v2435_v2  ;;  %v2319_v51 = vsub.f32 %v8226_v44, %v2253_v31  ;;  %v2320_v42 = vsub.f32 %v8227_v13, %v2253_v31  ;;  %v8231_v2 = vld [vmem:[#allocation14_spill] sm:$0xff] }
 0x3ec   : > { %v7031_v50 = vpop.eup %5402  ;;  %5416 = vpow2.f32 %v2437_v16  ;;  %2525 = vadd.xlane.f32.xlu1 %v2524_v20 }
 0x3ed   : > { %8228 = vst [vmem:[#allocation9_spill] sm:$0xff] %v7031_v50  ;;  %v7033_v47 = vpop.eup %5404  ;;  %v2439_v45 = vmul.f32 1.442695, %v2319_v51  ;;  %v2441_v55 = vmul.f32 1.442695, %v2320_v42  ;;  %v8233_v42 = vld [vmem:[#allocation16_spill] sm:$0xff] }
 0x3ee   : > { %8229 = vst [vmem:[#allocation8_spill] sm:$0xff] %v7033_v47  ;;  %v2256_v8 = vpop.xlane.xlu0 %2255  ;;  %v2527_v57 = vadd.f32 %v7033_v47, %v7031_v50 }
 0x3ef   : > { %5418 = vpow2.f32 %v2439_v45  ;;  %v2321_v29 = vsub.f32 %v8230_v24, %v2256_v8  ;;  %v2322_v53 = vsub.f32 %v8231_v2, %v2256_v8  ;;  %v8234_v45 = vld [vmem:[#allocation17_spill] sm:$0xff] }
 0x3f0   : > { %v7039_v44 = vpop.eup %5406  ;;  %5420 = vpow2.f32 %v2441_v55  ;;  %2528 = vadd.xlane.f32.xlu0 %v2527_v57 }
 0x3f1   : > { %8232 = vst [vmem:[#allocation11_spill] sm:$0xff] %v7039_v44  ;;  %v7041_v31 = vpop.eup %5408  ;;  %v2443_v16 = vmul.f32 1.442695, %v2321_v29  ;;  %v2445_v20 = vmul.f32 1.442695, %v2322_v53 }
 0x3f2   : > { %v2259_v13 = vpop.xlane.xlu0 %2258  ;;  %v2530_v51 = vadd.f32 %v7041_v31, %v7039_v44 }
 0x3f3   : > { %5422 = vpow2.f32 %v2443_v16  ;;  %v2323_v50 = vsub.f32 %v8233_v42, %v2259_v13  ;;  %v2324_v47 = vsub.f32 %v8234_v45, %v2259_v13  ;;  %v8235_v16 = vld [vmem:[#allocation18_spill] sm:$0xff] }
 0x3f4   : > { %v7047_v24 = vpop.eup %5410  ;;  %5424 = vpow2.f32 %v2445_v20  ;;  %2531 = vadd.xlane.f32.xlu1 %v2530_v51 }
 0x3f5   : > { %v7049_v8 = vpop.eup %5412  ;;  %v2447_v55 = vmul.f32 1.442695, %v2323_v50  ;;  %v2449_v57 = vmul.f32 1.442695, %v2324_v47 }
 0x3f6   : > { %v2262_v2 = vpop.xlane.xlu0 %2261  ;;  %v2533_v29 = vadd.f32 %v7049_v8, %v7047_v24 }
 0x3f7   : > { %5426 = vpow2.f32 %v2447_v55  ;;  %v2325_v53 = vsub.f32 %v6823_v27, %v2262_v2  ;;  %v2326_v44 = vsub.f32 %v8235_v16, %v2262_v2 }
 0x3f8   : > { %v7055_v42 = vpop.eup %5414  ;;  %5428 = vpow2.f32 %v2449_v57  ;;  %2534 = vadd.xlane.f32.xlu0 %v2533_v29 }
 0x3f9   : > { %v7057_v13 = vpop.eup %5416  ;;  %v2451_v20 = vmul.f32 1.442695, %v2325_v53  ;;  %v2453_v51 = vmul.f32 1.442695, %v2326_v44 }
 0x3fa   : > { %v2536_v50 = vadd.f32 %v7057_v13, %v7055_v42 }
 0x3fb   : > { %5430 = vpow2.f32 %v2451_v20 }
 0x3fc   : > { %v7061_v47 = vpop.eup %5418  ;;  %5432 = vpow2.f32 %v2453_v51  ;;  %2537 = vadd.xlane.f32.xlu1 %v2536_v50 }
 0x3fd   : > { %v7063_v45 = vpop.eup %5420 }
 0x3fe   : > { %v2539_v27 = vadd.f32 %v7063_v45, %v7061_v47 }
 0x400   : > { %v7067_v55 = vpop.eup %5422  ;;  %2540 = vadd.xlane.f32.xlu0 %v2539_v27 }
 0x401   : > { %8236 = vst [vmem:[#allocation10_spill] sm:$0xff] %v7067_v55  ;;  %v7069_v57 = vpop.eup %5424 }
 0x402   : > { %8237 = vst [vmem:[#allocation13_spill] sm:$0xff] %v7069_v57  ;;  %v2542_v44 = vadd.f32 %v7069_v57, %v7067_v55 }
 0x404   : > { %v7073_v2 = vpop.eup %5426  ;;  %2543 = vadd.xlane.f32.xlu1 %v2542_v44 }
 0x405   : > { %8238 = vst [vmem:[#allocation12_spill] sm:$0xff] %v7073_v2  ;;  %v7075_v29 = vpop.eup %5428 }
 0x406   : > { %8239 = vst [vmem:[#allocation15_spill] sm:$0xff] %v7075_v29  ;;  %v2545_v53 = vadd.f32 %v7075_v29, %v7073_v2  ;;  %v3976_v2 = vld [vmem:[%s8133_s12 + $0x18] sm:$0xff] }
 0x407   : > { %5208 = vmatprep.subr.mxu0 %v3976_v2 }
 0x408   : > { %v7079_v16 = vpop.eup %5430  ;;  %2546 = vadd.xlane.f32.xlu0 %v2545_v53  ;;  %v3975_v53 = vld [vmem:[%s8133_s12 + $0x10] sm:$0xff]  ;;  %5209 = vmatpush3.msra.mxu0 %v3976_v2 }
 0x409   : > { %8240 = vst [vmem:[#allocation14_spill] sm:$0xff] %v7079_v16  ;;  %v7081_v20 = vpop.eup %5432  ;;  %5210 = vmatprep.subr.mxu0 %v3975_v53 }
 0x40a   : > { %8241 = vst [vmem:[#allocation16_spill] sm:$0xff] %v7081_v20  ;;  %v2548_v51 = vadd.f32 %v7081_v20, %v7079_v16  ;;  %5211 = vmatpush3.msra.mxu0 %v3975_v53 }
 0x40c   : > { %2549 = vadd.xlane.f32.xlu1 %v2548_v51 }
 0x419   : > { %v2457_v50 = vpop.xlane.xlu1 %2456 }
 0x41a   : > { %5434 = vrcp.f32 %v2457_v50 }
 0x41d   : > { %v2460_v27 = vpop.xlane.xlu1 %2459 }
 0x41e   : > { %5436 = vrcp.f32 %v2460_v27 }
 0x421   : > { %v2463_v55 = vpop.xlane.xlu1 %2462 }
 0x422   : > { %5438 = vrcp.f32 %v2463_v55 }
 0x425   : > { %v2466_v44 = vpop.xlane.xlu1 %2465 }
 0x426   : > { %5440 = vrcp.f32 %v2466_v44 }
 0x427   : > { %v5435_v57 = vpop.eup %5434 }
 0x428   : > { %v2584_v16 = vmul.f32 %v5435_v57, %v6841_v5  ;;  %v2583_v51 = vmul.f32 %v5435_v57, %v6839_v34 }
 0x429   : > { %v2469_v50 = vpop.xlane.xlu1 %2468 }
 0x42a   : > { %5442 = vrcp.f32 %v2469_v50  ;;  %2711 = vmatprep.mubr.f32.mxu1 %v2584_v16 }
 0x42b   : > { %v5437_v55 = vpop.eup %5436  ;;  %2712 = vmatmul.mubr.f32.vlgmr.msra.gmra.mxu1 %v2583_v51 }
 0x42c   : > { %v2586_v27 = vmul.f32 %v5437_v55, %v6849_v33  ;;  %v2585_v44 = vmul.f32 %v5437_v55, %v6847_v56 }
 0x42d   : > { %v2472_v20 = vpop.xlane.xlu1 %2471 }
 0x42e   : > { %5444 = vrcp.f32 %v2472_v20  ;;  %2716 = vmatprep.mubr.f32.mxu1 %v2586_v27 }
 0x42f   : > { %v5439_v29 = vpop.eup %5438  ;;  %2717 = vmatmul.mubr.f32.gmra.mxu1 %v2585_v44 }
 0x430   : > { %v2588_v34 = vmul.f32 %v5439_v29, %v6857_v14  ;;  %v2587_v5 = vmul.f32 %v5439_v29, %v6855_v12 }
 0x431   : > { %v2475_v57 = vpop.xlane.xlu1 %2474 }
 0x432   : > { %5446 = vrcp.f32 %v2475_v57  ;;  %2721 = vmatprep.mubr.f32.mxu1 %v2588_v34 }
 0x433   : > { %v5441_v2 = vpop.eup %5440  ;;  %2722 = vmatmul.mubr.f32.gmra.mxu1 %v2587_v5 }
 0x434   : > { %v2590_v16 = vmul.f32 %v5441_v2, %v6865_v52  ;;  %v2589_v33 = vmul.f32 %v5441_v2, %v6863_v63 }
 0x435   : > { %v2478_v53 = vpop.xlane.xlu1 %2477 }
 0x436   : > { %5448 = vrcp.f32 %v2478_v53  ;;  %2726 = vmatprep.mubr.f32.mxu1 %v2590_v16 }
 0x437   : > { %v5443_v56 = vpop.eup %5442  ;;  %2727 = vmatmul.mubr.f32.gmra.mxu1 %v2589_v33 }
 0x438   : > { %v2592_v20 = vmul.f32 %v5443_v56, %v6873_v0  ;;  %v2591_v14 = vmul.f32 %v5443_v56, %v6871_v38 }
 0x439   : > { %v2481_v51 = vpop.xlane.xlu1 %2480 }
 0x43a   : > { %5450 = vrcp.f32 %v2481_v51  ;;  %2731 = vmatprep.mubr.f32.mxu1 %v2592_v20 }
 0x43b   : > { %v5445_v12 = vpop.eup %5444  ;;  %2732 = vmatmul.mubr.f32.gmra.mxu1 %v2591_v14 }
 0x43c   : > { %v2594_v29 = vmul.f32 %v5445_v12, %v6881_v3  ;;  %v2593_v52 = vmul.f32 %v5445_v12, %v6879_v48 }
 0x43d   : > { %v2484_v50 = vpop.xlane.xlu1 %2483 }
 0x43e   : > { %5452 = vrcp.f32 %v2484_v50  ;;  %2736 = vmatprep.mubr.f32.mxu1 %v2594_v29 }
 0x43f   : > { %v5447_v63 = vpop.eup %5446  ;;  %2737 = vmatmul.mubr.f32.gmra.mxu1 %v2593_v52 }
 0x440   : > { %v2596_v55 = vmul.f32 %v5447_v63, %v6889_v59  ;;  %v2595_v0 = vmul.f32 %v5447_v63, %v6887_v41 }
 0x441   : > { %v2487_v27 = vpop.xlane.xlu0 %2486 }
 0x442   : > { %5454 = vrcp.f32 %v2487_v27  ;;  %2741 = vmatprep.mubr.f32.mxu1 %v2596_v55 }
 0x443   : > { %v5449_v38 = vpop.eup %5448  ;;  %2742 = vmatmul.mubr.f32.gmra.mxu1 %v2595_v0 }
 0x444   : > { %v2598_v44 = vmul.f32 %v5449_v38, %v6897_v22  ;;  %v2597_v3 = vmul.f32 %v5449_v38, %v6895_v6 }
 0x445   : > { %v2490_v34 = vpop.xlane.xlu1 %2489 }
 0x446   : > { %5456 = vrcp.f32 %v2490_v34  ;;  %2746 = vmatprep.mubr.f32.mxu1 %v2598_v44 }
 0x447   : > { %v5451_v48 = vpop.eup %5450  ;;  %2747 = vmatmul.mubr.f32.gmra.mxu1 %v2597_v3 }
 0x448   : > { %v2600_v5 = vmul.f32 %v5451_v48, %v6905_v35  ;;  %v2599_v59 = vmul.f32 %v5451_v48, %v6903_v30 }
 0x449   : > { %v2493_v57 = vpop.xlane.xlu0 %2492 }
 0x44a   : > { %5458 = vrcp.f32 %v2493_v57  ;;  %2751 = vmatprep.mubr.f32.mxu1 %v2600_v5 }
 0x44b   : > { %v5453_v41 = vpop.eup %5452  ;;  %2752 = vmatmul.mubr.f32.gmra.mxu1 %v2599_v59 }
 0x44c   : > { %v2602_v2 = vmul.f32 %v5453_v41, %v6913_v11  ;;  %v2601_v22 = vmul.f32 %v5453_v41, %v6911_v1 }
 0x44d   : > { %v2496_v16 = vpop.xlane.xlu1 %2495 }
 0x44e   : > { %5460 = vrcp.f32 %v2496_v16  ;;  %2756 = vmatprep.mubr.f32.mxu1 %v2602_v2 }
 0x44f   : > { %v5455_v6 = vpop.eup %5454  ;;  %2757 = vmatmul.mubr.f32.gmra.mxu1 %v2601_v22 }
 0x450   : > { %v2604_v33 = vmul.f32 %v5455_v6, %v6921_v54  ;;  %v2603_v35 = vmul.f32 %v5455_v6, %v6919_v60 }
 0x451   : > { %v2499_v53 = vpop.xlane.xlu0 %2498 }
 0x452   : > { %5462 = vrcp.f32 %v2499_v53  ;;  %2761 = vmatprep.mubr.f32.mxu1 %v2604_v33 }
 0x453   : > { %v5457_v30 = vpop.eup %5456  ;;  %2762 = vmatmul.mubr.f32.gmra.mxu1 %v2603_v35  ;;  %v8243_v35 = vld [vmem:[#allocation6_spill] sm:$0xff] }
 0x454   : > { %v2606_v56 = vmul.f32 %v5457_v30, %v6929_v4  ;;  %v2605_v11 = vmul.f32 %v5457_v30, %v6927_v40  ;;  %v8244_v30 = vld [vmem:[#allocation7_spill] sm:$0xff] }
 0x455   : > { %v2502_v20 = vpop.xlane.xlu1 %2501 }
 0x456   : > { %5464 = vrcp.f32 %v2502_v20  ;;  %2766 = vmatprep.mubr.f32.mxu1 %v2606_v56 }
 0x457   : > { %v5459_v1 = vpop.eup %5458  ;;  %2767 = vmatmul.mubr.f32.gmra.mxu1 %v2605_v11  ;;  %v8245_v11 = vld [vmem:[#allocation8_spill] sm:$0xff] }
 0x458   : > { %v2608_v14 = vmul.f32 %v5459_v1, %v6937_v10  ;;  %v2607_v54 = vmul.f32 %v5459_v1, %v6935_v17  ;;  %v8246_v1 = vld [vmem:[#allocation9_spill] sm:$0xff] }
 0x459   : > { %v2505_v51 = vpop.xlane.xlu0 %2504 }
 0x45a   : > { %5466 = vrcp.f32 %v2505_v51  ;;  %2771 = vmatprep.mubr.f32.mxu1 %v2608_v14  ;;  %v8247_v51 = vld [vmem:[#allocation11_spill] sm:$0xff] }
 0x45b   : > { %v5461_v60 = vpop.eup %5460  ;;  %2772 = vmatmul.mubr.f32.gmra.mxu1 %v2607_v54 }
 0x45c   : > { %v2610_v12 = vmul.f32 %v5461_v60, %v6945_v58  ;;  %v2609_v4 = vmul.f32 %v5461_v60, %v6943_v25 }
 0x45d   : > { %v2508_v29 = vpop.xlane.xlu1 %2507 }
 0x45e   : > { %5468 = vrcp.f32 %v2508_v29  ;;  %2776 = vmatprep.mubr.f32.mxu1 %v2610_v12  ;;  %v3973_v12 = vld [vmem:[%s8133_s12] sm:$0xff] }
 0x45f   : > { %v5463_v40 = vpop.eup %5462  ;;  %2777 = vmatmul.mubr.f32.gmra.mxu1 %v2609_v4 }
 0x460   : > { %v2612_v52 = vmul.f32 %v5463_v40, %v6953_v15  ;;  %v2611_v10 = vmul.f32 %v5463_v40, %v6951_v9 }
 0x461   : > { %v2511_v50 = vpop.xlane.xlu0 %2510 }
 0x462   : > { %5470 = vrcp.f32 %v2511_v50  ;;  %2781 = vmatprep.mubr.f32.mxu1 %v2612_v52 }
 0x463   : > { %v5465_v17 = vpop.eup %5464  ;;  %2782 = vmatmul.mubr.f32.gmra.mxu1 %v2611_v10 }
 0x464   : > { %v2614_v63 = vmul.f32 %v5465_v17, %v6961_v23  ;;  %v2613_v58 = vmul.f32 %v5465_v17, %v6959_v21  ;;  %v8242_v21 = vmov 0.0  }
 0x465   : > { %v2514_v55 = vpop.xlane.xlu1 %2513  ;;  %2878 = vst.msk [vmem:[#allocation2 + $0x28] sm:$0x3] %vm2874_vm3, %v8242_v21  ;;  %2875 = vst.msk [vmem:[#allocation2 + $0x10] sm:$0x3] %vm2874_vm3, %v8242_v21 }
 0x466   : > { %5472 = vrcp.f32 %v2514_v55  ;;  %2786 = vmatprep.mubr.f32.mxu1 %v2614_v63  ;;  %2881 = vst.msk [vmem:[#allocation2 + $0x40] sm:$0x3] %vm2874_vm3, %v8242_v21  ;;  %2884 = vst.msk [vmem:[#allocation2 + $0x58] sm:$0x3] %vm2874_vm3, %v8242_v21 }
 0x467   : > { %v5467_v25 = vpop.eup %5466  ;;  %2787 = vmatmul.mubr.f32.gmra.mxu1 %v2613_v58  ;;  %2887 = vst.msk [vmem:[#allocation2 + $0x70] sm:$0x3] %vm2874_vm3, %v8242_v21  ;;  %2890 = vst.msk [vmem:[#allocation2 + $0x88] sm:$0x3] %vm2874_vm3, %v8242_v21 }
 0x468   : > { %v2616_v0 = vmul.f32 %v5467_v25, %v6969_v32  ;;  %v2615_v15 = vmul.f32 %v5467_v25, %v6967_v28  ;;  %2893 = vst.msk [vmem:[#allocation2 + $0xa0] sm:$0x3] %vm2874_vm3, %v8242_v21  ;;  %2896 = vst.msk [vmem:[#allocation2 + $0xb8] sm:$0x3] %vm2874_vm3, %v8242_v21  ;;  %v3974_v32 = vld [vmem:[%s8133_s12 + $0x8] sm:$0xff] }
 0x469   : > { %v2517_v27 = vpop.xlane.xlu0 %2516  ;;  %2899 = vst.msk [vmem:[#allocation2 + $0xd0] sm:$0x3] %vm2874_vm3, %v8242_v21  ;;  %2902 = vst.msk [vmem:[#allocation2 + $0xe8] sm:$0x3] %vm2874_vm3, %v8242_v21  ;;  %5212 = vmatprep.subr.mxu0 %v3974_v32  ;;  %v8248_v25 = vld [vmem:[#allocation13_spill] sm:$0xff] }
 0x46a   : > { %5474 = vrcp.f32 %v2517_v27  ;;  %2791 = vmatprep.mubr.f32.mxu1 %v2616_v0  ;;  %2905 = vst.msk [vmem:[#allocation2 + $0x100] sm:$0x3] %vm2874_vm3, %v8242_v21  ;;  %2908 = vst.msk [vmem:[#allocation2 + $0x118] sm:$0x3] %vm2874_vm3, %v8242_v21  ;;  %5213 = vmatpush3.msra.mxu0 %v3974_v32 }
 0x46b   : > { %v5469_v9 = vpop.eup %5468  ;;  %2792 = vmatmul.mubr.f32.gmra.mxu1 %v2615_v15  ;;  %2911 = vst.msk [vmem:[#allocation2 + $0x130] sm:$0x3] %vm2874_vm3, %v8242_v21  ;;  %2914 = vst.msk [vmem:[#allocation2 + $0x148] sm:$0x3] %vm2874_vm3, %v8242_v21  ;;  %5214 = vmatprep.subr.mxu0 %v3973_v12  ;;  %v8249_v15 = vld [vmem:[#allocation10_spill] sm:$0xff] }
 0x46c   : > { %v2618_v38 = vmul.f32 %v5469_v9, %v6977_v43  ;;  %v2617_v23 = vmul.f32 %v5469_v9, %v6975_v39  ;;  %2917 = vst.msk [vmem:[#allocation2 + $0x160] sm:$0x3] %vm2874_vm3, %v8242_v21  ;;  %2920 = vst.msk [vmem:[#allocation2 + $0x178] sm:$0x3] %vm2874_vm3, %v8242_v21  ;;  %5215 = vmatpush3.msra.mxu0 %v3973_v12 }
 0x46d   : > { %2923 = vst.msk [vmem:[#allocation2 + $0x190] sm:$0x3] %vm2874_vm3, %v8242_v21  ;;  %2926 = vst.msk [vmem:[#allocation2 + $0x1a8] sm:$0x3] %vm2874_vm3, %v8242_v21  ;;  %v2520_v28 = vpop.xlane.xlu1 %2519 }
 0x46e   : > { %5476 = vrcp.f32 %v2520_v28  ;;  %2796 = vmatprep.mubr.f32.mxu1 %v2618_v38  ;;  %v8251_v38 = vld [vmem:[#allocation12_spill] sm:$0xff] }
 0x46f   : > { %v5471_v39 = vpop.eup %5470  ;;  %2797 = vmatmul.mubr.f32.gmra.mxu1 %v2617_v23 }
 0x470   : > { %v2620_v43 = vmul.f32 %v5471_v39, %v6985_v19  ;;  %v2619_v44 = vmul.f32 %v5471_v39, %v6983_v62  ;;  %v2960_v39 = vld [vmem:[#allocation2] sm:$0xff] }
 0x471   : > { %v2523_v3 = vpop.xlane.xlu0 %2522 }
 0x472   : > { %5478 = vrcp.f32 %v2523_v3  ;;  %2801 = vmatprep.mubr.f32.mxu1 %v2620_v43  ;;  %v7200_v43 = vld [vmem:[%s8131_s10] ss:$0 sm:$0xff]  ;;  %v7205_v3 = vld [vmem:[%s8131_s10 + $0x1] ss:$0 sm:$0xff] }
 0x473   : > { %v5473_v34 = vpop.eup %5472  ;;  %2802 = vmatmul.mubr.f32.gmra.mxu1 %v2619_v44  ;;  %v3061_v44 = vld [vmem:[#allocation2 + $0x1] sm:$0xff] }
 0x474   : > { %v2622_v48 = vmul.f32 %v5473_v34, %v6993_v49  ;;  %v2621_v5 = vmul.f32 %v5473_v34, %v6991_v7  ;;  %v2997_v34 = vmul.f32 %v7200_v43, %v2960_v39 }
 0x475   : > { %v2526_v59 = vpop.xlane.xlu1 %2525 }
 0x476   : > { %5480 = vrcp.f32 %v2526_v59  ;;  %2806 = vmatprep.mubr.f32.mxu1 %v2622_v48  ;;  %v3098_v48 = vmul.f32 %v7205_v3, %v3061_v44  ;;  %v3062_v59 = vld [vmem:[#allocation2 + $0x9] sm:$0xff] }
 0x477   : > { %v5475_v57 = vpop.eup %5474  ;;  %2807 = vmatmul.mubr.f32.gmra.mxu1 %v2621_v5  ;;  %v2961_v5 = vld [vmem:[#allocation2 + $0x8] sm:$0xff] }
 0x478   : > { %v2624_v41 = vmul.f32 %v5475_v57, %v7001_v61  ;;  %v2623_v19 = vmul.f32 %v5475_v57, %v6999_v26 }
 0x479   : > { %v2529_v2 = vpop.xlane.xlu0 %2528 }
 0x47a   : > { %5482 = vrcp.f32 %v2529_v2  ;;  %2811 = vmatprep.mubr.f32.mxu1 %v2624_v41  ;;  %v3162_v41 = vld [vmem:[#allocation2 + $0x2] sm:$0xff] }
 0x47b   : > { %v5477_v62 = vpop.eup %5476  ;;  %2812 = vmatmul.mubr.f32.gmra.mxu1 %v2623_v19  ;;  %v7212_v19 = vld [vmem:[%s8131_s10 + $0x2] ss:$0 sm:$0xff] }
 0x47c   : > { %v2626_v22 = vmul.f32 %v5477_v62, %v7009_v37  ;;  %v2625_v49 = vmul.f32 %v5477_v62, %v7007_v18  ;;  %v2998_v62 = vmul.f32 %v7200_v43, %v2961_v5 }
 0x47d   : > { %v2532_v16 = vpop.xlane.xlu1 %2531 }
 0x47e   : > { %5484 = vrcp.f32 %v2532_v16  ;;  %2816 = vmatprep.mubr.f32.mxu1 %v2626_v22  ;;  %v3099_v22 = vmul.f32 %v7205_v3, %v3062_v59  ;;  %v3199_v16 = vmul.f32 %v7212_v19, %v3162_v41 }
 0x47f   : > { %v5479_v7 = vpop.eup %5478  ;;  %2817 = vmatmul.mubr.f32.gmra.mxu1 %v2625_v49  ;;  %v3130_v49 = vadd.f32 %v3098_v48, %v2997_v34 }
 0x480   : > { %v2628_v6 = vmul.f32 %v5479_v7, %v7017_v36  ;;  %v2627_v61 = vmul.f32 %v5479_v7, %v7015_v46  ;;  %v3163_v7 = vld [vmem:[#allocation2 + $0xa] sm:$0xff] }
 0x481   : > { %v2535_v33 = vpop.xlane.xlu0 %2534 }
 0x482   : > { %5486 = vrcp.f32 %v2535_v33  ;;  %2821 = vmatprep.mubr.f32.mxu1 %v2628_v6 }
 0x483   : > { %v5481_v26 = vpop.eup %5480  ;;  %2822 = vmatmul.mubr.f32.gmra.mxu1 %v2627_v61  ;;  %v7222_v61 = vld [vmem:[%s8131_s10 + $0x3] ss:$0 sm:$0xff] }
 0x484   : > { %v2630_v53 = vmul.f32 %v5481_v26, %v8243_v35  ;;  %v2629_v37 = vmul.f32 %v5481_v26, %v8244_v30  ;;  %v3131_v26 = vadd.f32 %v3099_v22, %v2998_v62  ;;  %v3200_v35 = vmul.f32 %v7212_v19, %v3163_v7  ;;  %v7228_v30 = vld [vmem:[%s8131_s10 + $0x4] ss:$0 sm:$0xff] }
 0x485   : > { %v2538_v56 = vpop.xlane.xlu1 %2537 }
 0x486   : > { %5488 = vrcp.f32 %v2538_v56  ;;  %2826 = vmatprep.mubr.f32.mxu1 %v2630_v53  ;;  %v3231_v53 = vadd.f32 %v3199_v16, %v3130_v49 }
 0x487   : > { %v5483_v18 = vpop.eup %5482  ;;  %2827 = vmatmul.mubr.f32.gmra.mxu1 %v2629_v37 }
 0x488   : > { %v2632_v20 = vmul.f32 %v5483_v18, %v8245_v11  ;;  %v2631_v36 = vmul.f32 %v5483_v18, %v8246_v1  ;;  %v3232_v1 = vadd.f32 %v3200_v35, %v3131_v26 }
 0x489   : > { %v2541_v14 = vpop.xlane.xlu0 %2540 }
 0x48a   : > { %5490 = vrcp.f32 %v2541_v14  ;;  %2831 = vmatprep.mubr.f32.mxu1 %v2632_v20 }
 0x48b   : > { %v5485_v46 = vpop.eup %5484  ;;  %2832 = vmatmul.mubr.f32.gmra.mxu1 %v2631_v36 }
 0x48c   : > { %v2634_v54 = vmul.f32 %v5485_v46, %v7041_v31  ;;  %v2633_v60 = vmul.f32 %v5485_v46, %v8247_v51  ;;  %v7236_v46 = vld [vmem:[%s8131_s10 + $0x5] ss:$0 sm:$0xff] }
 0x48d   : > { %v2544_v4 = vpop.xlane.xlu1 %2543 }
 0x48e   : > { %5492 = vrcp.f32 %v2544_v4  ;;  %2836 = vmatprep.mubr.f32.mxu1 %v2634_v54 }
 0x48f   : > { %v5487_v29 = vpop.eup %5486  ;;  %2837 = vmatmul.mubr.f32.gmra.mxu1 %v2633_v60 }
 0x490   : > { %v2636_v40 = vmul.f32 %v5487_v29, %v7049_v8  ;;  %v2635_v52 = vmul.f32 %v5487_v29, %v7047_v24 }
 0x491   : > { %v2547_v10 = vpop.xlane.xlu0 %2546 }
 0x492   : > { %5494 = vrcp.f32 %v2547_v10  ;;  %2841 = vmatprep.mubr.f32.mxu1 %v2636_v40 }
 0x493   : > { %v5489_v31 = vpop.eup %5488  ;;  %2842 = vmatmul.mubr.f32.gmra.mxu1 %v2635_v52 }
 0x494   : > { %v2638_v50 = vmul.f32 %v5489_v31, %v7057_v13  ;;  %v2637_v17 = vmul.f32 %v5489_v31, %v7055_v42  ;;  %v8250_v42 = vld [vmem:[#allocation15_spill] sm:$0xff] }
 0x495   : > { %v2550_v63 = vpop.xlane.xlu1 %2549 }
 0x496   : > { %5496 = vrcp.f32 %v2550_v63  ;;  %2846 = vmatprep.mubr.f32.mxu1 %v2638_v50  ;;  %v7246_v50 = vld [vmem:[%s8131_s10 + $0x6] ss:$0 sm:$0xff] }
 0x497   : > { %v5491_v58 = vpop.eup %5490  ;;  %2847 = vmatmul.mubr.f32.gmra.mxu1 %v2637_v17 }
 0x498   : > { %v2640_v55 = vmul.f32 %v5491_v58, %v7063_v45  ;;  %v2639_v8 = vmul.f32 %v5491_v58, %v7061_v47  ;;  %v8252_v45 = vld [vmem:[#allocation16_spill] sm:$0xff]  ;;  %v8253_v47 = vld [vmem:[#allocation14_spill] sm:$0xff] }
 0x49a   : > { %2851 = vmatprep.mubr.f32.mxu1 %v2640_v55 }
 0x49b   : > { %v5493_v24 = vpop.eup %5492  ;;  %2852 = vmatmul.mubr.f32.gmra.mxu1 %v2639_v8 }
 0x49c   : > { %v2642_v0 = vmul.f32 %v5493_v24, %v8248_v25  ;;  %v2641_v27 = vmul.f32 %v5493_v24, %v8249_v15 }
 0x49e   : > { %2856 = vmatprep.mubr.f32.mxu1 %v2642_v0 }
 0x49f   : > { %v5495_v13 = vpop.eup %5494  ;;  %2857 = vmatmul.mubr.f32.gmra.mxu1 %v2641_v27 }
 0x4a0   : > { %v2644_v9 = vmul.f32 %v5495_v13, %v8250_v42  ;;  %v2643_v23 = vmul.f32 %v5495_v13, %v8251_v38  ;;  %v7255_v42 = vld [vmem:[%s8131_s10 + $0x7] ss:$0 sm:$0xff] }
 0x4a2   : > { %2861 = vmatprep.mubr.f32.mxu1 %v2644_v9 }
 0x4a3   : > { %v5497_v21 = vpop.eup %5496  ;;  %2862 = vmatmul.mubr.f32.gmra.mxu1 %v2643_v23 }
 0x4a4   : > { %v2646_v28 = vmul.f32 %v5497_v21, %v8252_v45  ;;  %v2645_v32 = vmul.f32 %v5497_v21, %v8253_v47  ;;  %v7263_v47 = vld [vmem:[%s8131_s10 + $0x8] ss:$0 sm:$0xff] }
 0x4a6   : > { %2866 = vmatprep.mubr.f32.mxu1 %v2646_v28 }
 0x4a7   : > { %2867 = vmatmul.mubr.f32.gmra.mxu1 %v2645_v32 }
 0x4eb   : > { %v2713_v57 = vpop.f32.mrf.mxu1 }
 0x4ec   : > { %2928 = vst.msk [vmem:[#allocation2 + $0x19] sm:$0xff] %vm923_vm1, %v2713_v57 }
 0x4ed   : > { %v2715_v2 = vpop.f32.mrf.mxu1 }
 0x4ef   : > { %v2718_v6 = vpop.f32.mrf.mxu1 }
 0x4f0   : > { %2929 = vst.msk [vmem:[#allocation2 + $0x21] sm:$0xff] %vm923_vm1, %v2718_v6 }
 0x4f1   : > { %v2720_v33 = vpop.f32.mrf.mxu1 }
 0x4f3   : > { %v2723_v37 = vpop.f32.mrf.mxu1  ;;  %v3263_v56 = vld [vmem:[#allocation2 + $0x18] sm:$0xff] }
 0x4f4   : > { %v3364_v18 = vld [vmem:[#allocation2 + $0x19] sm:$0xff]  ;;  %2930 = vst.msk [vmem:[#allocation2 + $0x31] sm:$0xff] %vm923_vm1, %v2723_v37  ;;  %v3300_v11 = vmul.f32 %v7222_v61, %v3263_v56  ;;  %v2999_v54 = vmul.f32 %v7200_v43, %v3263_v56 }
 0x4f5   : > { %v2725_v20 = vpop.f32.mrf.mxu1  ;;  %v3401_v14 = vmul.f32 %v7228_v30, %v3364_v18  ;;  %v3100_v51 = vmul.f32 %v7205_v3, %v3364_v18 }
 0x4f6   : > { %v3332_v36 = vadd.f32 %v3300_v11, %v3231_v53  ;;  %v7277_v53 = vld [vmem:[%s8132_s11] ss:$0 sm:$0xff] }
 0x4f7   : > { %v3264_v60 = vld [vmem:[#allocation2 + $0x20] sm:$0xff]  ;;  %v2728_v4 = vpop.f32.mrf.mxu1  ;;  %v3132_v25 = vadd.f32 %v3100_v51, %v2999_v54 }
 0x4f8   : > { %v3365_v12 = vld [vmem:[#allocation2 + $0x21] sm:$0xff]  ;;  %v3301_v29 = vmul.f32 %v7222_v61, %v3264_v60  ;;  %2931 = vst.msk [vmem:[#allocation2 + $0x39] sm:$0xff] %vm923_vm1, %v2728_v4  ;;  %v3433_v40 = vadd.f32 %v3401_v14, %v3332_v36  ;;  %v3000_v63 = vmul.f32 %v7200_v43, %v3264_v60 }
 0x4f9   : > { %v3465_v52 = vld [vmem:[#allocation2 + $0x1a] sm:$0xff]  ;;  %v2730_v10 = vpop.f32.mrf.mxu1  ;;  %v3101_v58 = vmul.f32 %v7205_v3, %v3365_v12  ;;  %v3402_v55 = vmul.f32 %v7228_v30, %v3365_v12  ;;  %v3466_v8 = vld [vmem:[#allocation2 + $0x22] sm:$0xff] }
 0x4fa   : > { %v3502_v31 = vmul.f32 %v7236_v46, %v3465_v52  ;;  %v3201_v17 = vmul.f32 %v7212_v19, %v3465_v52  ;;  %v3333_v24 = vadd.f32 %v3301_v29, %v3232_v1  ;;  %v3202_v32 = vmul.f32 %v7212_v19, %v3466_v8 }
 0x4fb   : > { %v2733_v0 = vpop.f32.mrf.mxu1  ;;  %v3567_v27 = vld [vmem:[#allocation2 + $0x30] sm:$0xff]  ;;  %v3133_v9 = vadd.f32 %v3101_v58, %v3000_v63  ;;  %v3503_v5 = vmul.f32 %v7236_v46, %v3466_v8 }
 0x4fc   : > { %v3534_v15 = vadd.f32 %v3502_v31, %v3433_v40  ;;  %v3668_v13 = vld [vmem:[#allocation2 + $0x31] sm:$0xff]  ;;  %2932 = vst.msk [vmem:[#allocation2 + $0x49] sm:$0xff] %vm923_vm1, %v2733_v0  ;;  %v3604_v38 = vmul.f32 %v7246_v50, %v3567_v27  ;;  %v3434_v23 = vadd.f32 %v3402_v55, %v3333_v24  ;;  %v3233_v21 = vadd.f32 %v3201_v17, %v3132_v25 }
 0x4fd   : > { %v3302_v45 = vmul.f32 %v7222_v61, %v3567_v27  ;;  %v2735_v28 = vpop.f32.mrf.mxu1  ;;  %v3001_v39 = vmul.f32 %v7200_v43, %v3567_v27  ;;  %v3102_v44 = vmul.f32 %v7205_v3, %v3668_v13  ;;  %v3705_v48 = vmul.f32 %v7255_v42, %v3668_v13 }
 0x4fe   : > { %v3636_v34 = vadd.f32 %v3604_v38, %v3534_v15  ;;  %v3403_v22 = vmul.f32 %v7228_v30, %v3668_v13  ;;  %v3234_v49 = vadd.f32 %v3202_v32, %v3133_v9  ;;  %v3535_v6 = vadd.f32 %v3503_v5, %v3434_v23 }
 0x4ff   : > { %v3334_v59 = vadd.f32 %v3302_v45, %v3233_v21  ;;  %v2738_v57 = vpop.f32.mrf.mxu1  ;;  %v3769_v41 = vld [vmem:[#allocation2 + $0x32] sm:$0xff]  ;;  %v3770_v26 = vld [vmem:[#allocation2 + $0x3a] sm:$0xff]  ;;  %v3134_v11 = vadd.f32 %v3102_v44, %v3001_v39 }
 0x500   : > { %v3568_v2 = vld [vmem:[#allocation2 + $0x38] sm:$0xff]  ;;  %2933 = vst.msk [vmem:[#allocation2 + $0x51] sm:$0xff] %vm923_vm1, %v2738_v57  ;;  %v3737_v16 = vadd.f32 %v3705_v48, %v3636_v34  ;;  %v3806_v7 = vmul.f32 %v7263_v47, %v3769_v41  ;;  %v3504_v56 = vmul.f32 %v7236_v46, %v3769_v41  ;;  %v3807_v14 = vmul.f32 %v7263_v47, %v3770_v26 }
 0x501   : > { %v3669_v62 = vld [vmem:[#allocation2 + $0x39] sm:$0xff]  ;;  %v3605_v33 = vmul.f32 %v7246_v50, %v3568_v2  ;;  %v2740_v35 = vpop.f32.mrf.mxu1  ;;  %v3435_v37 = vadd.f32 %v3403_v22, %v3334_v59  ;;  %v3303_v18 = vmul.f32 %v7222_v61, %v3568_v2  ;;  %v3203_v40 = vmul.f32 %v7212_v19, %v3769_v41 }
 0x502   : > { %v3838_v20 = vadd.f32 %v3806_v7, %v3737_v16  ;;  %v3706_v36 = vmul.f32 %v7255_v42, %v3669_v62  ;;  %v3404_v29 = vmul.f32 %v7228_v30, %v3669_v62  ;;  %v3002_v17 = vmul.f32 %v7200_v43, %v3568_v2 }
 0x503   : > { %v3637_v1 = vadd.f32 %v3605_v33, %v3535_v6  ;;  %v2743_v54 = vpop.f32.mrf.mxu1  ;;  %v3536_v51 = vadd.f32 %v3504_v56, %v3435_v37  ;;  %v3569_v60 = vld [vmem:[#allocation2 + $0x48] sm:$0xff]  ;;  %v3335_v4 = vadd.f32 %v3303_v18, %v3234_v49  ;;  %v3235_v8 = vadd.f32 %v3203_v40, %v3134_v11 }
 0x504   : > { %v3670_v12 = vld [vmem:[#allocation2 + $0x49] sm:$0xff]  ;;  %2934 = vst.msk [vmem:[#allocation2 + $0x61] sm:$0xff] %vm923_vm1, %v2743_v54  ;;  %v3877_v52 = vadd.f32 %v7277_v53, %v3838_v20  ;;  %v3606_v31 = vmul.f32 %v7246_v50, %v3569_v60  ;;  %v3304_v24 = vmul.f32 %v7222_v61, %v3569_v60  ;;  %v3103_v27 = vmul.f32 %v7205_v3, %v3669_v62 }
 0x505   : > { %v3738_v10 = vadd.f32 %v3706_v36, %v3637_v1  ;;  %v2745_v63 = vpop.f32.mrf.mxu1  ;;  %v3707_v58 = vmul.f32 %v7255_v42, %v3670_v12  ;;  %v3436_v55 = vadd.f32 %v3404_v29, %v3335_v4  ;;  %v3505_v38 = vmul.f32 %v7236_v46, %v3770_v26 }
 0x506   : > { %v3909_v25 = vmax.f32 %v3877_v52, 0.0  ;;  %v3638_v15 = vadd.f32 %v3606_v31, %v3536_v51  ;;  %v3336_v21 = vadd.f32 %v3304_v24, %v3235_v8  ;;  %v3405_v45 = vmul.f32 %v7228_v30, %v3670_v12 }
 0x507   : > { %v3839_v0 = vadd.f32 %v3807_v14, %v3738_v10  ;;  %v2748_v13 = vpop.f32.mrf.mxu1  ;;  %v3771_v9 = vld [vmem:[#allocation2 + $0x4a] sm:$0xff]  ;;  %v3537_v5 = vadd.f32 %v3505_v38, %v3436_v55  ;;  %v3204_v41 = vmul.f32 %v7212_v19, %v3770_v26  ;;  %v3772_v22 = vld [vmem:[#allocation2 + $0x52] sm:$0xff]  ;;  %v3135_v16 = vadd.f32 %v3103_v27, %v3002_v17 }
 0x508   : > { %v7293_v23 = vld [vmem:[#allocation2 + $0x50] sm:$0xff]  ;;  %2935 = vst.msk [vmem:[#allocation2 + $0x69] sm:$0xff] %vm923_vm1, %v2748_v13  ;;  %v3941_v28 = vmin.f32 %v3909_v25, 6.0  ;;  %v3739_v39 = vadd.f32 %v3707_v58, %v3638_v15  ;;  %v3808_v44 = vmul.f32 %v7263_v47, %v3771_v9  ;;  %v3437_v57 = vadd.f32 %v3405_v45, %v3336_v21 }
 0x509   : > { %v3878_v32 = vadd.f32 %v7277_v53, %v3839_v0  ;;  %v7299_v34 = vld [vmem:[#allocation2 + $0x51] sm:$0xff]  ;;  %v2750_v48 = vpop.f32.mrf.mxu1  ;;  %v3607_v59 = vmul.f32 %v7246_v50, %v7293_v23  ;;  %v3506_v49 = vmul.f32 %v7236_v46, %v3771_v9  ;;  %v3305_v26 = vmul.f32 %v7222_v61, %v7293_v23 }
 0x50a   : > { %5216 = vmatprep.mubr.msk.f32.mxu0 %vm923_vm1, %v3941_v28  ;;  %v3840_v62 = vadd.f32 %v3808_v44, %v3739_v39  ;;  %v3708_v33 = vmul.f32 %v7255_v42, %v7299_v34  ;;  %v3003_v56 = vmul.f32 %v7200_v43, %v3569_v60  ;;  %v3809_v54 = vmul.f32 %v7263_v47, %v3772_v22 }
 0x50b   : > { %v3910_v2 = vmax.f32 %v3878_v32, 0.0  ;;  %v2753_v7 = vpop.f32.mrf.mxu1  ;;  %v3639_v6 = vadd.f32 %v3607_v59, %v3537_v5  ;;  %v7308_v35 = vld [vmem:[#allocation2 + $0x60] sm:$0xff]  ;;  %v3538_v20 = vadd.f32 %v3506_v49, %v3437_v57  ;;  %v3236_v51 = vadd.f32 %v3204_v41, %v3135_v16 }
 0x50c   : > { %v7310_v37 = vld [vmem:[#allocation2 + $0x61] sm:$0xff]  ;;  %2936 = vst.msk [vmem:[#allocation2 + $0x79] sm:$0xff] %vm923_vm1, %v2753_v7  ;;  %v3879_v11 = vadd.f32 %v7277_v53, %v3840_v62  ;;  %v3608_v1 = vmul.f32 %v7246_v50, %v7308_v35  ;;  %v3104_v4 = vmul.f32 %v7205_v3, %v3670_v12  ;;  %v3205_v52 = vmul.f32 %v7212_v19, %v3771_v9 }
 0x50d   : > { %v3942_v18 = vmin.f32 %v3910_v2, 6.0  ;;  %v2755_v36 = vpop.f32.mrf.mxu1  ;;  %v3740_v14 = vadd.f32 %v3708_v33, %v3639_v6  ;;  %v3709_v40 = vmul.f32 %v7255_v42, %v7310_v37  ;;  %v3337_v63 = vadd.f32 %v3305_v26, %v3236_v51 }
 0x50e   : > { %v3911_v29 = vmax.f32 %v3879_v11, 0.0  ;;  %v3640_v60 = vadd.f32 %v3608_v1, %v3538_v20  ;;  %v3406_v58 = vmul.f32 %v7228_v30, %v7299_v34  ;;  %v3306_v12 = vmul.f32 %v7222_v61, %v7308_v35 }
 0x50f   : > { %5217 = vmatmul.mubr.msk.f32.vlgmr.msra.gmra.mxu0 %vm923_vm1, %v3942_v18  ;;  %v2758_v10 = vpop.f32.mrf.mxu1  ;;  %v3841_v31 = vadd.f32 %v3809_v54, %v3740_v14  ;;  %v7325_v17 = vld [vmem:[#allocation2 + $0x62] sm:$0xff]  ;;  %v3136_v15 = vadd.f32 %v3104_v4, %v3003_v56  ;;  %v3507_v38 = vmul.f32 %v7236_v46, %v3772_v22  ;;  %v3407_v32 = vmul.f32 %v7228_v30, %v7310_v37  ;;  %v3774_v57 = vld [vmem:[#allocation2 + $0x6a] sm:$0xff] }
 0x510   : > { %v7329_v55 = vld [vmem:[#allocation2 + $0x68] sm:$0xff]  ;;  %2937 = vst.msk [vmem:[#allocation2 + $0x81] sm:$0xff] %vm923_vm1, %v2758_v10  ;;  %v3943_v8 = vmin.f32 %v3911_v29, 6.0  ;;  %v3741_v24 = vadd.f32 %v3709_v40, %v3640_v60  ;;  %v3810_v25 = vmul.f32 %v7263_v47, %v7325_v17  ;;  %v3438_v9 = vadd.f32 %v3406_v58, %v3337_v63 }
 0x511   : > { %v7336_v0 = vld [vmem:[#allocation2 + $0x69] sm:$0xff]  ;;  %v2760_v27 = vpop.f32.mrf.mxu1  ;;  %v3880_v13 = vadd.f32 %v7277_v53, %v3841_v31  ;;  %v3609_v21 = vmul.f32 %v7246_v50, %v7329_v55  ;;  %v3237_v28 = vadd.f32 %v3205_v52, %v3136_v15  ;;  %v3004_v39 = vmul.f32 %v7200_v43, %v7293_v23 }
 0x512   : > { %5219 = vmatprep.mubr.msk.f32.mxu0 %vm923_vm1, %v3943_v8  ;;  %v3842_v45 = vadd.f32 %v3810_v25, %v3741_v24  ;;  %v3539_v5 = vadd.f32 %v3507_v38, %v3438_v9  ;;  %v3710_v59 = vmul.f32 %v7255_v42, %v7336_v0  ;;  %v3105_v2 = vmul.f32 %v7205_v3, %v7299_v34 }
 0x513   : > { %v2763_v44 = vpop.f32.mrf.mxu1  ;;  %v3912_v48 = vmax.f32 %v3880_v13, 0.0  ;;  %v7349_v41 = vld [vmem:[#allocation2 + $0x78] sm:$0xff]  ;;  %v3338_v49 = vadd.f32 %v3306_v12, %v3237_v28  ;;  %v3508_v23 = vmul.f32 %v7236_v46, %v7325_v17  ;;  %v3206_v16 = vmul.f32 %v7212_v19, %v3772_v22 }
 0x514   : > { %2938 = vst.msk [vmem:[#allocation2 + $0x91] sm:$0xff] %vm923_vm1, %v2763_v44  ;;  %v3881_v62 = vadd.f32 %v7277_v53, %v3842_v45  ;;  %v3641_v33 = vadd.f32 %v3609_v21, %v3539_v5  ;;  %v7358_v26 = vld [vmem:[#allocation2 + $0x79] sm:$0xff]  ;;  %v3137_v56 = vadd.f32 %v3105_v2, %v3004_v39  ;;  %v3307_v18 = vmul.f32 %v7222_v61, %v7329_v55 }
 0x515   : > { %v2765_v7 = vpop.f32.mrf.mxu1  ;;  %v3944_v6 = vmin.f32 %v3912_v48, 6.0  ;;  %v3811_v11 = vmul.f32 %v7263_v47, %v3774_v57  ;;  %v3439_v20 = vadd.f32 %v3407_v32, %v3338_v49  ;;  %v3610_v1 = vmul.f32 %v7246_v50, %v7349_v41 }
 0x516   : > { %v3913_v34 = vmax.f32 %v3881_v62, 0.0  ;;  %v3742_v22 = vadd.f32 %v3710_v59, %v3641_v33  ;;  %v3238_v54 = vadd.f32 %v3206_v16, %v3137_v56  ;;  %v3005_v51 = vmul.f32 %v7200_v43, %v7308_v35 }
 0x517   : > { %5220 = vmatmul.mubr.msk.f32.gmra.mxu0 %vm923_vm1, %v3944_v6  ;;  %v2768_v36 = vpop.f32.mrf.mxu1  ;;  %v7366_v14 = vld [vmem:[#allocation2 + $0x7a] sm:$0xff]  ;;  %v3106_v4 = vmul.f32 %v7205_v3, %v7310_v37  ;;  %v3540_v60 = vadd.f32 %v3508_v23, %v3439_v20  ;;  %v3711_v40 = vmul.f32 %v7255_v42, %v7358_v26  ;;  %v3408_v35 = vmul.f32 %v7228_v30, %v7336_v0  ;;  %v7397_v48 = vld [vmem:[#allocation2 + $0x82] sm:$0xff] }
 0x518   : > { %2939 = vst.msk [vmem:[#allocation2 + $0x99] sm:$0xff] %vm923_vm1, %v2768_v36  ;;  %v3945_v29 = vmin.f32 %v3913_v34, 6.0  ;;  %v7375_v52 = vld [vmem:[#allocation2 + $0x80] sm:$0xff]  ;;  %v3843_v31 = vadd.f32 %v3811_v11, %v3742_v22  ;;  %v3812_v63 = vmul.f32 %v7263_v47, %v7366_v14  ;;  %v3339_v58 = vadd.f32 %v3307_v18, %v3238_v54 }
 0x519   : > { %v2770_v10 = vpop.f32.mrf.mxu1  ;;  %v7381_v12 = vld [vmem:[#allocation2 + $0x81] sm:$0xff]  ;;  %v3642_v37 = vadd.f32 %v3610_v1, %v3540_v60  ;;  %v3138_v8 = vadd.f32 %v3106_v4, %v3005_v51  ;;  %v3207_v24 = vmul.f32 %v7212_v19, %v7325_v17  ;;  %v3308_v25 = vmul.f32 %v7222_v61, %v7349_v41 }
 0x51a   : > { %5222 = vmatprep.mubr.msk.f32.mxu0 %vm923_vm1, %v3945_v29  ;;  %v3882_v27 = vadd.f32 %v7277_v53, %v3843_v31  ;;  %v3440_v13 = vadd.f32 %v3408_v35, %v3339_v58  ;;  %v3509_v9 = vmul.f32 %v7236_v46, %v3774_v57  ;;  %v3611_v38 = vmul.f32 %v7246_v50, %v7375_v52 }
 0x51b   : > { %v2773_v15 = vpop.f32.mrf.mxu1  ;;  %v3743_v21 = vadd.f32 %v3711_v40, %v3642_v37  ;;  %v3712_v45 = vmul.f32 %v7255_v42, %v7381_v12  ;;  %v3239_v28 = vadd.f32 %v3207_v24, %v3138_v8  ;;  %v3409_v17 = vmul.f32 %v7228_v30, %v7358_v26  ;;  %v7399_v5 = vld [vmem:[#allocation2 + $0x90] sm:$0xff] }
 0x51c   : > { %2940 = vst.msk [vmem:[#allocation2 + $0xa9] sm:$0xff] %vm923_vm1, %v2773_v15  ;;  %v3914_v39 = vmax.f32 %v3882_v27, 0.0  ;;  %v3541_v44 = vadd.f32 %v3509_v9, %v3440_v13  ;;  %v3006_v59 = vmul.f32 %v7200_v43, %v7329_v55  ;;  %v3107_v2 = vmul.f32 %v7205_v3, %v7336_v0  ;;  %v7407_v16 = vld [vmem:[#allocation2 + $0x91] sm:$0xff] }
 0x51d   : > { %v2775_v32 = vpop.f32.mrf.mxu1  ;;  %v3844_v62 = vadd.f32 %v3812_v63, %v3743_v21  ;;  %v3340_v49 = vadd.f32 %v3308_v25, %v3239_v28  ;;  %v3510_v23 = vmul.f32 %v7236_v46, %v7366_v14  ;;  %v3208_v7 = vmul.f32 %v7212_v19, %v3774_v57 }
 0x51e   : > { %v3946_v6 = vmin.f32 %v3914_v39, 6.0  ;;  %v3643_v56 = vadd.f32 %v3611_v38, %v3541_v44  ;;  %v3139_v34 = vadd.f32 %v3107_v2, %v3006_v59  ;;  %v3309_v55 = vmul.f32 %v7222_v61, %v7375_v52 }
 0x51f   : > { %v2778_v33 = vpop.f32.mrf.mxu1  ;;  %v7410_v18 = vld [vmem:[#allocation2 + $0x92] sm:$0xff]  ;;  %v3883_v0 = vadd.f32 %v7277_v53, %v3844_v62  ;;  %v3813_v11 = vmul.f32 %v7263_v47, %v7397_v48  ;;  %v3441_v20 = vadd.f32 %v3409_v17, %v3340_v49  ;;  %v3612_v57 = vmul.f32 %v7246_v50, %v7399_v5  ;;  %v7452_v44 = vld [vmem:[#allocation2 + $0x9a] sm:$0xff] }
 0x520   : > { %2941 = vst.msk [vmem:[#allocation2 + $0xb1] sm:$0xff] %vm923_vm1, %v2778_v33  ;;  %5223 = vmatmul.mubr.msk.f32.gmra.mxu0 %vm923_vm1, %v3946_v6  ;;  %v3744_v36 = vadd.f32 %v3712_v45, %v3643_v56  ;;  %v3713_v22 = vmul.f32 %v7255_v42, %v7407_v16  ;;  %v3240_v54 = vadd.f32 %v3208_v7, %v3139_v34  ;;  %v7425_v4 = vld [vmem:[#allocation2 + $0x98] sm:$0xff] }
 0x521   : > { %v2780_v1 = vpop.f32.mrf.mxu1  ;;  %v3410_v51 = vmul.f32 %v7228_v30, %v7381_v12  ;;  %v3915_v29 = vmax.f32 %v3883_v0, 0.0  ;;  %v3542_v60 = vadd.f32 %v3510_v23, %v3441_v20  ;;  %v3814_v40 = vmul.f32 %v7263_v47, %v7410_v18  ;;  %v7431_v35 = vld [vmem:[#allocation2 + $0x99] sm:$0xff] }
 0x522   : > { %v3007_v10 = vmul.f32 %v7200_v43, %v7349_v41  ;;  %v3845_v63 = vadd.f32 %v3813_v11, %v3744_v36  ;;  %v3341_v58 = vadd.f32 %v3309_v55, %v3240_v54  ;;  %v3108_v37 = vmul.f32 %v7205_v3, %v7358_v26 }
 0x523   : > { %v2783_v31 = vpop.f32.mrf.mxu1  ;;  %v3209_v8 = vmul.f32 %v7212_v19, %v7366_v14  ;;  %v3947_v24 = vmin.f32 %v3915_v29, 6.0  ;;  %v3644_v25 = vadd.f32 %v3612_v57, %v3542_v60  ;;  %v3511_v15 = vmul.f32 %v7236_v46, %v7397_v48  ;;  %v7454_v2 = vld [vmem:[#allocation2 + $0xa8] sm:$0xff] }
 0x524   : > { %2942 = vst.msk [vmem:[#allocation2 + $0xc1] sm:$0xff] %vm923_vm1, %v2783_v31  ;;  %v3613_v41 = vmul.f32 %v7246_v50, %v7425_v4  ;;  %v3884_v13 = vadd.f32 %v7277_v53, %v3845_v63  ;;  %v3442_v9 = vadd.f32 %v3410_v51, %v3341_v58  ;;  %v3140_v38 = vadd.f32 %v3108_v37, %v3007_v10  ;;  %v7456_v62 = vld [vmem:[#allocation2 + $0xa9] sm:$0xff] }
 0x525   : > { %v2785_v27 = vpop.f32.mrf.mxu1  ;;  %v3310_v26 = vmul.f32 %v7222_v61, %v7399_v5  ;;  %5225 = vmatprep.mubr.msk.f32.mxu0 %vm923_vm1, %v3947_v24  ;;  %v3745_v14 = vadd.f32 %v3713_v22, %v3644_v25  ;;  %v3714_v21 = vmul.f32 %v7255_v42, %v7431_v35  ;;  %v3411_v45 = vmul.f32 %v7228_v30, %v7407_v16 }
 0x526   : > { %v3008_v28 = vmul.f32 %v7200_v43, %v7375_v52  ;;  %v3916_v17 = vmax.f32 %v3884_v13, 0.0  ;;  %v3543_v39 = vadd.f32 %v3511_v15, %v3442_v9  ;;  %v3241_v59 = vadd.f32 %v3209_v8, %v3140_v38 }
 0x527   : > { %v2788_v32 = vpop.f32.mrf.mxu1  ;;  %v3109_v49 = vmul.f32 %v7205_v3, %v7381_v12  ;;  %v3846_v23 = vadd.f32 %v3814_v40, %v3745_v14  ;;  %v3512_v7 = vmul.f32 %v7236_v46, %v7410_v18  ;;  %v7463_v52 = vld [vmem:[#allocation2 + $0xaa] sm:$0xff]  ;;  %v3210_v6 = vmul.f32 %v7212_v19, %v7397_v48  ;;  %v7490_v25 = vld [vmem:[#allocation2 + $0xb2] sm:$0xff] }
 0x528   : > { %2943 = vst.msk [vmem:[#allocation2 + $0xc9] sm:$0xff] %vm923_vm1, %v2788_v32  ;;  %v3311_v33 = vmul.f32 %v7222_v61, %v7425_v4  ;;  %v3948_v56 = vmin.f32 %v3916_v17, 6.0  ;;  %v3645_v55 = vadd.f32 %v3613_v41, %v3543_v39  ;;  %v3342_v0 = vadd.f32 %v3310_v26, %v3241_v59  ;;  %v7482_v40 = vld [vmem:[#allocation2 + $0xb0] sm:$0xff] }
 0x529   : > { %v2790_v34 = vpop.f32.mrf.mxu1  ;;  %v3141_v11 = vadd.f32 %v3109_v49, %v3008_v28  ;;  %v3885_v12 = vadd.f32 %v7277_v53, %v3846_v23  ;;  %v3815_v20 = vmul.f32 %v7263_v47, %v7452_v44  ;;  %v3614_v57 = vmul.f32 %v7246_v50, %v7454_v2  ;;  %v7488_v24 = vld [vmem:[#allocation2 + $0xb1] sm:$0xff] }
 0x52a   : > { %v3715_v1 = vmul.f32 %v7255_v42, %v7456_v62  ;;  %5226 = vmatmul.mubr.msk.f32.gmra.mxu0 %vm923_vm1, %v3948_v56  ;;  %v3746_v36 = vadd.f32 %v3714_v21, %v3645_v55  ;;  %v3443_v22 = vadd.f32 %v3411_v45, %v3342_v0  ;;  %v3816_v54 = vmul.f32 %v7263_v47, %v7463_v52 }
 0x52b   : > { %v2793_v48 = vpop.f32.mrf.mxu1  ;;  %v3242_v51 = vadd.f32 %v3210_v6, %v3141_v11  ;;  %v3917_v29 = vmax.f32 %v3885_v12, 0.0  ;;  %v3412_v60 = vmul.f32 %v7228_v30, %v7431_v35  ;;  %v3009_v10 = vmul.f32 %v7200_v43, %v7399_v5  ;;  %v7501_v21 = vld [vmem:[#allocation2 + $0xc0] sm:$0xff] }
 0x52c   : > { %2944 = vst.msk [vmem:[#allocation2 + $0xd9] sm:$0xff] %vm923_vm1, %v2793_v48  ;;  %v3110_v31 = vmul.f32 %v7205_v3, %v7407_v16  ;;  %v3847_v58 = vadd.f32 %v3815_v20, %v3746_v36  ;;  %v3544_v37 = vadd.f32 %v3512_v7, %v3443_v22  ;;  %v3211_v15 = vmul.f32 %v7212_v19, %v7410_v18  ;;  %v7511_v32 = vld [vmem:[#allocation2 + $0xc1] sm:$0xff] }
 0x52d   : > { %v2795_v63 = vpop.f32.mrf.mxu1  ;;  %v3343_v8 = vadd.f32 %v3311_v33, %v3242_v51  ;;  %v3949_v41 = vmin.f32 %v3917_v29, 6.0  ;;  %v3513_v27 = vmul.f32 %v7236_v46, %v7452_v44  ;;  %v3312_v5 = vmul.f32 %v7222_v61, %v7454_v2 }
 0x52e   : > { %v3142_v13 = vadd.f32 %v3110_v31, %v3009_v10  ;;  %v3886_v16 = vadd.f32 %v7277_v53, %v3847_v58  ;;  %v3646_v38 = vadd.f32 %v3614_v57, %v3544_v37  ;;  %v3615_v14 = vmul.f32 %v7246_v50, %v7482_v40 }
 0x52f   : > { %v2798_v9 = vpop.f32.mrf.mxu1  ;;  %v3444_v26 = vadd.f32 %v3412_v60, %v3343_v8  ;;  %5228 = vmatprep.mubr.msk.f32.mxu0 %vm923_vm1, %v3949_v41  ;;  %v3716_v18 = vmul.f32 %v7255_v42, %v7488_v24  ;;  %v3817_v45 = vmul.f32 %v7263_v47, %v7490_v25  ;;  %v3413_v17 = vmul.f32 %v7228_v30, %v7456_v62  ;;  %v7519_v34 = vld [vmem:[#allocation2 + $0xc2] sm:$0xff] }
 0x530   : > { %2945 = vst.msk [vmem:[#allocation2 + $0xe1] sm:$0xff] %vm923_vm1, %v2798_v9  ;;  %v3243_v28 = vadd.f32 %v3211_v15, %v3142_v13  ;;  %v3918_v39 = vmax.f32 %v3886_v16, 0.0  ;;  %v3747_v49 = vadd.f32 %v3715_v1, %v3646_v38  ;;  %v3010_v7 = vmul.f32 %v7200_v43, %v7425_v4  ;;  %v7536_v31 = vld [vmem:[#allocation2 + $0xc8] sm:$0xff] }
 0x531   : > { %v2800_v59 = vpop.f32.mrf.mxu1  ;;  %v3545_v23 = vadd.f32 %v3513_v27, %v3444_v26  ;;  %v3514_v33 = vmul.f32 %v7236_v46, %v7463_v52  ;;  %v3616_v56 = vmul.f32 %v7246_v50, %v7501_v21  ;;  %v3111_v55 = vmul.f32 %v7205_v3, %v7431_v35  ;;  %v7546_v27 = vld [vmem:[#allocation2 + $0xca] sm:$0xff] }
 0x532   : > { %v3344_v6 = vadd.f32 %v3312_v5, %v3243_v28  ;;  %v3950_v0 = vmin.f32 %v3918_v39, 6.0  ;;  %v3848_v11 = vadd.f32 %v3816_v54, %v3747_v49  ;;  %v3717_v57 = vmul.f32 %v7255_v42, %v7511_v32 }
 0x533   : > { %v2803_v12 = vpop.f32.mrf.mxu1  ;;  %v3647_v20 = vadd.f32 %v3615_v14, %v3545_v23  ;;  %v3143_v1 = vadd.f32 %v3111_v55, %v3010_v7  ;;  %v3212_v48 = vmul.f32 %v7212_v19, %v7452_v44  ;;  %v3313_v36 = vmul.f32 %v7222_v61, %v7482_v40  ;;  %v7538_v44 = vld [vmem:[#allocation2 + $0xc9] sm:$0xff]  ;;  %v7563_v23 = vld [vmem:[#allocation2 + $0xd8] sm:$0xff] }
 0x534   : > { %2946 = vst.msk [vmem:[#allocation2 + $0xf1] sm:$0xff] %vm923_vm1, %v2803_v12  ;;  %v3445_v4 = vadd.f32 %v3413_v17, %v3344_v6  ;;  %5229 = vmatmul.mubr.msk.f32.gmra.mxu0 %vm923_vm1, %v3950_v0  ;;  %v3887_v35 = vadd.f32 %v7277_v53, %v3848_v11  ;;  %v3818_v51 = vmul.f32 %v7263_v47, %v7519_v34  ;;  %v7572_v11 = vld [vmem:[#allocation2 + $0xd9] sm:$0xff] }
 0x535   : > { %v2805_v22 = vpop.f32.mrf.mxu1  ;;  %v3748_v54 = vadd.f32 %v3716_v18, %v3647_v20  ;;  %v3414_v29 = vmul.f32 %v7228_v30, %v7488_v24  ;;  %v3244_v10 = vadd.f32 %v3212_v48, %v3143_v1  ;;  %v3011_v63 = vmul.f32 %v7200_v43, %v7454_v2 }
 0x536   : > { %v3546_v60 = vadd.f32 %v3514_v33, %v3445_v4  ;;  %v3112_v58 = vmul.f32 %v7205_v3, %v7456_v62  ;;  %v3919_v37 = vmax.f32 %v3887_v35, 0.0  ;;  %v3515_v41 = vmul.f32 %v7236_v46, %v7490_v25 }
 0x537   : > { %v3849_v8 = vadd.f32 %v3817_v45, %v3748_v54  ;;  %v2808_v15 = vpop.f32.mrf.mxu1  ;;  %v3213_v13 = vmul.f32 %v7212_v19, %v7463_v52  ;;  %v3345_v16 = vadd.f32 %v3313_v36, %v3244_v10  ;;  %v3314_v2 = vmul.f32 %v7222_v61, %v7501_v21  ;;  %v7574_v12 = vld [vmem:[#allocation2 + $0xda] sm:$0xff] }
 0x538   : > { %2947 = vst.msk [vmem:[#allocation2 + $0xf9] sm:$0xff] %vm923_vm1, %v2808_v15  ;;  %v3648_v5 = vadd.f32 %v3616_v56, %v3546_v60  ;;  %v3144_v9 = vadd.f32 %v3112_v58, %v3011_v63  ;;  %v3951_v62 = vmin.f32 %v3919_v37, 6.0  ;;  %v3617_v14 = vmul.f32 %v7246_v50, %v7536_v31  ;;  %v7590_v60 = vld [vmem:[#allocation2 + $0xe0] sm:$0xff] }
 0x539   : > { %v3888_v38 = vadd.f32 %v7277_v53, %v3849_v8  ;;  %v2810_v26 = vpop.f32.mrf.mxu1  ;;  %v3718_v18 = vmul.f32 %v7255_v42, %v7538_v44  ;;  %v3446_v52 = vadd.f32 %v3414_v29, %v3345_v16  ;;  %v3819_v28 = vmul.f32 %v7263_v47, %v7546_v27  ;;  %v7593_v37 = vld [vmem:[#allocation2 + $0xe1] sm:$0xff] }
 0x53a   : > { %v3749_v45 = vadd.f32 %v3717_v57, %v3648_v5  ;;  %v3245_v17 = vadd.f32 %v3213_v13, %v3144_v9  ;;  %5231 = vmatprep.mubr.msk.f32.mxu0 %vm923_vm1, %v3951_v62  ;;  %v3415_v49 = vmul.f32 %v7228_v30, %v7511_v32  ;;  %v3012_v7 = vmul.f32 %v7200_v43, %v7482_v40  ;;  %v7599_v5 = vld [vmem:[#allocation2 + $0xe2] sm:$0xff] }
 0x53b   : > { %v3920_v39 = vmax.f32 %v3888_v38, 0.0  ;;  %v2813_v59 = vpop.f32.mrf.mxu1  ;;  %v3113_v6 = vmul.f32 %v7205_v3, %v7488_v24  ;;  %v3547_v56 = vadd.f32 %v3515_v41, %v3446_v52  ;;  %v3516_v0 = vmul.f32 %v7236_v46, %v7519_v34 }
 0x53c   : > { %v3850_v33 = vadd.f32 %v3818_v51, %v3749_v45  ;;  %2948 = vst.msk [vmem:[#allocation2 + $0x109] sm:$0xff] %vm923_vm1, %v2813_v59  ;;  %v3346_v55 = vadd.f32 %v3314_v2, %v3245_v17  ;;  %v3214_v40 = vmul.f32 %v7212_v19, %v7490_v25  ;;  %v3315_v24 = vmul.f32 %v7222_v61, %v7536_v31 }
 0x53d   : > { %v3952_v20 = vmin.f32 %v3920_v39, 6.0  ;;  %v2815_v57 = vpop.f32.mrf.mxu1  ;;  %v3145_v4 = vadd.f32 %v3113_v6, %v3012_v7  ;;  %v3649_v48 = vadd.f32 %v3617_v14, %v3547_v56  ;;  %v3618_v35 = vmul.f32 %v7246_v50, %v7563_v23  ;;  %v7618_v7 = vld [vmem:[#allocation2 + $0xf0] sm:$0xff] }
 0x53e   : > { %v3889_v1 = vadd.f32 %v7277_v53, %v3850_v33  ;;  %v3447_v36 = vadd.f32 %v3415_v49, %v3346_v55  ;;  %v3719_v54 = vmul.f32 %v7255_v42, %v7572_v11  ;;  %v3820_v51 = vmul.f32 %v7263_v47, %v7574_v12  ;;  %v7620_v6 = vld [vmem:[#allocation2 + $0xf1] sm:$0xff] }
 0x53f   : > { %5232 = vmatmul.mubr.msk.f32.gmra.mxu0 %vm923_vm1, %v3952_v20  ;;  %v2818_v22 = vpop.f32.mrf.mxu1  ;;  %v3246_v25 = vadd.f32 %v3214_v40, %v3145_v4  ;;  %v3416_v29 = vmul.f32 %v7228_v30, %v7538_v44  ;;  %v3750_v63 = vadd.f32 %v3718_v18, %v3649_v48  ;;  %v3013_v8 = vmul.f32 %v7200_v43, %v7501_v21  ;;  %v7628_v57 = vld [vmem:[#allocation2 + $0xf2] sm:$0xff] }
 0x540   : > { %v3921_v10 = vmax.f32 %v3889_v1, 0.0  ;;  %2949 = vst.msk [vmem:[#allocation2 + $0x111] sm:$0xff] %vm923_vm1, %v2818_v22  ;;  %v3548_v58 = vadd.f32 %v3516_v0, %v3447_v36  ;;  %v3517_v13 = vmul.f32 %v7236_v46, %v7546_v27  ;;  %v3114_v16 = vmul.f32 %v7205_v3, %v7511_v32 }
 0x541   : > { %v2820_v15 = vpop.f32.mrf.mxu1  ;;  %v3347_v41 = vadd.f32 %v3315_v24, %v3246_v25  ;;  %v3215_v9 = vmul.f32 %v7212_v19, %v7519_v34  ;;  %v3851_v62 = vadd.f32 %v3819_v28, %v3750_v63  ;;  %v3619_v26 = vmul.f32 %v7246_v50, %v7590_v60 }
 0x542   : > { %v3953_v2 = vmin.f32 %v3921_v10, 6.0  ;;  %v3650_v38 = vadd.f32 %v3618_v35, %v3548_v58  ;;  %v3720_v18 = vmul.f32 %v7255_v42, %v7593_v37  ;;  %v3146_v45 = vadd.f32 %v3114_v16, %v3013_v8  ;;  %v7645_v58 = vld [vmem:[#allocation2 + $0xf8] sm:$0xff] }
 0x543   : > { %v2823_v21 = vpop.f32.mrf.mxu1  ;;  %v3448_v14 = vadd.f32 %v3416_v29, %v3347_v41  ;;  %v3316_v52 = vmul.f32 %v7222_v61, %v7563_v23  ;;  %v3890_v32 = vadd.f32 %v7277_v53, %v3851_v62  ;;  %v3821_v28 = vmul.f32 %v7263_v47, %v7599_v5  ;;  %v7653_v62 = vld [vmem:[#allocation2 + $0xfa] sm:$0xff] }
 0x544   : > { %5234 = vmatprep.mubr.msk.f32.mxu0 %vm923_vm1, %v3953_v2  ;;  %v3751_v34 = vadd.f32 %v3719_v54, %v3650_v38  ;;  %2950 = vst.msk [vmem:[#allocation2 + $0x121] sm:$0xff] %vm923_vm1, %v2823_v21  ;;  %v3417_v17 = vmul.f32 %v7228_v30, %v7572_v11  ;;  %v3247_v49 = vadd.f32 %v3215_v9, %v3146_v45  ;;  %v7651_v2 = vld [vmem:[#allocation2 + $0xf9] sm:$0xff] }
 0x545   : > { %v2825_v39 = vpop.f32.mrf.mxu1  ;;  %v3549_v59 = vadd.f32 %v3517_v13, %v3448_v14  ;;  %v3014_v33 = vmul.f32 %v7200_v43, %v7536_v31  ;;  %v3115_v56 = vmul.f32 %v7205_v3, %v7538_v44  ;;  %v3922_v55 = vmax.f32 %v3890_v32, 0.0 }
 0x546   : > { %v3852_v0 = vadd.f32 %v3820_v51, %v3751_v34  ;;  %v3518_v20 = vmul.f32 %v7236_v46, %v7574_v12  ;;  %v3216_v4 = vmul.f32 %v7212_v19, %v7546_v27  ;;  %v3348_v1 = vadd.f32 %v3316_v52, %v3247_v49  ;;  %v7665_v52 = vld [vmem:[#allocation2 + $0x108] sm:$0xff]  ;;  %v7679_v49 = vld [vmem:[%s8131_s10] ss:$0 sm:$0xff] }
 0x547   : > { %v3651_v40 = vadd.f32 %v3619_v26, %v3549_v59  ;;  %v2828_v24 = vpop.f32.mrf.mxu1  ;;  %v3147_v48 = vadd.f32 %v3115_v56, %v3014_v33  ;;  %v3317_v31 = vmul.f32 %v7222_v61, %v7590_v60  ;;  %v3954_v36 = vmin.f32 %v3922_v55, 6.0  ;;  %v7674_v34 = vld [vmem:[#allocation2 + $0x109] sm:$0xff] }
 0x548   : > { %v3891_v44 = vadd.f32 %v7277_v53, %v3852_v0  ;;  %2951 = vst.msk [vmem:[#allocation2 + $0x129] sm:$0xff] %vm923_vm1, %v2828_v24  ;;  %v3620_v35 = vmul.f32 %v7246_v50, %v7618_v7  ;;  %v3721_v22 = vmul.f32 %v7255_v42, %v7620_v6  ;;  %v3449_v51 = vadd.f32 %v3417_v17, %v3348_v1  ;;  %v7688_v0 = vld [vmem:[#allocation2 + $0x10a] sm:$0xff] }
 0x549   : > { %v3752_v54 = vadd.f32 %v3720_v18, %v3651_v40  ;;  %v2830_v27 = vpop.f32.mrf.mxu1  ;;  %v3822_v25 = vmul.f32 %v7263_v47, %v7628_v57  ;;  %v3248_v29 = vadd.f32 %v3216_v4, %v3147_v48  ;;  %5235 = vmatmul.mubr.msk.f32.gmra.mxu0 %vm923_vm1, %v3954_v36  ;;  %v3418_v63 = vmul.f32 %v7228_v30, %v7593_v37 }
 0x54a   : > { %v3923_v10 = vmax.f32 %v3891_v44, 0.0  ;;  %v3015_v8 = vmul.f32 %v7200_v43, %v7563_v23  ;;  %v3116_v15 = vmul.f32 %v7205_v3, %v7572_v11  ;;  %v3550_v13 = vadd.f32 %v3518_v20, %v3449_v51  ;;  %v7693_v20 = vld [vmem:[%s8131_s10 + $0x1] ss:$0 sm:$0xff] }
 0x54b   : > { %v3853_v41 = vadd.f32 %v3821_v28, %v3752_v54  ;;  %v2833_v16 = vpop.f32.mrf.mxu1  ;;  %v3349_v9 = vadd.f32 %v3317_v31, %v3248_v29  ;;  %v3217_v38 = vmul.f32 %v7212_v19, %v7574_v12  ;;  %v3519_v43 = vmul.f32 %v7236_v46, %v7599_v5 }
 0x54c   : > { %v3955_v26 = vmin.f32 %v3923_v10, 6.0  ;;  %2952 = vst.msk [vmem:[#allocation2 + $0x139] sm:$0xff] %vm923_vm1, %v2833_v16  ;;  %v3148_v23 = vadd.f32 %v3116_v15, %v3015_v8  ;;  %v3318_v3 = vmul.f32 %v7222_v61, %v7618_v7  ;;  %v3652_v21 = vadd.f32 %v3620_v35, %v3550_v13  ;;  %v7725_v10 = vld [vmem:[#allocation2 + $0x110] sm:$0xff] }
 0x54d   : > { %v3892_v11 = vadd.f32 %v7277_v53, %v3853_v41  ;;  %v2835_v14 = vpop.f32.mrf.mxu1  ;;  %v3450_v18 = vadd.f32 %v3418_v63, %v3349_v9  ;;  %v3621_v45 = vmul.f32 %v7246_v50, %v7645_v58  ;;  %v3722_v19 = vmul.f32 %v7255_v42, %v7651_v2  ;;  %v7727_v63 = vld [vmem:[#allocation2 + $0x111] sm:$0xff]  ;;  %v7736_v9 = vld [vmem:[%s8131_s10 + $0x5] ss:$0 sm:$0xff] }
 0x54e   : > { %5237 = vmatprep.mubr.msk.f32.mxu0 %vm923_vm1, %v3955_v26  ;;  %v3823_v12 = vmul.f32 %v7263_v47, %v7653_v62  ;;  %v3249_v32 = vadd.f32 %v3217_v38, %v3148_v23  ;;  %v3419_v61 = vmul.f32 %v7228_v30, %v7620_v6  ;;  %v3753_v17 = vadd.f32 %v3721_v22, %v3652_v21  ;;  %v7740_v26 = vld [vmem:[#allocation2 + $0x112] sm:$0xff]  ;;  %v7750_v14 = vld [vmem:[%s8131_s10 + $0x6] ss:$0 sm:$0xff] }
 0x54f   : > { %v3924_v28 = vmax.f32 %v3892_v11, 0.0  ;;  %v3551_v39 = vadd.f32 %v3519_v43, %v3450_v18  ;;  %v2838_v59 = vpop.f32.mrf.mxu1  ;;  %v3016_v33 = vmul.f32 %v7679_v49, %v7590_v60  ;;  %v3520_v30 = vmul.f32 %v7236_v46, %v7628_v57 }
 0x550   : > { %2953 = vst.msk [vmem:[#allocation2 + $0x141] sm:$0xff] %vm923_vm1, %v2838_v59  ;;  %v3350_v56 = vadd.f32 %v3318_v3, %v3249_v32  ;;  %v3622_v55 = vmul.f32 %v7246_v50, %v7665_v52  ;;  %v3117_v4 = vmul.f32 %v7693_v20, %v7593_v37  ;;  %v3854_v40 = vadd.f32 %v3822_v25, %v3753_v17  ;;  %v7702_v50 = vld [vmem:[%s8131_s10 + $0x2] ss:$0 sm:$0xff]  ;;  %v7709_v37 = vld [vmem:[%s8131_s10 + $0x3] ss:$0 sm:$0xff] }
 0x551   : > { %v3956_v60 = vmin.f32 %v3924_v28, 6.0  ;;  %v3653_v24 = vadd.f32 %v3621_v45, %v3551_v39  ;;  %v2840_v1 = vpop.f32.mrf.mxu1  ;;  %v3723_v46 = vmul.f32 %v7255_v42, %v7674_v34  ;;  %v3218_v36 = vmul.f32 %v7702_v50, %v7599_v5  ;;  %v7720_v5 = vld [vmem:[%s8131_s10 + $0x4] ss:$0 sm:$0xff] }
 0x552   : > { %v3451_v48 = vadd.f32 %v3419_v61, %v3350_v56  ;;  %v3149_v31 = vadd.f32 %v3117_v4, %v3016_v33  ;;  %v3319_v44 = vmul.f32 %v7709_v37, %v7645_v58  ;;  %v3893_v35 = vadd.f32 %v7277_v53, %v3854_v40  ;;  %v7762_v59 = vld [vmem:[#allocation2 + $0x120] sm:$0xff] }
 0x553   : > { %5238 = vmatmul.mubr.msk.f32.gmra.mxu0 %vm923_vm1, %v3956_v60  ;;  %v3754_v22 = vadd.f32 %v3722_v19, %v3653_v24  ;;  %v3824_v54 = vmul.f32 %v7263_v47, %v7688_v0  ;;  %v2843_v27 = vpop.f32.mrf.mxu1  ;;  %v3420_v51 = vmul.f32 %v7720_v5, %v7651_v2  ;;  %v3017_v8 = vmul.f32 %v7679_v49, %v7618_v7  ;;  %v7770_v4 = vld [vmem:[#allocation2 + $0x121] sm:$0xff] }
 0x554   : > { %v3552_v25 = vadd.f32 %v3520_v30, %v3451_v48  ;;  %2954 = vst.msk [vmem:[#allocation2 + $0x151] sm:$0xff] %vm923_vm1, %v2843_v27  ;;  %v3250_v29 = vadd.f32 %v3218_v36, %v3149_v31  ;;  %v3118_v15 = vmul.f32 %v7693_v20, %v7620_v6  ;;  %v3925_v41 = vmax.f32 %v3893_v35, 0.0  ;;  %v7772_v60 = vld [vmem:[#allocation2 + $0x122] sm:$0xff] }
 0x555   : > { %v3855_v13 = vadd.f32 %v3823_v12, %v3754_v22  ;;  %v2845_v16 = vpop.f32.mrf.mxu1  ;;  %v3521_v38 = vmul.f32 %v7736_v9, %v7653_v62  ;;  %v3219_v43 = vmul.f32 %v7702_v50, %v7628_v57  ;;  %v3320_v6 = vmul.f32 %v7709_v37, %v7665_v52 }
 0x556   : > { %v3654_v7 = vadd.f32 %v3622_v55, %v3552_v25  ;;  %v3351_v23 = vadd.f32 %v3319_v44, %v3250_v29  ;;  %v3150_v3 = vadd.f32 %v3118_v15, %v3017_v8  ;;  %v3957_v11 = vmin.f32 %v3925_v41, 6.0  ;;  %v7786_v44 = vld [vmem:[%s8131_s10 + $0x7] ss:$0 sm:$0xff]  ;;  %v7801_v15 = vld [vmem:[#allocation2 + $0x129] sm:$0xff] }
 0x557   : > { %v3894_v21 = vadd.f32 %v7277_v53, %v3855_v13  ;;  %v3623_v18 = vmul.f32 %v7750_v14, %v7725_v10  ;;  %v3724_v57 = vmul.f32 %v7255_v42, %v7727_v63  ;;  %v2848_v45 = vpop.f32.mrf.mxu1  ;;  %v3825_v32 = vmul.f32 %v7263_v47, %v7740_v26 }
 0x558   : > { %v3755_v19 = vadd.f32 %v3723_v46, %v3654_v7  ;;  %v3452_v12 = vadd.f32 %v3420_v51, %v3351_v23  ;;  %2955 = vst.msk [vmem:[#allocation2 + $0x159] sm:$0xff] %vm923_vm1, %v2848_v45  ;;  %v3251_v61 = vadd.f32 %v3219_v43, %v3150_v3  ;;  %5240 = vmatprep.mubr.msk.f32.mxu0 %vm923_vm1, %v3957_v11  ;;  %v7799_v51 = vld [vmem:[#allocation2 + $0x128] sm:$0xff] }
 0x559   : > { %v3926_v28 = vmax.f32 %v3894_v21, 0.0  ;;  %v2850_v17 = vpop.f32.mrf.mxu1  ;;  %v3421_v39 = vmul.f32 %v7720_v5, %v7674_v34  ;;  %v3018_v42 = vmul.f32 %v7679_v49, %v7645_v58  ;;  %v3119_v33 = vmul.f32 %v7693_v20, %v7651_v2 }
 0x55a   : > { %v3856_v56 = vadd.f32 %v3824_v54, %v3755_v19  ;;  %v3553_v47 = vadd.f32 %v3521_v38, %v3452_v12  ;;  %v3352_v30 = vadd.f32 %v3320_v6, %v3251_v61  ;;  %v3522_v55 = vmul.f32 %v7736_v9, %v7688_v0  ;;  %v7807_v38 = vld [vmem:[#allocation2 + $0x12a] sm:$0xff] }
 0x55b   : > { %v3958_v40 = vmin.f32 %v3926_v28, 6.0  ;;  %v2853_v24 = vpop.f32.mrf.mxu1  ;;  %v3151_v1 = vadd.f32 %v3119_v33, %v3018_v42  ;;  %v3220_v46 = vmul.f32 %v7702_v50, %v7653_v62  ;;  %v3321_v58 = vmul.f32 %v7709_v37, %v7725_v10  ;;  %v7833_v42 = vld [vmem:[#allocation2 + $0x139] sm:$0xff] }
 0x55c   : > { %v3895_v2 = vadd.f32 %v7277_v53, %v3856_v56  ;;  %v3655_v48 = vadd.f32 %v3623_v18, %v3553_v47  ;;  %v3453_v31 = vadd.f32 %v3421_v39, %v3352_v30  ;;  %v3624_v36 = vmul.f32 %v7750_v14, %v7762_v59  ;;  %2956 = vst.msk [vmem:[#allocation2 + $0x169] sm:$0xff] %vm923_vm1, %v2853_v24  ;;  %v7793_v53 = vld [vmem:[%s8131_s10 + $0x8] ss:$0 sm:$0xff]  ;;  %v7831_v39 = vld [vmem:[#allocation2 + $0x138] sm:$0xff] }
 0x55d   : > { %5241 = vmatmul.mubr.msk.f32.gmra.mxu0 %vm923_vm1, %v3958_v40  ;;  %v3725_v62 = vmul.f32 %v7786_v44, %v7770_v4  ;;  %v3826_v35 = vmul.f32 %v7793_v53, %v7772_v60  ;;  %v2855_v22 = vpop.f32.mrf.mxu1  ;;  %v3252_v54 = vadd.f32 %v3220_v46, %v3151_v1  ;;  %v3422_v27 = vmul.f32 %v7720_v5, %v7727_v63  ;;  %v7841_v24 = vld [vmem:[#allocation2 + $0x13a] sm:$0xff] }
 0x55e   : > { %v3927_v25 = vmax.f32 %v3895_v2, 0.0  ;;  %v3756_v29 = vadd.f32 %v3724_v57, %v3655_v48  ;;  %v3554_v8 = vadd.f32 %v3522_v55, %v3453_v31  ;;  %v3019_v41 = vmul.f32 %v7679_v49, %v7665_v52 }
 0x55f   : > { %v3353_v13 = vadd.f32 %v3321_v58, %v3252_v54  ;;  %v3523_v16 = vmul.f32 %v7736_v9, %v7740_v26  ;;  %v2858_v43 = vpop.f32.mrf.mxu1  ;;  %v3120_v7 = vmul.f32 %v7693_v20, %v7674_v34  ;;  %v3221_v23 = vmul.f32 %v7702_v50, %v7688_v0  ;;  %v7824_v0 = vld [vmem:[%s8132_s11] ss:$0 sm:$0xff] }
 0x560   : > { %v3959_v3 = vmin.f32 %v3927_v25, 6.0  ;;  %v3857_v6 = vadd.f32 %v3825_v32, %v3756_v29  ;;  %v3656_v11 = vadd.f32 %v3624_v36, %v3554_v8  ;;  %v3625_v21 = vmul.f32 %v7750_v14, %v7799_v51  ;;  %2957 = vst.msk [vmem:[#allocation2 + $0x171] sm:$0xff] %vm923_vm1, %v2858_v43  ;;  %v7858_v8 = vld [vmem:[#allocation2 + $0x140] sm:$0xff] }
 0x561   : > { %v3454_v52 = vadd.f32 %v3422_v27, %v3353_v13  ;;  %v3726_v18 = vmul.f32 %v7786_v44, %v7801_v15  ;;  %v2860_v57 = vpop.f32.mrf.mxu1  ;;  %v3152_v45 = vadd.f32 %v3120_v7, %v3019_v41  ;;  %v3322_v34 = vmul.f32 %v7709_v37, %v7762_v59 }
 0x562   : > { %5243 = vmatprep.mubr.msk.f32.mxu0 %vm923_vm1, %v3959_v3  ;;  %v3896_v19 = vadd.f32 %v7824_v0, %v3857_v6  ;;  %v3757_v12 = vadd.f32 %v3725_v62, %v3656_v11  ;;  %v3827_v32 = vmul.f32 %v7793_v53, %v7807_v38  ;;  %v3423_v61 = vmul.f32 %v7720_v5, %v7770_v4  ;;  %v7867_v3 = vld [vmem:[#allocation2 + $0x142] sm:$0xff] }
 0x563   : > { %v3555_v28 = vadd.f32 %v3523_v16, %v3454_v52  ;;  %v3253_v17 = vadd.f32 %v3221_v23, %v3152_v45  ;;  %v2863_v33 = vpop.f32.mrf.mxu1  ;;  %v3020_v56 = vmul.f32 %v7679_v49, %v7725_v10  ;;  %v3121_v47 = vmul.f32 %v7693_v20, %v7727_v63  ;;  %v7865_v23 = vld [vmem:[#allocation2 + $0x141] sm:$0xff] }
 0x564   : > { %v3928_v30 = vmax.f32 %v3896_v19, 0.0  ;;  %v3858_v55 = vadd.f32 %v3826_v35, %v3757_v12  ;;  %v3524_v40 = vmul.f32 %v7736_v9, %v7772_v60  ;;  %2958 = vst.msk [vmem:[#allocation2 + $0x181] sm:$0xff] %vm923_vm1, %v2863_v33  ;;  %v3222_v1 = vmul.f32 %v7702_v50, %v7740_v26  ;;  %v7878_v19 = vld [vmem:[#allocation2 + $0x150] sm:$0xff] }
 0x565   : > { %v3657_v46 = vadd.f32 %v3625_v21, %v3555_v28  ;;  %v3354_v58 = vadd.f32 %v3322_v34, %v3253_v17  ;;  %v2865_v2 = vpop.f32.mrf.mxu1  ;;  %v3153_v48 = vadd.f32 %v3121_v47, %v3020_v56  ;;  %v3323_v10 = vmul.f32 %v7709_v37, %v7799_v51  ;;  %v7887_v28 = vld [vmem:[#allocation2 + $0x151] sm:$0xff] }
 0x566   : > { %v3960_v63 = vmin.f32 %v3928_v30, 6.0  ;;  %v3897_v31 = vadd.f32 %v7824_v0, %v3858_v55  ;;  %v3626_v36 = vmul.f32 %v7750_v14, %v7831_v39  ;;  %v3727_v62 = vmul.f32 %v7786_v44, %v7833_v42 }
 0x567   : > { %v3758_v35 = vadd.f32 %v3726_v18, %v3657_v46  ;;  %v3455_v22 = vadd.f32 %v3423_v61, %v3354_v58  ;;  %v3828_v26 = vmul.f32 %v7793_v53, %v7841_v24  ;;  %v3254_v54 = vadd.f32 %v3222_v1, %v3153_v48  ;;  %v2868_v27 = vpop.f32.mrf.mxu1  ;;  %v7895_v1 = vld [vmem:[#allocation2 + $0x152] sm:$0xff] }
 0x568   : > { %5244 = vmatmul.mubr.msk.f32.gmra.mxu0 %vm923_vm1, %v3960_v63  ;;  %v3929_v25 = vmax.f32 %v3897_v31, 0.0  ;;  %v3424_v29 = vmul.f32 %v7720_v5, %v7801_v15  ;;  %2959 = vst.msk [vmem:[#allocation2 + $0x189] sm:$0xff] %vm923_vm1, %v2868_v27  ;;  %v3021_v41 = vmul.f32 %v7679_v49, %v7762_v59  ;;  %v3122_v13 = vmul.f32 %v7693_v20, %v7770_v4  ;;  %v7911_v27 = vld [vmem:[#allocation2 + $0x158] sm:$0xff] }
 0x569   : > { %v3859_v16 = vadd.f32 %v3827_v32, %v3758_v35  ;;  %v3556_v43 = vadd.f32 %v3524_v40, %v3455_v22  ;;  %v3355_v7 = vadd.f32 %v3323_v10, %v3254_v54  ;;  %v2870_v6 = vpop.f32.mrf.mxu1  ;;  %v3223_v11 = vmul.f32 %v7702_v50, %v7772_v60 }
 0x56a   : > { %v3961_v21 = vmin.f32 %v3929_v25, 6.0  ;;  %v3525_v52 = vmul.f32 %v7736_v9, %v7807_v38  ;;  %v3154_v18 = vadd.f32 %v3122_v13, %v3021_v41  ;;  %v3324_v59 = vmul.f32 %v7709_v37, %v7831_v39  ;;  %v7913_v25 = vld [vmem:[#allocation2 + $0x159] sm:$0xff] }
 0x56b   : > { %v3898_v4 = vadd.f32 %v7824_v0, %v3859_v16  ;;  %v3658_v57 = vadd.f32 %v3626_v36, %v3556_v43  ;;  %v3456_v45 = vadd.f32 %v3424_v29, %v3355_v7  ;;  %v3627_v34 = vmul.f32 %v7750_v14, %v7858_v8  ;;  %v7921_v43 = vld [vmem:[#allocation2 + $0x15a] sm:$0xff] }
 0x56c   : > { %5246 = vmatprep.mubr.msk.f32.mxu0 %vm923_vm1, %v3961_v21  ;;  %v3728_v60 = vmul.f32 %v7786_v44, %v7865_v23  ;;  %v3829_v12 = vmul.f32 %v7793_v53, %v7867_v3  ;;  %v3255_v32 = vadd.f32 %v3223_v11, %v3154_v18  ;;  %v3425_v61 = vmul.f32 %v7720_v5, %v7833_v42 }
 0x56d   : > { %v3930_v17 = vmax.f32 %v3898_v4, 0.0  ;;  %v3759_v33 = vadd.f32 %v3727_v62, %v3658_v57  ;;  %v3557_v56 = vadd.f32 %v3525_v52, %v3456_v45  ;;  %v3022_v47 = vmul.f32 %v7679_v49, %v7799_v51 }
 0x56e   : > { %v3356_v30 = vadd.f32 %v3324_v59, %v3255_v32  ;;  %v3526_v55 = vmul.f32 %v7736_v9, %v7841_v24  ;;  %v3628_v40 = vmul.f32 %v7750_v14, %v7878_v19  ;;  %v3123_v46 = vmul.f32 %v7693_v20, %v7801_v15 }
 0x56f   : > { %v3962_v58 = vmin.f32 %v3930_v17, 6.0  ;;  %v3860_v2 = vadd.f32 %v3828_v26, %v3759_v33  ;;  %v3659_v48 = vadd.f32 %v3627_v34, %v3557_v56  ;;  %v3729_v10 = vmul.f32 %v7786_v44, %v7887_v28 }
 0x570   : > { %v3457_v63 = vadd.f32 %v3425_v61, %v3356_v30  ;;  %v3155_v51 = vadd.f32 %v3123_v46, %v3022_v47  ;;  %v3224_v31 = vmul.f32 %v7702_v50, %v7807_v38  ;;  %v3325_v36 = vmul.f32 %v7709_v37, %v7858_v8  ;;  %v7945_v30 = vld [vmem:[#allocation2 + $0x169] sm:$0xff] }
 0x571   : > { %5247 = vmatmul.mubr.msk.f32.gmra.mxu0 %vm923_vm1, %v3962_v58  ;;  %v3899_v62 = vadd.f32 %v7824_v0, %v3860_v2  ;;  %v3760_v35 = vadd.f32 %v3728_v60, %v3659_v48  ;;  %v3830_v15 = vmul.f32 %v7793_v53, %v7895_v1  ;;  %v3426_v22 = vmul.f32 %v7720_v5, %v7865_v23 }
 0x572   : > { %v3558_v26 = vadd.f32 %v3526_v55, %v3457_v63  ;;  %v3256_v54 = vadd.f32 %v3224_v31, %v3155_v51  ;;  %v3023_v38 = vmul.f32 %v7679_v49, %v7831_v39  ;;  %v3124_v29 = vmul.f32 %v7693_v20, %v7833_v42  ;;  %v7947_v55 = vld [vmem:[#allocation2 + $0x16a] sm:$0xff] }
 0x573   : > { %v3931_v41 = vmax.f32 %v3899_v62, 0.0  ;;  %v3861_v13 = vadd.f32 %v3829_v12, %v3760_v35  ;;  %v3527_v16 = vmul.f32 %v7736_v9, %v7867_v3  ;;  %v3225_v7 = vmul.f32 %v7702_v50, %v7841_v24  ;;  %v7937_v12 = vld [vmem:[#allocation2 + $0x168] sm:$0xff] }
 0x574   : > { %v3660_v6 = vadd.f32 %v3628_v40, %v3558_v26  ;;  %v3357_v11 = vadd.f32 %v3325_v36, %v3256_v54  ;;  %v3156_v21 = vadd.f32 %v3124_v29, %v3023_v38  ;;  %v3326_v52 = vmul.f32 %v7709_v37, %v7878_v19  ;;  %v7963_v36 = vld [vmem:[#allocation2 + $0x170] sm:$0xff] }
 0x575   : > { %v3963_v39 = vmin.f32 %v3931_v41, 6.0  ;;  %v3900_v18 = vadd.f32 %v7824_v0, %v3861_v13  ;;  %v3629_v42 = vmul.f32 %v7750_v14, %v7911_v27  ;;  %v3730_v59 = vmul.f32 %v7786_v44, %v7913_v25  ;;  %v7971_v29 = vld [vmem:[#allocation2 + $0x172] sm:$0xff] }
 0x576   : > { %v3761_v4 = vadd.f32 %v3729_v10, %v3660_v6  ;;  %v3458_v57 = vadd.f32 %v3426_v22, %v3357_v11  ;;  %v3831_v24 = vmul.f32 %v7793_v53, %v7921_v43  ;;  %v3257_v45 = vadd.f32 %v3225_v7, %v3156_v21  ;;  %v7965_v22 = vld [vmem:[#allocation2 + $0x171] sm:$0xff] }
 0x577   : > { %5249 = vmatprep.mubr.msk.f32.mxu0 %vm923_vm1, %v3963_v39  ;;  %v3932_v34 = vmax.f32 %v3900_v18, 0.0  ;;  %v3427_v60 = vmul.f32 %v7720_v5, %v7887_v28  ;;  %v3024_v32 = vmul.f32 %v7679_v49, %v7858_v8  ;;  %v3125_v61 = vmul.f32 %v7693_v20, %v7865_v23 }
 0x578   : > { %v3862_v17 = vadd.f32 %v3830_v15, %v3761_v4  ;;  %v3559_v33 = vadd.f32 %v3527_v16, %v3458_v57  ;;  %v3358_v56 = vadd.f32 %v3326_v52, %v3257_v45  ;;  %v3528_v47 = vmul.f32 %v7736_v9, %v7895_v1  ;;  %v3595_v57 = vld [vmem:[#allocation2 + $0x180] sm:$0xff] }
 0x579   : > { %v3964_v40 = vmin.f32 %v3932_v34, 6.0  ;;  %v3157_v46 = vadd.f32 %v3125_v61, %v3024_v32  ;;  %v3226_v58 = vmul.f32 %v7702_v50, %v7867_v3  ;;  %v3327_v8 = vmul.f32 %v7709_v37, %v7911_v27 }
 0x57a   : > { %v3901_v23 = vadd.f32 %v7824_v0, %v3862_v17  ;;  %v3661_v2 = vadd.f32 %v3629_v42, %v3559_v33  ;;  %v3459_v48 = vadd.f32 %v3427_v60, %v3358_v56  ;;  %v3630_v10 = vmul.f32 %v7750_v14, %v7937_v12  ;;  %v3797_v17 = vld [vmem:[#allocation2 + $0x182] sm:$0xff] }
 0x57b   : > { %5250 = vmatmul.mubr.msk.f32.gmra.mxu0 %vm923_vm1, %v3964_v40  ;;  %v3731_v63 = vmul.f32 %v7786_v44, %v7945_v30  ;;  %v3832_v51 = vmul.f32 %v7793_v53, %v7947_v55  ;;  %v3258_v31 = vadd.f32 %v3226_v58, %v3157_v46  ;;  %v3428_v3 = vmul.f32 %v7720_v5, %v7913_v25 }
 0x57c   : > { %v3933_v62 = vmax.f32 %v3901_v23, 0.0  ;;  %v3762_v35 = vadd.f32 %v3730_v59, %v3661_v2  ;;  %v3560_v15 = vadd.f32 %v3528_v47, %v3459_v48  ;;  %v3025_v26 = vmul.f32 %v7679_v49, %v7878_v19 }
 0x57d   : > { %v3359_v54 = vadd.f32 %v3327_v8, %v3258_v31  ;;  %v3529_v38 = vmul.f32 %v7736_v9, %v7921_v43  ;;  %v3126_v41 = vmul.f32 %v7693_v20, %v7887_v28  ;;  %v3227_v13 = vmul.f32 %v7702_v50, %v7895_v1 }
 0x57e   : > { %v3965_v16 = vmin.f32 %v3933_v62, 6.0  ;;  %v3863_v7 = vadd.f32 %v3831_v24, %v3762_v35  ;;  %v3662_v6 = vadd.f32 %v3630_v10, %v3560_v15  ;;  %v3631_v11 = vmul.f32 %v7750_v14, %v7963_v36  ;;  %v3696_v24 = vld [vmem:[#allocation2 + $0x181] sm:$0xff] }
 0x57f   : > { %v3460_v21 = vadd.f32 %v3428_v3, %v3359_v54  ;;  %v3732_v19 = vmul.f32 %v7786_v44, %v7965_v22  ;;  %v3158_v52 = vadd.f32 %v3126_v41, %v3025_v26  ;;  %v3328_v39 = vmul.f32 %v7709_v37, %v7937_v12  ;;  %v3697_v26 = vld [vmem:[#allocation2 + $0x189] sm:$0xff] }
 0x580   : > { %5252 = vmatprep.mubr.msk.f32.mxu0 %vm923_vm1, %v3965_v16  ;;  %v3902_v28 = vadd.f32 %v7824_v0, %v3863_v7  ;;  %v3763_v18 = vadd.f32 %v3731_v63, %v3662_v6  ;;  %v3833_v1 = vmul.f32 %v7793_v53, %v7971_v29  ;;  %v3429_v42 = vmul.f32 %v7720_v5, %v7945_v30 }
 0x581   : > { %v3561_v59 = vadd.f32 %v3529_v38, %v3460_v21  ;;  %v3259_v4 = vadd.f32 %v3227_v13, %v3158_v52  ;;  %v3026_v45 = vmul.f32 %v7679_v49, %v7911_v27  ;;  %v3127_v34 = vmul.f32 %v7693_v20, %v7913_v25 }
 0x582   : > { %v3934_v60 = vmax.f32 %v3902_v28, 0.0  ;;  %v3864_v32 = vadd.f32 %v3832_v51, %v3763_v18  ;;  %v3530_v61 = vmul.f32 %v7736_v9, %v7947_v55  ;;  %v3228_v33 = vmul.f32 %v7702_v50, %v7921_v43  ;;  %v3596_v51 = vld [vmem:[#allocation2 + $0x188] sm:$0xff] }
 0x583   : > { %v3663_v56 = vadd.f32 %v3631_v11, %v3561_v59  ;;  %v3360_v47 = vadd.f32 %v3328_v39, %v3259_v4  ;;  %v3159_v40 = vadd.f32 %v3127_v34, %v3026_v45  ;;  %v3329_v46 = vmul.f32 %v7709_v37, %v7963_v36  ;;  %v3798_v18 = vld [vmem:[#allocation2 + $0x18a] sm:$0xff] }
 0x584   : > { %v3966_v58 = vmin.f32 %v3934_v60, 6.0  ;;  %v3903_v27 = vadd.f32 %v7824_v0, %v3864_v32  ;;  %v3632_v25 = vmul.f32 %v7750_v14, %v3595_v57  ;;  %v3733_v8 = vmul.f32 %v7786_v44, %v3696_v24  ;;  %v3698_v32 = vld [vmem:[#allocation2 + $0x199] sm:$0xff] }
 0x585   : > { %v3764_v23 = vadd.f32 %v3732_v19, %v3663_v56  ;;  %v3461_v2 = vadd.f32 %v3429_v42, %v3360_v47  ;;  %v3834_v48 = vmul.f32 %v7793_v53, %v3797_v17  ;;  %v3260_v10 = vadd.f32 %v3228_v33, %v3159_v40  ;;  %v3597_v19 = vld [vmem:[#allocation2 + $0x198] sm:$0xff] }
 0x586   : > { %5253 = vmatmul.mubr.msk.f32.gmra.mxu0 %vm923_vm1, %v3966_v58  ;;  %v3935_v43 = vmax.f32 %v3903_v27, 0.0  ;;  %v3430_v63 = vmul.f32 %v7720_v5, %v7965_v22  ;;  %v3027_v31 = vmul.f32 %v7679_v49, %v7937_v12  ;;  %v3128_v3 = vmul.f32 %v7693_v20, %v7945_v30  ;;  %v3598_v27 = vld [vmem:[#allocation2 + $0x1a0] sm:$0xff] }
 0x587   : > { %v3865_v62 = vadd.f32 %v3833_v1, %v3764_v23  ;;  %v3562_v35 = vadd.f32 %v3530_v61, %v3461_v2  ;;  %v3361_v15 = vadd.f32 %v3329_v46, %v3260_v10  ;;  %v3229_v54 = vmul.f32 %v7702_v50, %v7947_v55  ;;  %v3699_v2 = vld [vmem:[#allocation2 + $0x1a1] sm:$0xff] }
 0x588   : > { %v3967_v38 = vmin.f32 %v3935_v43, 6.0  ;;  %v3531_v41 = vmul.f32 %v7736_v9, %v7971_v29  ;;  %v3160_v13 = vadd.f32 %v3128_v3, %v3027_v31  ;;  %v3330_v16 = vmul.f32 %v7709_v37, %v3595_v57  ;;  %v3800_v31 = vld [vmem:[#allocation2 + $0x1a2] sm:$0xff] }
 0x589   : > { %v3904_v7 = vadd.f32 %v7824_v0, %v3865_v62  ;;  %v3664_v12 = vadd.f32 %v3632_v25, %v3562_v35  ;;  %v3462_v6 = vadd.f32 %v3430_v63, %v3361_v15  ;;  %v3633_v30 = vmul.f32 %v7750_v14, %v3596_v51 }
 0x58a   : > { %5255 = vmatprep.mubr.msk.f32.mxu0 %vm923_vm1, %v3967_v38  ;;  %v3734_v11 = vmul.f32 %v7786_v44, %v3697_v26  ;;  %v3261_v21 = vadd.f32 %v3229_v54, %v3160_v13  ;;  %v3028_v28 = vmul.f32 %v7679_v49, %v7963_v36  ;;  %v3431_v42 = vmul.f32 %v7720_v5, %v3696_v24 }
 0x58b   : > { %v3936_v55 = vmax.f32 %v3904_v7, 0.0  ;;  %v3765_v52 = vadd.f32 %v3733_v8, %v3664_v12  ;;  %v3563_v39 = vadd.f32 %v3531_v41, %v3462_v6  ;;  %v3532_v59 = vmul.f32 %v7736_v9, %v3797_v17  ;;  %v8049_v12 = vld [vmem:[%s8134_s13] ss:$0 sm:$0xff] }
 0x58c   : > { %v3362_v1 = vadd.f32 %v3330_v16, %v3261_v21  ;;  %v3129_v4 = vmul.f32 %v7693_v20, %v7965_v22  ;;  %v3634_v60 = vmul.f32 %v7750_v14, %v3597_v19  ;;  %v3230_v49 = vmul.f32 %v7702_v50, %v7971_v29  ;;  %v3799_v22 = vld [vmem:[#allocation2 + $0x19a] sm:$0xff] }
 0x58d   : > { %v3968_v57 = vmin.f32 %v3936_v55, 6.0  ;;  %v3866_v45 = vadd.f32 %v3834_v48, %v3765_v52  ;;  %v3665_v34 = vadd.f32 %v3633_v30, %v3563_v39  ;;  %v3331_v36 = vmul.f32 %v7709_v37, %v3596_v51 }
 0x58e   : > { %v3463_v61 = vadd.f32 %v3431_v42, %v3362_v1  ;;  %v3161_v33 = vadd.f32 %v3129_v4, %v3028_v28  ;;  %v3835_v20 = vmul.f32 %v7793_v53, %v3798_v18  ;;  %v3735_v47 = vmul.f32 %v7786_v44, %v3698_v32 }
 0x58f   : > { %5256 = vmatmul.mubr.msk.f32.gmra.mxu0 %vm923_vm1, %v3968_v57  ;;  %v3905_v24 = vadd.f32 %v7824_v0, %v3866_v45  ;;  %v3766_v17 = vadd.f32 %v3734_v11, %v3665_v34  ;;  %v3836_v50 = vmul.f32 %v7793_v53, %v3799_v22  ;;  %v3432_v37 = vmul.f32 %v7720_v5, %v3697_v26 }
 0x590   : > { %v3564_v56 = vadd.f32 %v3532_v59, %v3463_v61  ;;  %v3262_v40 = vadd.f32 %v3230_v49, %v3161_v33  ;;  %v3533_v43 = vmul.f32 %v7736_v9, %v3798_v18  ;;  %v3635_v63 = vmul.f32 %v7750_v14, %v3598_v27 }
 0x591   : > { %v3937_v46 = vmax.f32 %v3905_v24, 0.0  ;;  %v3867_v58 = vadd.f32 %v3835_v20, %v3766_v17  ;;  %v3736_v35 = vmul.f32 %v7786_v44, %v3699_v2  ;;  %v3837_v54 = vmul.f32 %v7793_v53, %v3800_v31 }
 0x592   : > { %v3666_v25 = vadd.f32 %v3634_v60, %v3564_v56  ;;  %v3363_v29 = vadd.f32 %v3331_v36, %v3262_v40 }
 0x593   : > { %v3969_v8 = vmin.f32 %v3937_v46, 6.0  ;;  %v3906_v23 = vadd.f32 %v7824_v0, %v3867_v58 }
 0x594   : > { %v3767_v48 = vadd.f32 %v3735_v47, %v3666_v25  ;;  %v3464_v10 = vadd.f32 %v3432_v37, %v3363_v29 }
 0x595   : > { %5258 = vmatprep.mubr.msk.f32.mxu0 %vm923_vm1, %v3969_v8  ;;  %v3938_v51 = vmax.f32 %v3906_v23, 0.0 }
 0x596   : > { %v3868_v3 = vadd.f32 %v3836_v50, %v3767_v48  ;;  %v3565_v62 = vadd.f32 %v3533_v43, %v3464_v10 }
 0x597   : > { %v3970_v15 = vmin.f32 %v3938_v51, 6.0 }
 0x598   : > { %v3907_v5 = vadd.f32 %v7824_v0, %v3868_v3  ;;  %v3667_v26 = vadd.f32 %v3635_v63, %v3565_v62 }
 0x599   : > { %5259 = vmatmul.mubr.msk.f32.gmra.mxu0 %vm923_vm1, %v3970_v15 }
 0x59a   : > { %v3939_v38 = vmax.f32 %v3907_v5, 0.0  ;;  %v3768_v9 = vadd.f32 %v3736_v35, %v3667_v26 }
 0x59c   : > { %v3971_v41 = vmin.f32 %v3939_v38, 6.0  ;;  %v3869_v14 = vadd.f32 %v3837_v54, %v3768_v9  ;;  %v4305_v9 = vld [vmem:[%s485_s25] sm:$0xff] }
 0x59e   : > { %5261 = vmatprep.mubr.msk.f32.mxu0 %vm923_vm1, %v3971_v41  ;;  %v3908_v13 = vadd.f32 %v7824_v0, %v3869_v14 }
 0x5a0   : > { %v3940_v16 = vmax.f32 %v3908_v13, 0.0 }
 0x5a2   : > { %v3972_v7 = vmin.f32 %v3940_v16, 6.0 }
 0x5a4   : > { %5262 = vmatmul.mubr.msk.f32.gmra.mxu0 %vm923_vm1, %v3972_v7 }
 0x5cf   : > { %v5218_v44 = vpop.f32.mrf.mxu0 }
 0x5d0   : > { %v4152_v30 = vadd.f32 %v5218_v44, %v8049_v12 }
 0x5d1   : > { %v4146_v53 = vpop.f32.mrf.mxu0 }
 0x5d2   : > { %v4147_v6 = vadd.f32 %v8049_v12, %v4146_v53 }
 0x5d4   : > { %4307 = vxpose.xlu0.b32.start [1/16] (narrow) %v4147_v6, 8 }
 0x5d7   : > { %v5221_v11 = vpop.f32.mrf.mxu0 }
 0x5d8   : > { %4308 = vxpose.xlu0.b32.cont [2/16] (narrow) %v4152_v30, 8  ;;  %v4162_v19 = vadd.f32 %v5221_v11, %v8049_v12  ;;  %v4306_v11 = vld [vmem:[%s485_s25 + $0x8] sm:$0xff]  ;;  %s5514_s25 = scalar_lea.vmem %s5513_s4, 512 }
 0x5d9   : > { %v4156_v21 = vpop.f32.mrf.mxu0  ;;  %p5516_p1 = scmp.lt.s32.totalorder %s5514_s25, %s5508_s1 }
 0x5da   : > { %v4157_v0 = vadd.f32 %v8049_v12, %v4156_v21 }
 0x5db   : > { %p5517_p2 = por %p5516_p1, %p5515_p0 }
 0x5dc   : > { %4309 = vxpose.xlu0.b32.cont [3/16] (narrow) %v4157_v0, 8 }
 0x5dd   : > { %p5518_p3 = pnand %p5517_p2, %p5511_p13 }
 0x5e0   : > { %4310 = vxpose.xlu0.b32.cont [4/16] (narrow) %v4162_v19, 8  ;;  %v5224_v55 = vpop.f32.mrf.mxu0 }
 0x5e1   : > { %v4172_v28 = vadd.f32 %v5224_v55, %v8049_v12 }
 0x5e2   : > { %v4166_v52 = vpop.f32.mrf.mxu0 }
 0x5e3   : > { %v4167_v39 = vadd.f32 %v8049_v12, %v4166_v52 }
 0x5e5   : > { %4311 = vxpose.xlu0.b32.cont [5/16] (narrow) %v4167_v39, 8 }
 0x5e9   : > { %4312 = vxpose.xlu0.b32.cont [6/16] (narrow) %v4172_v28, 8 }
 0x5ea   : > { %v5227_v18 = vpop.f32.mrf.mxu0 }
 0x5eb   : > { %v4182_v59 = vadd.f32 %v5227_v18, %v8049_v12 }
 0x5ec   : > { %v4176_v1 = vpop.f32.mrf.mxu0 }
 0x5ed   : > { %v4177_v42 = vadd.f32 %v8049_v12, %v4176_v1 }
 0x5ef   : > { %4313 = vxpose.xlu0.b32.cont [7/16] (narrow) %v4177_v42, 8 }
 0x5f3   : > { %4314 = vxpose.xlu0.b32.cont [8/16] (narrow) %v4182_v59, 8 }
 0x5f4   : > { %v5230_v4 = vpop.f32.mrf.mxu0 }
 0x5f5   : > { %v4192_v34 = vadd.f32 %v5230_v4, %v8049_v12 }
 0x5f6   : > { %v4186_v57 = vpop.f32.mrf.mxu0 }
 0x5f7   : > { %v4187_v45 = vadd.f32 %v8049_v12, %v4186_v57 }
 0x5f9   : > { %4315 = vxpose.xlu0.b32.cont [9/16] (narrow) %v4187_v45, 8 }
 0x5fd   : > { %4316 = vxpose.xlu0.b32.cont [10/16] (narrow) %v4192_v34, 8 }
 0x5ff   : > { %v5233_v60 = vpop.f32.mrf.mxu0 }
 0x600   : > { %v4202_v33 = vadd.f32 %v5233_v60, %v8049_v12 }
 0x601   : > { %v4196_v32 = vpop.f32.mrf.mxu0 }
 0x602   : > { %v4197_v61 = vadd.f32 %v8049_v12, %v4196_v32 }
 0x604   : > { %4317 = vxpose.xlu0.b32.cont [11/16] (narrow) %v4197_v61, 8 }
 0x608   : > { %4318 = vxpose.xlu0.b32.cont [12/16] (narrow) %v4202_v33, 8 }
 0x609   : > { %v5236_v49 = vpop.f32.mrf.mxu0 }
 0x60a   : > { %v4212_v17 = vadd.f32 %v5236_v49, %v8049_v12 }
 0x60b   : > { %v4206_v36 = vpop.f32.mrf.mxu0 }
 0x60c   : > { %v4207_v24 = vadd.f32 %v8049_v12, %v4206_v36 }
 0x60e   : > { %4319 = vxpose.xlu0.b32.cont [13/16] (narrow) %v4207_v24, 8 }
 0x612   : > { %4320 = vxpose.xlu0.b32.cont [14/16] (narrow) %v4212_v17, 8 }
 0x613   : > { %v5239_v20 = vpop.f32.mrf.mxu0 }
 0x614   : > { %v4222_v47 = vadd.f32 %v5239_v20, %v8049_v12 }
 0x615   : > { %v4216_v22 = vpop.f32.mrf.mxu0 }
 0x616   : > { %v4217_v56 = vadd.f32 %v8049_v12, %v4216_v22 }
 0x618   : > { %4321 = vxpose.xlu0.b32.cont [15/16] (narrow) %v4217_v56, 8 }
 0x61c   : > { %4322 = vxpose.xlu0.b32.end [16/16] (narrow) %v4222_v47, 8 }
 0x61d   : > { %v5242_v40 = vpop.f32.mrf.mxu0 }
 0x61e   : > { %v4232_v27 = vadd.f32 %v5242_v40, %v8049_v12 }
 0x61f   : > { %v4226_v46 = vpop.f32.mrf.mxu0 }
 0x620   : > { %v4227_v58 = vadd.f32 %v8049_v12, %v4226_v46 }
 0x622   : > { %4339 = vxpose.xlu1.b32.start [1/16] (narrow) %v4227_v58, 8 }
 0x626   : > { %4340 = vxpose.xlu1.b32.cont [2/16] (narrow) %v4232_v27, 8 }
 0x628   : > { %v5245_v25 = vpop.f32.mrf.mxu0 }
 0x629   : > { %v4242_v37 = vadd.f32 %v5245_v25, %v8049_v12 }
 0x62a   : > { %v4236_v50 = vpop.f32.mrf.mxu0 }
 0x62b   : > { %v4237_v29 = vadd.f32 %v8049_v12, %v4236_v50 }
 0x62d   : > { %4341 = vxpose.xlu1.b32.cont [3/16] (narrow) %v4237_v29, 8 }
 0x631   : > { %v5248_v8 = vpop.f32.mrf.mxu0  ;;  %4342 = vxpose.xlu1.b32.cont [4/16] (narrow) %v4242_v37, 8 }
 0x632   : > { %v4252_v48 = vadd.f32 %v5248_v8, %v8049_v12 }
 0x633   : > { %v4246_v23 = vpop.f32.mrf.mxu0 }
 0x634   : > { %v4247_v2 = vadd.f32 %v8049_v12, %v4246_v23 }
 0x636   : > { %4343 = vxpose.xlu1.b32.cont [5/16] (narrow) %v4247_v2, 8 }
 0x63a   : > { %4344 = vxpose.xlu1.b32.cont [6/16] (narrow) %v4252_v48, 8 }
 0x63b   : > { %v5251_v10 = vpop.f32.mrf.mxu0 }
 0x63c   : > { %v4262_v51 = vadd.f32 %v5251_v10, %v8049_v12 }
 0x63d   : > { %v4256_v43 = vpop.f32.mrf.mxu0 }
 0x63e   : > { %v4257_v63 = vadd.f32 %v8049_v12, %v4256_v43 }
 0x640   : > { %4345 = vxpose.xlu1.b32.cont [7/16] (narrow) %v4257_v63, 8 }
 0x644   : > { %4346 = vxpose.xlu1.b32.cont [8/16] (narrow) %v4262_v51, 8 }
 0x646   : > { %v5254_v31 = vpop.f32.mrf.mxu0 }
 0x647   : > { %v4272_v35 = vadd.f32 %v5254_v31, %v8049_v12 }
 0x648   : > { %v4266_v3 = vpop.f32.mrf.mxu0 }
 0x649   : > { %v4267_v62 = vadd.f32 %v8049_v12, %v4266_v3 }
 0x64b   : > { %4347 = vxpose.xlu1.b32.cont [9/16] (narrow) %v4267_v62, 8 }
 0x64f   : > { %v5257_v15 = vpop.f32.mrf.mxu0  ;;  %4348 = vxpose.xlu1.b32.cont [10/16] (narrow) %v4272_v35, 8 }
 0x650   : > { %v4282_v54 = vadd.f32 %v5257_v15, %v8049_v12 }
 0x651   : > { %v4276_v5 = vpop.f32.mrf.mxu0 }
 0x652   : > { %v4277_v26 = vadd.f32 %v8049_v12, %v4276_v5 }
 0x654   : > { %4349 = vxpose.xlu1.b32.cont [11/16] (narrow) %v4277_v26, 8 }
 0x658   : > { %4350 = vxpose.xlu1.b32.cont [12/16] (narrow) %v4282_v54, 8 }
 0x659   : > { %v5260_v38 = vpop.f32.mrf.mxu0 }
 0x65a   : > { %v4292_v7 = vadd.f32 %v5260_v38, %v8049_v12 }
 0x65b   : > { %v4286_v41 = vpop.f32.mrf.mxu0 }
 0x65c   : > { %v4287_v14 = vadd.f32 %v8049_v12, %v4286_v41  ;;  %v4323_v13 = vpop.trf.xlu0 }
 0x65d   : > { %v4371_v16 = vadd.f32 %v4323_v13, %v4305_v9 }
 0x65e   : > { %4351 = vxpose.xlu1.b32.cont [13/16] (narrow) %v4287_v14, 8 }
 0x65f   : > { %4373 = vst [vmem:[%s475_s28] sm:$0xff] %v4371_v16 }
 0x662   : > { %4352 = vxpose.xlu1.b32.cont [14/16] (narrow) %v4292_v7, 8 }
 0x664   : > { %v5263_v44 = vpop.f32.mrf.mxu0 }
 0x665   : > { %v4302_v30 = vadd.f32 %v5263_v44, %v8049_v12 }
 0x666   : > { %v4296_v53 = vpop.f32.mrf.mxu0 }
 0x667   : > { %v4297_v6 = vadd.f32 %v8049_v12, %v4296_v53 }
 0x669   : > { %4353 = vxpose.xlu1.b32.cont [15/16] (narrow) %v4297_v6, 8 }
 0x66d   : > { %4354 = vxpose.xlu1.b32.end [16/16] (narrow) %v4302_v30, 8 }
 0x6ad   : > { %v4355_v21 = vpop.trf.xlu1 }
 0x6ae   : > { %v4372_v0 = vadd.f32 %v4355_v21, %v4306_v11 }
 0x6b0   : > { %4374 = vst [vmem:[%s475_s28 + $0x8] sm:$0xff] %v4372_v0 }
 0x6b1   : > { %5521 = shalt.err (!%p5518_p3)
}
 0x6b2   : > { %s5522_s17 = scalar_lea.hbm %s4388_s26, 256  ;;  %s5526_s18 = scalar_lea.hbm %s8135_s14, 512 }
 0x6b3   : > { %p5523_p4 = scmp.ne.s32.totalorder %s4388_s26, %s5522_s17  ;;  %p5527_p9 = scmp.lt.s32.totalorder %s4388_s26, %s8135_s14 }
 0x6b4   : > { %p5528_p10 = scmp.lt.s32.totalorder %s5526_s18, %s5522_s17 }
 0x6b5   : > { %p5524_p7 = pnand %p5523_p4, %p5685_p5 }
 0x6b6   : > { %p5529_p11 = por %p5528_p10, %p5527_p9 }
 0x6b7   : > { %p5525_p8 = pneg %p5524_p7 }
 0x6b9   : > { %p5530_p12 = pnand %p5529_p11, %p5525_p8 }
 0x6bb   : > { %5533 = shalt.err (!%p5530_p12)
}
 0x6bc   : > { %5266 = dma.vmem_to_hbm [thread:$0]  (%p5685_p5), %s4391_s20, 256, %s4388_s26, %s4376_s27  }
 0x6bd PF: > { %p5272_p13 = scmp.ge.s32.totalorder %s5568_s16, 2  ;;  %s4402_s1 = sand.u32 1, %s5556_s29  }
 0x6be   : > { %s4403_s3 = scalar_lea.sflag [#allocation4], %s4402_s1 }
 0x6bf   : > { %p5269_p0 = pnand %p5272_p13, %p5689_p6 }
 0x6c1   : > { %p5270_p1 = pneg %p5269_p0 }
 0x6c3   : > { %5551 = dma.done.wait (%p5270_p1), %s4403_s3, 256  }
 0x6c4   : > { %5553 = vsyncadd (%p5270_p1), %s4403_s3, 4294967040  ;;  %p24_p2 = scmp.ge.s32.totalorder %s5672_s19, 4   ;;  %s8255_s29 = smov %s5560_s30 }
 0x6c5   : > { %s8256_s30 = smov %s5564_s15  ;;  %s8257_s15 = smov %s5683_s22 }
 0x6c6   : > { %s8258_s16 = smov %s5672_s19  ;;  %26 = sbr.rel (!%p24_p2) target bundleno = 9 (0x9), region = 116 }
 0x6cb   :  { %4408 = vsyncpa [#allocation4], 1 }
 0x6cc   :  { %4410 = vsyncpa [#allocation4 + $0x1], 1 }

</bundles_post_ra>
